<compile_context>
chip_gen: v6e
topology: v6e:2x2x1
jax: 0.10.0
libtpu: 0.0.40
codegen_flags: <defaults>
</compile_context>

<pallas_src>
import jax
import jax.numpy as jnp
from jax.experimental import pallas as pl
from jax.experimental.pallas import tpu as pltpu

MODEL_DIM = 128
NUM_HEADS = 8
FFN_DIM = 256
DIM_PER_HEAD = MODEL_DIM // NUM_HEADS
LN_EPS = 1e-5       # PyTorch nn.LayerNorm default
MASK_BIAS = -1e30   # finite "masked" additive bias (avoids -inf -> NaN)


# ----------------------------- in-kernel helpers -----------------------------

def _layer_norm(y, gamma, beta):
    """LayerNorm with single-pass statistics (E[x], E[x^2])."""
    mu = jnp.mean(y, axis=-1, keepdims=True)
    ms = jnp.mean(y * y, axis=-1, keepdims=True)
    var = jnp.maximum(ms - mu * mu, 0.0)
    return (y - mu) * jax.lax.rsqrt(var + LN_EPS) * gamma + beta


def _split_heads(x2):
    """(L, D) -> (H, L, dh) head-major, via lane slices + one stack."""
    return jnp.stack(
        [x2[:, h * DIM_PER_HEAD:(h + 1) * DIM_PER_HEAD]
         for h in range(NUM_HEADS)],
        axis=0)


def _attn_core(residual, q, k, v, bias, wf3, bf, gamma, beta, attn_ref):
    """All-heads scaled-dot-product attention + final linear + add & norm.

    residual, q : (Lq, D) f32      k, v : (Lk, D) f32
    bias        : (Lq, Lk) additive mask bias (0 or MASK_BIAS)
    wf3         : (H, dh, D) bf16 final-projection weight (head-major rows)
    Writes (H, 1, Lq, Lk) softmax probabilities to attn_ref, returns
    LayerNorm(residual + final(context)) as (Lq, D) f32.
    """
    Lq, D = q.shape
    Lk = k.shape[0]
    inv_temp = 1.0 / (float(DIM_PER_HEAD) ** 0.5)

    qh = _split_heads(q).astype(jnp.bfloat16)        # (H, Lq, dh)
    kh = _split_heads(k).astype(jnp.bfloat16)        # (H, Lk, dh)
    vh = _split_heads(v).astype(jnp.bfloat16)        # (H, Lk, dh)

    # one leading-batch contraction for every head's scores
    s = jnp.einsum('hqd,hkd->hqk', qh, kh,
                   preferred_element_type=jnp.float32) * inv_temp
    s = s + bias[None, :, :]

    # softmax over keys, once for all heads (exact division for torch parity)
    m = jnp.max(s, axis=-1, keepdims=True)
    e = jnp.exp(s - m)
    p = e / jnp.sum(e, axis=-1, keepdims=True)       # (H, Lq, Lk) f32

    # single store of every head's attention weights (no per-head partials)
    attn_ref[...] = p.reshape(NUM_HEADS, 1, Lq, Lk)

    # context per head; head merge folded into the final projection:
    #   out = sum_h ctx[h] @ wf[h*dh:(h+1)*dh, :]
    ctx = jnp.einsum('hqk,hkd->hqd', p.astype(jnp.bfloat16), vh,
                     preferred_element_type=jnp.float32)        # (H, Lq, dh)
    out_h = jnp.einsum('hqd,hdo->hqo', ctx.astype(jnp.bfloat16), wf3,
                       preferred_element_type=jnp.float32)      # (H, Lq, D)
    out = jnp.sum(out_h, axis=0) + bf                           # (Lq, D)

    # dropout(p=0.0) == identity (inference)
    return _layer_norm(residual + out, gamma, beta)


# ----------------------------- fused layer kernel -----------------------------

def _decoder_layer_kernel(
    # per-batch data blocks
    dec_ref, enc_ref, npm_ref, smask_ref, cmask_ref,
    # self-attention params
    s_wqkv, s_bqkv, s_wf3, s_bf, s_g, s_b,
    # cross-attention params
    c_wq, c_bq, c_wkv, c_bkv, c_wf3, c_bf, c_g, c_b,
    # FFN params
    f_w1, f_b1, f_w2, f_b2, f_g, f_b,
    # outputs
    out_ref, sattn_ref, cattn_ref):
    D = dec_ref.shape[-1]

    dec = dec_ref[0]                                 # (Ld, D) f32
    enc = enc_ref[0]                                 # (Le, D) f32
    npm = npm_ref[0]                                 # (Ld, 1) f32
    sbias = smask_ref[0] * jnp.float32(MASK_BIAS)    # (Ld, Ld) additive bias
    cbias = cmask_ref[0] * jnp.float32(MASK_BIAS)    # (Ld, Le) additive bias

    # ---- masked self-attention: fused (D, 3D) Q|K|V projection -------------
    qkv = jnp.dot(dec.astype(jnp.bfloat16), s_wqkv[...],
                  preferred_element_type=jnp.float32) + s_bqkv[...]
    x = _attn_core(dec, qkv[:, :D], qkv[:, D:2 * D], qkv[:, 2 * D:],
                   sbias, s_wf3[...], s_bf[...], s_g[...], s_b[...],
                   sattn_ref)
    x = x * npm

    # ---- encoder-decoder attention: Q from decoder, fused (D, 2D) K|V ------
    q = jnp.dot(x.astype(jnp.bfloat16), c_wq[...],
                preferred_element_type=jnp.float32) + c_bq[...]
    kv = jnp.dot(enc.astype(jnp.bfloat16), c_wkv[...],
                 preferred_element_type=jnp.float32) + c_bkv[...]
    x = _attn_core(x, q, kv[:, :D], kv[:, D:], cbias,
                   c_wf3[...], c_bf[...], c_g[...], c_b[...], cattn_ref)
    x = x * npm

    # ---- position-wise FFN (Conv1d k=1 == pointwise linear) ----------------
    h = jnp.maximum(
        jnp.dot(x.astype(jnp.bfloat16), f_w1[...],
                preferred_element_type=jnp.float32) + f_b1[...], 0.0)
    o = jnp.dot(h.astype(jnp.bfloat16), f_w2[...],
                preferred_element_type=jnp.float32) + f_b2[...]
    x = _layer_norm(x + o, f_g[...], f_b[...])
    x = x * npm

    out_ref[0] = x


# ----------------------------- wrapper -----------------------------

def _resident_spec(arr):
    """Full-array block with a grid-independent index map (stays in VMEM)."""
    zeros = (0,) * arr.ndim
    return pl.BlockSpec(arr.shape, lambda b, _z=zeros: _z)


@jax.jit
def decoder_layer(dec_inputs, enc_outputs, params, non_pad_mask,
                  self_attn_mask, context_attn_mask):
    B, Ld, D = dec_inputs.shape
    Le = enc_outputs.shape[1]
    s, c, f = params["slf"], params["enc"], params["ffn"]

    weights = [s["wqkv"], s["bqkv"], s["wf3"], s["bf"], s["ln_g"], s["ln_b"],
               c["wq"], c["bq"], c["wkv"], c["bkv"], c["wf3"], c["bf"],
               c["ln_g"], c["ln_b"],
               f["w1"], f["b1"], f["w2"], f["b2"], f["ln_g"], f["ln_b"]]

    in_specs = [
        pl.BlockSpec((1, Ld, D), lambda b: (b, 0, 0)),     # dec_inputs
        pl.BlockSpec((1, Le, D), lambda b: (b, 0, 0)),     # enc_outputs
        pl.BlockSpec((1, Ld, 1), lambda b: (b, 0, 0)),     # non_pad_mask
        pl.BlockSpec((1, Ld, Ld), lambda b: (b, 0, 0)),    # self_attn_mask
        pl.BlockSpec((1, Ld, Le), lambda b: (b, 0, 0)),    # context_attn_mask
    ] + [_resident_spec(w) for w in weights]

    out_specs = (
        pl.BlockSpec((1, Ld, D), lambda b: (b, 0, 0)),
        pl.BlockSpec((NUM_HEADS, 1, Ld, Ld), lambda b: (0, b, 0, 0)),
        pl.BlockSpec((NUM_HEADS, 1, Ld, Le), lambda b: (0, b, 0, 0)),
    )
    out_shape = (
        jax.ShapeDtypeStruct((B, Ld, D), jnp.float32),
        jax.ShapeDtypeStruct((NUM_HEADS, B, Ld, Ld), jnp.float32),
        jax.ShapeDtypeStruct((NUM_HEADS, B, Ld, Le), jnp.float32),
    )

    # ---- advisory cost estimate --------------------------------------------
    flops = 2 * B * (Ld * D * 3 * D            # fused self QKV projection
                     + 2 * Ld * Ld * D         # self scores + P@V
                     + Ld * D * D              # self final linear
                     + Ld * D * D              # cross Q projection
                     + Le * D * 2 * D          # fused cross KV projection
                     + 2 * Ld * Le * D         # cross scores + P@V
                     + Ld * D * D              # cross final linear
                     + 2 * Ld * D * FFN_DIM)   # FFN w1 + w2
    transc = B * (NUM_HEADS * Ld * (Ld + Le) + 3 * Ld)
    weight_bytes = sum(int(w.size) * w.dtype.itemsize for w in weights)
    act_in_bytes = sum(int(a.size) * a.dtype.itemsize
                       for a in (dec_inputs, enc_outputs, non_pad_mask,
                                 self_attn_mask, context_attn_mask))
    out_bytes = 4 * (B * Ld * D + NUM_HEADS * B * Ld * (Ld + Le))
    cost = pl.CostEstimate(flops=int(flops), transcendentals=int(transc),
                           bytes_accessed=int(weight_bytes + act_in_bytes
                                              + out_bytes))

    # ---- VMEM-budget guard (v7x has 64 MiB physical VMEM) ------------------
    block_bytes = 4 * (Ld * D + Le * D + Ld + Ld * Ld + Ld * Le    # in blocks
                       + Ld * D + NUM_HEADS * Ld * (Ld + Le))      # out blocks
    vmem_est = 2 * weight_bytes + 2 * block_bytes + (2 << 20)
    vmem_limit = (int(min(vmem_est, 112 * 1024 * 1024))
                  if vmem_est > (32 * 1024 * 1024) else None)

    out, sattn, cattn = pl.pallas_call(
        _decoder_layer_kernel,
        grid=(B,),
        in_specs=in_specs,
        out_specs=out_specs,
        out_shape=out_shape,
        compiler_params=pltpu.CompilerParams(
            dimension_semantics=("parallel",),      # megacore split on v7x
            vmem_limit_bytes=vmem_limit),
        cost_estimate=cost,
    )(dec_inputs, enc_outputs, non_pad_mask, self_attn_mask,
      context_attn_mask, *weights)

    # torch layout: attention maps are (num_heads * batch, Lq, Lk), row h*B+b
    return (out,
            sattn.reshape(NUM_HEADS * B, Ld, Ld),
            cattn.reshape(NUM_HEADS * B, Ld, Le))


# ----------------------------- deterministic params -----------------------------

def init_mha_params(key, model_dim, num_heads, fuse_q):
    dh = model_dim // num_heads
    ks = jax.random.split(key, 8)
    std_qkv = (2.0 / (model_dim + dh)) ** 0.5       # nn.init.normal_ std
    std_final = (2.0 / (2.0 * model_dim)) ** 0.5    # xavier_normal_

    wq = std_qkv * jax.random.normal(ks[0], (model_dim, model_dim), jnp.float32)
    wk = std_qkv * jax.random.normal(ks[1], (model_dim, model_dim), jnp.float32)
    wv = std_qkv * jax.random.normal(ks[2], (model_dim, model_dim), jnp.float32)
    wf = std_final * jax.random.normal(ks[3], (model_dim, model_dim), jnp.float32)
    bq = 0.01 * jax.random.normal(ks[4], (1, model_dim), jnp.float32)
    bk = 0.01 * jax.random.normal(ks[5], (1, model_dim), jnp.float32)
    bv = 0.01 * jax.random.normal(ks[6], (1, model_dim), jnp.float32)
    bf = 0.01 * jax.random.normal(ks[7], (1, model_dim), jnp.float32)

    p = dict(
        # final projection weight pre-reshaped head-major (H, dh, D) so the
        # kernel folds the head merge into the projection itself.
        wf3=wf.reshape(num_heads, dh, model_dim).astype(jnp.bfloat16),
        bf=bf,
        ln_g=jnp.ones((1, model_dim), jnp.float32),
        ln_b=jnp.zeros((1, model_dim), jnp.float32))
    if fuse_q:      # self-attention: one fused (D, 3D) Q|K|V projection
        p["wqkv"] = jnp.concatenate([wq, wk, wv], axis=1).astype(jnp.bfloat16)
        p["bqkv"] = jnp.concatenate([bq, bk, bv], axis=1)
    else:           # cross-attention: separate Q, fused (D, 2D) K|V
        p["wq"] = wq.astype(jnp.bfloat16)
        p["bq"] = bq
        p["wkv"] = jnp.concatenate([wk, wv], axis=1).astype(jnp.bfloat16)
        p["bkv"] = jnp.concatenate([bk, bv], axis=1)
    return p


def init_ffn_params(key, model_dim, ffn_dim):
    ks = jax.random.split(key, 4)
    w1 = (1.0 / model_dim) ** 0.5 * jax.random.normal(
        ks[0], (model_dim, ffn_dim), jnp.float32)
    b1 = 0.01 * jax.random.normal(ks[1], (1, ffn_dim), jnp.float32)
    w2 = (1.0 / ffn_dim) ** 0.5 * jax.random.normal(
        ks[2], (ffn_dim, model_dim), jnp.float32)
    b2 = 0.01 * jax.random.normal(ks[3], (1, model_dim), jnp.float32)
    return dict(w1=w1.astype(jnp.bfloat16), b1=b1,
                w2=w2.astype(jnp.bfloat16), b2=b2,
                ln_g=jnp.ones((1, model_dim), jnp.float32),
                ln_b=jnp.zeros((1, model_dim), jnp.float32))


# ----------------------------- main -----------------------------

if __name__ == "__main__":
    assert MODEL_DIM % NUM_HEADS == 0
    key = jax.random.PRNGKey(0)
    k_in, k_enc, k_p1, k_p2, k_p3 = jax.random.split(key, 5)
    B, Ld, Le = 2, 8, 8

    dec_inputs = jax.random.normal(k_in, (B, Ld, MODEL_DIM), jnp.float32)
    enc_outputs = jax.random.normal(k_enc, (B, Le, MODEL_DIM), jnp.float32)
    # non_pad_mask: (B, Ld, 1), zero out the last (padding) position
    non_pad_mask = jnp.ones((B, Ld, 1), jnp.float32).at[:, -1, :].set(0.0)
    # causal self-attention mask (1.0 == masked, like a True boolean mask)
    self_attn_mask = jnp.broadcast_to(
        jnp.triu(jnp.ones((Ld, Ld), jnp.float32), k=1), (B, Ld, Ld))
    context_attn_mask = jnp.zeros((B, Ld, Le), jnp.float32)  # nothing masked

    params = dict(
        slf=init_mha_params(k_p1, MODEL_DIM, NUM_HEADS, fuse_q=True),
        enc=init_mha_params(k_p2, MODEL_DIM, NUM_HEADS, fuse_q=False),
        ffn=init_ffn_params(k_p3, MODEL_DIM, FFN_DIM),
    )

    out, self_attn, ctx_attn = decoder_layer(
        dec_inputs, enc_outputs, params, non_pad_mask,
        self_attn_mask, context_attn_mask)
    jax.block_until_ready((out, self_attn, ctx_attn))

    assert out.shape == (B, Ld, MODEL_DIM)
    assert self_attn.shape == (NUM_HEADS * B, Ld, Ld)
    assert ctx_attn.shape == (NUM_HEADS * B, Ld, Le)
    assert bool(jnp.all(jnp.isfinite(out)))
    # softmax rows must sum to ~1 (exact-division softmax)
    assert bool(jnp.all(jnp.abs(jnp.sum(self_attn, axis=-1) - 1.0) < 1e-3))
    assert bool(jnp.all(jnp.abs(jnp.sum(ctx_attn, axis=-1) - 1.0) < 1e-3))
    print("KERNEL_OK")
</pallas_src>

<mosaic_0001>
module attributes {stable_mosaic.version = 11 : i64} {
  func.func @_decoder_layer_kernel(%arg0: i32, %arg1: memref<1x8x128xf32, #tpu.memory_space<vmem>>, %arg2: memref<1x8x128xf32, #tpu.memory_space<vmem>>, %arg3: memref<1x8x1xf32, #tpu.memory_space<vmem>>, %arg4: memref<1x8x8xf32, #tpu.memory_space<vmem>>, %arg5: memref<1x8x8xf32, #tpu.memory_space<vmem>>, %arg6: memref<128x384xbf16, #tpu.memory_space<vmem>>, %arg7: memref<1x384xf32, #tpu.memory_space<vmem>>, %arg8: memref<8x16x128xbf16, #tpu.memory_space<vmem>>, %arg9: memref<1x128xf32, #tpu.memory_space<vmem>>, %arg10: memref<1x128xf32, #tpu.memory_space<vmem>>, %arg11: memref<1x128xf32, #tpu.memory_space<vmem>>, %arg12: memref<128x128xbf16, #tpu.memory_space<vmem>>, %arg13: memref<1x128xf32, #tpu.memory_space<vmem>>, %arg14: memref<128x256xbf16, #tpu.memory_space<vmem>>, %arg15: memref<1x256xf32, #tpu.memory_space<vmem>>, %arg16: memref<8x16x128xbf16, #tpu.memory_space<vmem>>, %arg17: memref<1x128xf32, #tpu.memory_space<vmem>>, %arg18: memref<1x128xf32, #tpu.memory_space<vmem>>, %arg19: memref<1x128xf32, #tpu.memory_space<vmem>>, %arg20: memref<128x256xbf16, #tpu.memory_space<vmem>>, %arg21: memref<1x256xf32, #tpu.memory_space<vmem>>, %arg22: memref<256x128xbf16, #tpu.memory_space<vmem>>, %arg23: memref<1x128xf32, #tpu.memory_space<vmem>>, %arg24: memref<1x128xf32, #tpu.memory_space<vmem>>, %arg25: memref<1x128xf32, #tpu.memory_space<vmem>>, %arg26: memref<1x8x128xf32, #tpu.memory_space<vmem>>, %arg27: memref<8x1x8x8xf32, #tpu.memory_space<vmem>>, %arg28: memref<8x1x8x8xf32, #tpu.memory_space<vmem>>) attributes {dimension_semantics = [#tpu.dimension_semantics<parallel>], iteration_bounds = array<i64: 2>, scalar_prefetch = 0 : i64, scratch_operands = 0 : i64, tpu.core_type = #tpu.core_type<tc>, window_params = [{transform_indices = @transform_0, window_bounds = array<i64: 1, 8, 128>}, {transform_indices = @transform_1, window_bounds = array<i64: 1, 8, 128>}, {transform_indices = @transform_2, window_bounds = array<i64: 1, 8, 1>}, {transform_indices = @transform_3, window_bounds = array<i64: 1, 8, 8>}, {transform_indices = @transform_4, window_bounds = array<i64: 1, 8, 8>}, {pipeline_mode = #tpu.pipeline_mode<synchronous>, transform_indices = @transform_5, window_bounds = array<i64: 128, 384>}, {pipeline_mode = #tpu.pipeline_mode<synchronous>, transform_indices = @transform_6, window_bounds = array<i64: 1, 384>}, {pipeline_mode = #tpu.pipeline_mode<synchronous>, transform_indices = @transform_7, window_bounds = array<i64: 8, 16, 128>}, {pipeline_mode = #tpu.pipeline_mode<synchronous>, transform_indices = @transform_8, window_bounds = array<i64: 1, 128>}, {pipeline_mode = #tpu.pipeline_mode<synchronous>, transform_indices = @transform_9, window_bounds = array<i64: 1, 128>}, {pipeline_mode = #tpu.pipeline_mode<synchronous>, transform_indices = @transform_10, window_bounds = array<i64: 1, 128>}, {pipeline_mode = #tpu.pipeline_mode<synchronous>, transform_indices = @transform_11, window_bounds = array<i64: 128, 128>}, {pipeline_mode = #tpu.pipeline_mode<synchronous>, transform_indices = @transform_12, window_bounds = array<i64: 1, 128>}, {pipeline_mode = #tpu.pipeline_mode<synchronous>, transform_indices = @transform_13, window_bounds = array<i64: 128, 256>}, {pipeline_mode = #tpu.pipeline_mode<synchronous>, transform_indices = @transform_14, window_bounds = array<i64: 1, 256>}, {pipeline_mode = #tpu.pipeline_mode<synchronous>, transform_indices = @transform_15, window_bounds = array<i64: 8, 16, 128>}, {pipeline_mode = #tpu.pipeline_mode<synchronous>, transform_indices = @transform_16, window_bounds = array<i64: 1, 128>}, {pipeline_mode = #tpu.pipeline_mode<synchronous>, transform_indices = @transform_17, window_bounds = array<i64: 1, 128>}, {pipeline_mode = #tpu.pipeline_mode<synchronous>, transform_indices = @transform_18, window_bounds = array<i64: 1, 128>}, {pipeline_mode = #tpu.pipeline_mode<synchronous>, transform_indices = @transform_19, window_bounds = array<i64: 128, 256>}, {pipeline_mode = #tpu.pipeline_mode<synchronous>, transform_indices = @transform_20, window_bounds = array<i64: 1, 256>}, {pipeline_mode = #tpu.pipeline_mode<synchronous>, transform_indices = @transform_21, window_bounds = array<i64: 256, 128>}, {pipeline_mode = #tpu.pipeline_mode<synchronous>, transform_indices = @transform_22, window_bounds = array<i64: 1, 128>}, {pipeline_mode = #tpu.pipeline_mode<synchronous>, transform_indices = @transform_23, window_bounds = array<i64: 1, 128>}, {pipeline_mode = #tpu.pipeline_mode<synchronous>, transform_indices = @transform_24, window_bounds = array<i64: 1, 128>}, {transform_indices = @transform_25, window_bounds = array<i64: 1, 8, 128>}, {transform_indices = @transform_26, window_bounds = array<i64: 8, 1, 8, 8>}, {transform_indices = @transform_27, window_bounds = array<i64: 8, 1, 8, 8>}]} {
    %c0 = arith.constant 0 : index
    %c0_0 = arith.constant 0 : index
    %c0_1 = arith.constant 0 : index
    %0 = vector.load %arg1[%c0, %c0_0, %c0_1] : memref<1x8x128xf32, #tpu.memory_space<vmem>>, vector<1x8x128xf32>
    %1 = vector.shape_cast %0 : vector<1x8x128xf32> to vector<8x128xf32>
    %c0_2 = arith.constant 0 : index
    %c0_3 = arith.constant 0 : index
    %c0_4 = arith.constant 0 : index
    %2 = vector.load %arg2[%c0_2, %c0_3, %c0_4] : memref<1x8x128xf32, #tpu.memory_space<vmem>>, vector<1x8x128xf32>
    %3 = vector.shape_cast %2 : vector<1x8x128xf32> to vector<8x128xf32>
    %c0_5 = arith.constant 0 : index
    %c0_6 = arith.constant 0 : index
    %c0_7 = arith.constant 0 : index
    %4 = vector.load %arg3[%c0_5, %c0_6, %c0_7] : memref<1x8x1xf32, #tpu.memory_space<vmem>>, vector<1x8x1xf32>
    %5 = vector.shape_cast %4 : vector<1x8x1xf32> to vector<8x1xf32>
    %c0_8 = arith.constant 0 : index
    %c0_9 = arith.constant 0 : index
    %c0_10 = arith.constant 0 : index
    %6 = vector.load %arg4[%c0_8, %c0_9, %c0_10] : memref<1x8x8xf32, #tpu.memory_space<vmem>>, vector<1x8x8xf32>
    %7 = vector.shape_cast %6 : vector<1x8x8xf32> to vector<8x8xf32>
    %cst = arith.constant -1.000000e+30 : f32
    %8 = vector.broadcast %cst : f32 to vector<8x8xf32>
    %9 = arith.mulf %7, %8 : vector<8x8xf32>
    %c0_11 = arith.constant 0 : index
    %c0_12 = arith.constant 0 : index
    %c0_13 = arith.constant 0 : index
    %10 = vector.load %arg5[%c0_11, %c0_12, %c0_13] : memref<1x8x8xf32, #tpu.memory_space<vmem>>, vector<1x8x8xf32>
    %11 = vector.shape_cast %10 : vector<1x8x8xf32> to vector<8x8xf32>
    %cst_14 = arith.constant -1.000000e+30 : f32
    %12 = vector.broadcast %cst_14 : f32 to vector<8x8xf32>
    %13 = arith.mulf %11, %12 : vector<8x8xf32>
    %14 = arith.truncf %1 : vector<8x128xf32> to vector<8x128xbf16>
    %c0_15 = arith.constant 0 : index
    %c0_16 = arith.constant 0 : index
    %15 = vector.load %arg6[%c0_15, %c0_16] : memref<128x384xbf16, #tpu.memory_space<vmem>>, vector<128x384xbf16>
    %cst_17 = arith.constant dense<0.000000e+00> : vector<8x384xf32>
    %16 = tpu.matmul %14, %15, %cst_17 {dimension_numbers = #tpu.dot_dimension_numbers<[1], [0], [0], [1], [0, 0, 1, 1], [], []>} : vector<8x128xbf16>, vector<128x384xbf16>, vector<8x384xf32> -> vector<8x384xf32>
    %c0_18 = arith.constant 0 : index
    %c0_19 = arith.constant 0 : index
    %17 = vector.load %arg7[%c0_18, %c0_19] : memref<1x384xf32, #tpu.memory_space<vmem>>, vector<1x384xf32>
    %18 = vector.broadcast %17 : vector<1x384xf32> to vector<8x384xf32>
    %19 = arith.addf %16, %18 : vector<8x384xf32>
    %20 = vector.extract_strided_slice %19 {offsets = [0, 0], sizes = [8, 128], strides = [1, 1]} : vector<8x384xf32> to vector<8x128xf32>
    %21 = vector.extract_strided_slice %19 {offsets = [0, 128], sizes = [8, 128], strides = [1, 1]} : vector<8x384xf32> to vector<8x128xf32>
    %22 = vector.extract_strided_slice %19 {offsets = [0, 256], sizes = [8, 128], strides = [1, 1]} : vector<8x384xf32> to vector<8x128xf32>
    %c0_20 = arith.constant 0 : index
    %c0_21 = arith.constant 0 : index
    %c0_22 = arith.constant 0 : index
    %23 = vector.load %arg8[%c0_20, %c0_21, %c0_22] : memref<8x16x128xbf16, #tpu.memory_space<vmem>>, vector<8x16x128xbf16>
    %c0_23 = arith.constant 0 : index
    %c0_24 = arith.constant 0 : index
    %24 = vector.load %arg9[%c0_23, %c0_24] : memref<1x128xf32, #tpu.memory_space<vmem>>, vector<1x128xf32>
    %c0_25 = arith.constant 0 : index
    %c0_26 = arith.constant 0 : index
    %25 = vector.load %arg10[%c0_25, %c0_26] : memref<1x128xf32, #tpu.memory_space<vmem>>, vector<1x128xf32>
    %c0_27 = arith.constant 0 : index
    %c0_28 = arith.constant 0 : index
    %26 = vector.load %arg11[%c0_27, %c0_28] : memref<1x128xf32, #tpu.memory_space<vmem>>, vector<1x128xf32>
    %27 = vector.extract_strided_slice %20 {offsets = [0, 0], sizes = [8, 16], strides = [1, 1]} : vector<8x128xf32> to vector<8x16xf32>
    %28 = vector.extract_strided_slice %20 {offsets = [0, 16], sizes = [8, 16], strides = [1, 1]} : vector<8x128xf32> to vector<8x16xf32>
    %29 = vector.extract_strided_slice %20 {offsets = [0, 32], sizes = [8, 16], strides = [1, 1]} : vector<8x128xf32> to vector<8x16xf32>
    %30 = vector.extract_strided_slice %20 {offsets = [0, 48], sizes = [8, 16], strides = [1, 1]} : vector<8x128xf32> to vector<8x16xf32>
    %31 = vector.extract_strided_slice %20 {offsets = [0, 64], sizes = [8, 16], strides = [1, 1]} : vector<8x128xf32> to vector<8x16xf32>
    %32 = vector.extract_strided_slice %20 {offsets = [0, 80], sizes = [8, 16], strides = [1, 1]} : vector<8x128xf32> to vector<8x16xf32>
    %33 = vector.extract_strided_slice %20 {offsets = [0, 96], sizes = [8, 16], strides = [1, 1]} : vector<8x128xf32> to vector<8x16xf32>
    %34 = vector.extract_strided_slice %20 {offsets = [0, 112], sizes = [8, 16], strides = [1, 1]} : vector<8x128xf32> to vector<8x16xf32>
    %35 = vector.shape_cast %27 : vector<8x16xf32> to vector<1x8x16xf32>
    %36 = vector.shape_cast %28 : vector<8x16xf32> to vector<1x8x16xf32>
    %37 = vector.shape_cast %29 : vector<8x16xf32> to vector<1x8x16xf32>
    %38 = vector.shape_cast %30 : vector<8x16xf32> to vector<1x8x16xf32>
    %39 = vector.shape_cast %31 : vector<8x16xf32> to vector<1x8x16xf32>
    %40 = vector.shape_cast %32 : vector<8x16xf32> to vector<1x8x16xf32>
    %41 = vector.shape_cast %33 : vector<8x16xf32> to vector<1x8x16xf32>
    %42 = vector.shape_cast %34 : vector<8x16xf32> to vector<1x8x16xf32>
    %43 = tpu.concatenate %35, %36, %37, %38, %39, %40, %41, %42 in 0 : vector<1x8x16xf32>, vector<1x8x16xf32>, vector<1x8x16xf32>, vector<1x8x16xf32>, vector<1x8x16xf32>, vector<1x8x16xf32>, vector<1x8x16xf32>, vector<1x8x16xf32> -> vector<8x8x16xf32>
    %44 = arith.truncf %43 : vector<8x8x16xf32> to vector<8x8x16xbf16>
    %45 = vector.extract_strided_slice %21 {offsets = [0, 0], sizes = [8, 16], strides = [1, 1]} : vector<8x128xf32> to vector<8x16xf32>
    %46 = vector.extract_strided_slice %21 {offsets = [0, 16], sizes = [8, 16], strides = [1, 1]} : vector<8x128xf32> to vector<8x16xf32>
    %47 = vector.extract_strided_slice %21 {offsets = [0, 32], sizes = [8, 16], strides = [1, 1]} : vector<8x128xf32> to vector<8x16xf32>
    %48 = vector.extract_strided_slice %21 {offsets = [0, 48], sizes = [8, 16], strides = [1, 1]} : vector<8x128xf32> to vector<8x16xf32>
    %49 = vector.extract_strided_slice %21 {offsets = [0, 64], sizes = [8, 16], strides = [1, 1]} : vector<8x128xf32> to vector<8x16xf32>
    %50 = vector.extract_strided_slice %21 {offsets = [0, 80], sizes = [8, 16], strides = [1, 1]} : vector<8x128xf32> to vector<8x16xf32>
    %51 = vector.extract_strided_slice %21 {offsets = [0, 96], sizes = [8, 16], strides = [1, 1]} : vector<8x128xf32> to vector<8x16xf32>
    %52 = vector.extract_strided_slice %21 {offsets = [0, 112], sizes = [8, 16], strides = [1, 1]} : vector<8x128xf32> to vector<8x16xf32>
    %53 = vector.shape_cast %45 : vector<8x16xf32> to vector<1x8x16xf32>
    %54 = vector.shape_cast %46 : vector<8x16xf32> to vector<1x8x16xf32>
    %55 = vector.shape_cast %47 : vector<8x16xf32> to vector<1x8x16xf32>
    %56 = vector.shape_cast %48 : vector<8x16xf32> to vector<1x8x16xf32>
    %57 = vector.shape_cast %49 : vector<8x16xf32> to vector<1x8x16xf32>
    %58 = vector.shape_cast %50 : vector<8x16xf32> to vector<1x8x16xf32>
    %59 = vector.shape_cast %51 : vector<8x16xf32> to vector<1x8x16xf32>
    %60 = vector.shape_cast %52 : vector<8x16xf32> to vector<1x8x16xf32>
    %61 = tpu.concatenate %53, %54, %55, %56, %57, %58, %59, %60 in 0 : vector<1x8x16xf32>, vector<1x8x16xf32>, vector<1x8x16xf32>, vector<1x8x16xf32>, vector<1x8x16xf32>, vector<1x8x16xf32>, vector<1x8x16xf32>, vector<1x8x16xf32> -> vector<8x8x16xf32>
    %62 = arith.truncf %61 : vector<8x8x16xf32> to vector<8x8x16xbf16>
    %63 = vector.extract_strided_slice %22 {offsets = [0, 0], sizes = [8, 16], strides = [1, 1]} : vector<8x128xf32> to vector<8x16xf32>
    %64 = vector.extract_strided_slice %22 {offsets = [0, 16], sizes = [8, 16], strides = [1, 1]} : vector<8x128xf32> to vector<8x16xf32>
    %65 = vector.extract_strided_slice %22 {offsets = [0, 32], sizes = [8, 16], strides = [1, 1]} : vector<8x128xf32> to vector<8x16xf32>
    %66 = vector.extract_strided_slice %22 {offsets = [0, 48], sizes = [8, 16], strides = [1, 1]} : vector<8x128xf32> to vector<8x16xf32>
    %67 = vector.extract_strided_slice %22 {offsets = [0, 64], sizes = [8, 16], strides = [1, 1]} : vector<8x128xf32> to vector<8x16xf32>
    %68 = vector.extract_strided_slice %22 {offsets = [0, 80], sizes = [8, 16], strides = [1, 1]} : vector<8x128xf32> to vector<8x16xf32>
    %69 = vector.extract_strided_slice %22 {offsets = [0, 96], sizes = [8, 16], strides = [1, 1]} : vector<8x128xf32> to vector<8x16xf32>
    %70 = vector.extract_strided_slice %22 {offsets = [0, 112], sizes = [8, 16], strides = [1, 1]} : vector<8x128xf32> to vector<8x16xf32>
    %71 = vector.shape_cast %63 : vector<8x16xf32> to vector<1x8x16xf32>
    %72 = vector.shape_cast %64 : vector<8x16xf32> to vector<1x8x16xf32>
    %73 = vector.shape_cast %65 : vector<8x16xf32> to vector<1x8x16xf32>
    %74 = vector.shape_cast %66 : vector<8x16xf32> to vector<1x8x16xf32>
    %75 = vector.shape_cast %67 : vector<8x16xf32> to vector<1x8x16xf32>
    %76 = vector.shape_cast %68 : vector<8x16xf32> to vector<1x8x16xf32>
    %77 = vector.shape_cast %69 : vector<8x16xf32> to vector<1x8x16xf32>
    %78 = vector.shape_cast %70 : vector<8x16xf32> to vector<1x8x16xf32>
    %79 = tpu.concatenate %71, %72, %73, %74, %75, %76, %77, %78 in 0 : vector<1x8x16xf32>, vector<1x8x16xf32>, vector<1x8x16xf32>, vector<1x8x16xf32>, vector<1x8x16xf32>, vector<1x8x16xf32>, vector<1x8x16xf32>, vector<1x8x16xf32> -> vector<8x8x16xf32>
    %80 = arith.truncf %79 : vector<8x8x16xf32> to vector<8x8x16xbf16>
    "tpu.trace_start"() <{level = 10 : i32, message = "hqd,hkd->hqk"}> : () -> ()
    %cst_29 = arith.constant dense<0.000000e+00> : vector<8x8x8xf32>
    %81 = tpu.matmul %44, %62, %cst_29 {dimension_numbers = #tpu.dot_dimension_numbers<[2], [2], [1], [1], [0, 0, 0, 1, 1, 1], [0], [0]>} : vector<8x8x16xbf16>, vector<8x8x16xbf16>, vector<8x8x8xf32> -> vector<8x8x8xf32>
    "tpu.trace_stop"() : () -> ()
    %cst_30 = arith.constant 2.500000e-01 : f32
    %82 = vector.broadcast %cst_30 : f32 to vector<8x8x8xf32>
    %83 = arith.mulf %81, %82 : vector<8x8x8xf32>
    %84 = vector.shape_cast %9 : vector<8x8xf32> to vector<1x8x8xf32>
    %85 = vector.broadcast %84 : vector<1x8x8xf32> to vector<8x8x8xf32>
    %86 = arith.addf %83, %85 : vector<8x8x8xf32>
    %cst_31 = arith.constant dense<0xFF800000> : vector<8x8xf32>
    %87 = vector.multi_reduction <maximumf>, %86, %cst_31 [2] : vector<8x8x8xf32> to vector<8x8xf32>
    %88 = vector.shape_cast %87 : vector<8x8xf32> to vector<8x8x1xf32>
    %89 = vector.broadcast %88 : vector<8x8x1xf32> to vector<8x8x8xf32>
    %90 = arith.subf %86, %89 : vector<8x8x8xf32>
    %91 = math.exp %90 : vector<8x8x8xf32>
    %cst_32 = arith.constant dense<0.000000e+00> : vector<8x8xf32>
    %92 = vector.multi_reduction <add>, %91, %cst_32 [2] : vector<8x8x8xf32> to vector<8x8xf32>
    %93 = vector.shape_cast %92 : vector<8x8xf32> to vector<8x8x1xf32>
    %94 = vector.broadcast %93 : vector<8x8x1xf32> to vector<8x8x8xf32>
    %95 = arith.divf %91, %94 : vector<8x8x8xf32>
    %96 = vector.shape_cast %95 : vector<8x8x8xf32> to vector<8x1x8x8xf32>
    %c0_33 = arith.constant 0 : index
    %c0_34 = arith.constant 0 : index
    %c0_35 = arith.constant 0 : index
    %c0_36 = arith.constant 0 : index
    %97 = vector.load %arg27[%c0_33, %c0_34, %c0_35, %c0_36] : memref<8x1x8x8xf32, #tpu.memory_space<vmem>>, vector<8x1x8x8xf32>
    tpu.vector_store %arg27[%c0_33, %c0_34, %c0_35, %c0_36], %96 {strides = array<i32>} : memref<8x1x8x8xf32, #tpu.memory_space<vmem>>, vector<8x1x8x8xf32>,
    %98 = arith.truncf %95 : vector<8x8x8xf32> to vector<8x8x8xbf16>
    "tpu.trace_start"() <{level = 10 : i32, message = "hqk,hkd->hqd"}> : () -> ()
    %cst_37 = arith.constant dense<0.000000e+00> : vector<8x8x16xf32>
    %99 = tpu.matmul %98, %80, %cst_37 {dimension_numbers = #tpu.dot_dimension_numbers<[2], [1], [1], [2], [0, 0, 0, 1, 1, 2], [0], [0]>} : vector<8x8x8xbf16>, vector<8x8x16xbf16>, vector<8x8x16xf32> -> vector<8x8x16xf32>
    "tpu.trace_stop"() : () -> ()
    %100 = arith.truncf %99 : vector<8x8x16xf32> to vector<8x8x16xbf16>
    "tpu.trace_start"() <{level = 10 : i32, message = "hqd,hdo->hqo"}> : () -> ()
    %cst_38 = arith.constant dense<0.000000e+00> : vector<8x8x128xf32>
    %101 = tpu.matmul %100, %23, %cst_38 {dimension_numbers = #tpu.dot_dimension_numbers<[2], [1], [1], [2], [0, 0, 0, 1, 1, 2], [0], [0]>} : vector<8x8x16xbf16>, vector<8x16x128xbf16>, vector<8x8x128xf32> -> vector<8x8x128xf32>
    "tpu.trace_stop"() : () -> ()
    %cst_39 = arith.constant dense<0.000000e+00> : vector<8x128xf32>
    %102 = vector.multi_reduction <add>, %101, %cst_39 [0] : vector<8x8x128xf32> to vector<8x128xf32>
    %103 = vector.broadcast %24 : vector<1x128xf32> to vector<8x128xf32>
    %104 = arith.addf %102, %103 : vector<8x128xf32>
    %105 = arith.addf %1, %104 : vector<8x128xf32>
    %cst_40 = arith.constant dense<0.000000e+00> : vector<8xf32>
    %106 = vector.multi_reduction <add>, %105, %cst_40 [1] : vector<8x128xf32> to vector<8xf32>
    %107 = vector.shape_cast %106 : vector<8xf32> to vector<8x1xf32>
    %cst_41 = arith.constant 1.280000e+02 : f32
    %108 = vector.broadcast %cst_41 : f32 to vector<8x1xf32>
    %109 = arith.divf %107, %108 : vector<8x1xf32>
    %110 = arith.mulf %105, %105 : vector<8x128xf32>
    %cst_42 = arith.constant dense<0.000000e+00> : vector<8xf32>
    %111 = vector.multi_reduction <add>, %110, %cst_42 [1] : vector<8x128xf32> to vector<8xf32>
    %112 = vector.shape_cast %111 : vector<8xf32> to vector<8x1xf32>
    %cst_43 = arith.constant 1.280000e+02 : f32
    %113 = vector.broadcast %cst_43 : f32 to vector<8x1xf32>
    %114 = arith.divf %112, %113 : vector<8x1xf32>
    %115 = arith.mulf %109, %109 : vector<8x1xf32>
    %116 = arith.subf %114, %115 : vector<8x1xf32>
    %cst_44 = arith.constant 0.000000e+00 : f32
    %117 = vector.broadcast %cst_44 : f32 to vector<8x1xf32>
    %118 = arith.maximumf %116, %117 : vector<8x1xf32>
    %119 = vector.broadcast %109 : vector<8x1xf32> to vector<8x128xf32>
    %120 = arith.subf %105, %119 : vector<8x128xf32>
    %cst_45 = arith.constant 9.99999974E-6 : f32
    %121 = vector.broadcast %cst_45 : f32 to vector<8x1xf32>
    %122 = arith.addf %118, %121 : vector<8x1xf32>
    %123 = math.rsqrt %122 : vector<8x1xf32>
    %124 = vector.broadcast %123 : vector<8x1xf32> to vector<8x128xf32>
    %125 = arith.mulf %120, %124 : vector<8x128xf32>
    %126 = vector.broadcast %25 : vector<1x128xf32> to vector<8x128xf32>
    %127 = arith.mulf %125, %126 : vector<8x128xf32>
    %128 = vector.broadcast %26 : vector<1x128xf32> to vector<8x128xf32>
    %129 = arith.addf %127, %128 : vector<8x128xf32>
    %130 = vector.broadcast %5 : vector<8x1xf32> to vector<8x128xf32>
    %131 = arith.mulf %129, %130 : vector<8x128xf32>
    %132 = arith.truncf %131 : vector<8x128xf32> to vector<8x128xbf16>
    %c0_46 = arith.constant 0 : index
    %c0_47 = arith.constant 0 : index
    %133 = vector.load %arg12[%c0_46, %c0_47] : memref<128x128xbf16, #tpu.memory_space<vmem>>, vector<128x128xbf16>
    %cst_48 = arith.constant dense<0.000000e+00> : vector<8x128xf32>
    %134 = tpu.matmul %132, %133, %cst_48 {dimension_numbers = #tpu.dot_dimension_numbers<[1], [0], [0], [1], [0, 0, 1, 1], [], []>} : vector<8x128xbf16>, vector<128x128xbf16>, vector<8x128xf32> -> vector<8x128xf32>
    %c0_49 = arith.constant 0 : index
    %c0_50 = arith.constant 0 : index
    %135 = vector.load %arg13[%c0_49, %c0_50] : memref<1x128xf32, #tpu.memory_space<vmem>>, vector<1x128xf32>
    %136 = vector.broadcast %135 : vector<1x128xf32> to vector<8x128xf32>
    %137 = arith.addf %134, %136 : vector<8x128xf32>
    %138 = arith.truncf %3 : vector<8x128xf32> to vector<8x128xbf16>
    %c0_51 = arith.constant 0 : index
    %c0_52 = arith.constant 0 : index
    %139 = vector.load %arg14[%c0_51, %c0_52] : memref<128x256xbf16, #tpu.memory_space<vmem>>, vector<128x256xbf16>
    %cst_53 = arith.constant dense<0.000000e+00> : vector<8x256xf32>
    %140 = tpu.matmul %138, %139, %cst_53 {dimension_numbers = #tpu.dot_dimension_numbers<[1], [0], [0], [1], [0, 0, 1, 1], [], []>} : vector<8x128xbf16>, vector<128x256xbf16>, vector<8x256xf32> -> vector<8x256xf32>
    %c0_54 = arith.constant 0 : index
    %c0_55 = arith.constant 0 : index
    %141 = vector.load %arg15[%c0_54, %c0_55] : memref<1x256xf32, #tpu.memory_space<vmem>>, vector<1x256xf32>
    %142 = vector.broadcast %141 : vector<1x256xf32> to vector<8x256xf32>
    %143 = arith.addf %140, %142 : vector<8x256xf32>
    %144 = vector.extract_strided_slice %143 {offsets = [0, 0], sizes = [8, 128], strides = [1, 1]} : vector<8x256xf32> to vector<8x128xf32>
    %145 = vector.extract_strided_slice %143 {offsets = [0, 128], sizes = [8, 128], strides = [1, 1]} : vector<8x256xf32> to vector<8x128xf32>
    %c0_56 = arith.constant 0 : index
    %c0_57 = arith.constant 0 : index
    %c0_58 = arith.constant 0 : index
    %146 = vector.load %arg16[%c0_56, %c0_57, %c0_58] : memref<8x16x128xbf16, #tpu.memory_space<vmem>>, vector<8x16x128xbf16>
    %c0_59 = arith.constant 0 : index
    %c0_60 = arith.constant 0 : index
    %147 = vector.load %arg17[%c0_59, %c0_60] : memref<1x128xf32, #tpu.memory_space<vmem>>, vector<1x128xf32>
    %c0_61 = arith.constant 0 : index
    %c0_62 = arith.constant 0 : index
    %148 = vector.load %arg18[%c0_61, %c0_62] : memref<1x128xf32, #tpu.memory_space<vmem>>, vector<1x128xf32>
    %c0_63 = arith.constant 0 : index
    %c0_64 = arith.constant 0 : index
    %149 = vector.load %arg19[%c0_63, %c0_64] : memref<1x128xf32, #tpu.memory_space<vmem>>, vector<1x128xf32>
    %150 = vector.extract_strided_slice %137 {offsets = [0, 0], sizes = [8, 16], strides = [1, 1]} : vector<8x128xf32> to vector<8x16xf32>
    %151 = vector.extract_strided_slice %137 {offsets = [0, 16], sizes = [8, 16], strides = [1, 1]} : vector<8x128xf32> to vector<8x16xf32>
    %152 = vector.extract_strided_slice %137 {offsets = [0, 32], sizes = [8, 16], strides = [1, 1]} : vector<8x128xf32> to vector<8x16xf32>
    %153 = vector.extract_strided_slice %137 {offsets = [0, 48], sizes = [8, 16], strides = [1, 1]} : vector<8x128xf32> to vector<8x16xf32>
    %154 = vector.extract_strided_slice %137 {offsets = [0, 64], sizes = [8, 16], strides = [1, 1]} : vector<8x128xf32> to vector<8x16xf32>
    %155 = vector.extract_strided_slice %137 {offsets = [0, 80], sizes = [8, 16], strides = [1, 1]} : vector<8x128xf32> to vector<8x16xf32>
    %156 = vector.extract_strided_slice %137 {offsets = [0, 96], sizes = [8, 16], strides = [1, 1]} : vector<8x128xf32> to vector<8x16xf32>
    %157 = vector.extract_strided_slice %137 {offsets = [0, 112], sizes = [8, 16], strides = [1, 1]} : vector<8x128xf32> to vector<8x16xf32>
    %158 = vector.shape_cast %150 : vector<8x16xf32> to vector<1x8x16xf32>
    %159 = vector.shape_cast %151 : vector<8x16xf32> to vector<1x8x16xf32>
    %160 = vector.shape_cast %152 : vector<8x16xf32> to vector<1x8x16xf32>
    %161 = vector.shape_cast %153 : vector<8x16xf32> to vector<1x8x16xf32>
    %162 = vector.shape_cast %154 : vector<8x16xf32> to vector<1x8x16xf32>
    %163 = vector.shape_cast %155 : vector<8x16xf32> to vector<1x8x16xf32>
    %164 = vector.shape_cast %156 : vector<8x16xf32> to vector<1x8x16xf32>
    %165 = vector.shape_cast %157 : vector<8x16xf32> to vector<1x8x16xf32>
    %166 = tpu.concatenate %158, %159, %160, %161, %162, %163, %164, %165 in 0 : vector<1x8x16xf32>, vector<1x8x16xf32>, vector<1x8x16xf32>, vector<1x8x16xf32>, vector<1x8x16xf32>, vector<1x8x16xf32>, vector<1x8x16xf32>, vector<1x8x16xf32> -> vector<8x8x16xf32>
    %167 = arith.truncf %166 : vector<8x8x16xf32> to vector<8x8x16xbf16>
    %168 = vector.extract_strided_slice %144 {offsets = [0, 0], sizes = [8, 16], strides = [1, 1]} : vector<8x128xf32> to vector<8x16xf32>
    %169 = vector.extract_strided_slice %144 {offsets = [0, 16], sizes = [8, 16], strides = [1, 1]} : vector<8x128xf32> to vector<8x16xf32>
    %170 = vector.extract_strided_slice %144 {offsets = [0, 32], sizes = [8, 16], strides = [1, 1]} : vector<8x128xf32> to vector<8x16xf32>
    %171 = vector.extract_strided_slice %144 {offsets = [0, 48], sizes = [8, 16], strides = [1, 1]} : vector<8x128xf32> to vector<8x16xf32>
    %172 = vector.extract_strided_slice %144 {offsets = [0, 64], sizes = [8, 16], strides = [1, 1]} : vector<8x128xf32> to vector<8x16xf32>
    %173 = vector.extract_strided_slice %144 {offsets = [0, 80], sizes = [8, 16], strides = [1, 1]} : vector<8x128xf32> to vector<8x16xf32>
    %174 = vector.extract_strided_slice %144 {offsets = [0, 96], sizes = [8, 16], strides = [1, 1]} : vector<8x128xf32> to vector<8x16xf32>
    %175 = vector.extract_strided_slice %144 {offsets = [0, 112], sizes = [8, 16], strides = [1, 1]} : vector<8x128xf32> to vector<8x16xf32>
    %176 = vector.shape_cast %168 : vector<8x16xf32> to vector<1x8x16xf32>
    %177 = vector.shape_cast %169 : vector<8x16xf32> to vector<1x8x16xf32>
    %178 = vector.shape_cast %170 : vector<8x16xf32> to vector<1x8x16xf32>
    %179 = vector.shape_cast %171 : vector<8x16xf32> to vector<1x8x16xf32>
    %180 = vector.shape_cast %172 : vector<8x16xf32> to vector<1x8x16xf32>
    %181 = vector.shape_cast %173 : vector<8x16xf32> to vector<1x8x16xf32>
    %182 = vector.shape_cast %174 : vector<8x16xf32> to vector<1x8x16xf32>
    %183 = vector.shape_cast %175 : vector<8x16xf32> to vector<1x8x16xf32>
    %184 = tpu.concatenate %176, %177, %178, %179, %180, %181, %182, %183 in 0 : vector<1x8x16xf32>, vector<1x8x16xf32>, vector<1x8x16xf32>, vector<1x8x16xf32>, vector<1x8x16xf32>, vector<1x8x16xf32>, vector<1x8x16xf32>, vector<1x8x16xf32> -> vector<8x8x16xf32>
    %185 = arith.truncf %184 : vector<8x8x16xf32> to vector<8x8x16xbf16>
    %186 = vector.extract_strided_slice %145 {offsets = [0, 0], sizes = [8, 16], strides = [1, 1]} : vector<8x128xf32> to vector<8x16xf32>
    %187 = vector.extract_strided_slice %145 {offsets = [0, 16], sizes = [8, 16], strides = [1, 1]} : vector<8x128xf32> to vector<8x16xf32>
    %188 = vector.extract_strided_slice %145 {offsets = [0, 32], sizes = [8, 16], strides = [1, 1]} : vector<8x128xf32> to vector<8x16xf32>
    %189 = vector.extract_strided_slice %145 {offsets = [0, 48], sizes = [8, 16], strides = [1, 1]} : vector<8x128xf32> to vector<8x16xf32>
    %190 = vector.extract_strided_slice %145 {offsets = [0, 64], sizes = [8, 16], strides = [1, 1]} : vector<8x128xf32> to vector<8x16xf32>
    %191 = vector.extract_strided_slice %145 {offsets = [0, 80], sizes = [8, 16], strides = [1, 1]} : vector<8x128xf32> to vector<8x16xf32>
    %192 = vector.extract_strided_slice %145 {offsets = [0, 96], sizes = [8, 16], strides = [1, 1]} : vector<8x128xf32> to vector<8x16xf32>
    %193 = vector.extract_strided_slice %145 {offsets = [0, 112], sizes = [8, 16], strides = [1, 1]} : vector<8x128xf32> to vector<8x16xf32>
    %194 = vector.shape_cast %186 : vector<8x16xf32> to vector<1x8x16xf32>
    %195 = vector.shape_cast %187 : vector<8x16xf32> to vector<1x8x16xf32>
    %196 = vector.shape_cast %188 : vector<8x16xf32> to vector<1x8x16xf32>
    %197 = vector.shape_cast %189 : vector<8x16xf32> to vector<1x8x16xf32>
    %198 = vector.shape_cast %190 : vector<8x16xf32> to vector<1x8x16xf32>
    %199 = vector.shape_cast %191 : vector<8x16xf32> to vector<1x8x16xf32>
    %200 = vector.shape_cast %192 : vector<8x16xf32> to vector<1x8x16xf32>
    %201 = vector.shape_cast %193 : vector<8x16xf32> to vector<1x8x16xf32>
    %202 = tpu.concatenate %194, %195, %196, %197, %198, %199, %200, %201 in 0 : vector<1x8x16xf32>, vector<1x8x16xf32>, vector<1x8x16xf32>, vector<1x8x16xf32>, vector<1x8x16xf32>, vector<1x8x16xf32>, vector<1x8x16xf32>, vector<1x8x16xf32> -> vector<8x8x16xf32>
    %203 = arith.truncf %202 : vector<8x8x16xf32> to vector<8x8x16xbf16>
    "tpu.trace_start"() <{level = 10 : i32, message = "hqd,hkd->hqk"}> : () -> ()
    %cst_65 = arith.constant dense<0.000000e+00> : vector<8x8x8xf32>
    %204 = tpu.matmul %167, %185, %cst_65 {dimension_numbers = #tpu.dot_dimension_numbers<[2], [2], [1], [1], [0, 0, 0, 1, 1, 1], [0], [0]>} : vector<8x8x16xbf16>, vector<8x8x16xbf16>, vector<8x8x8xf32> -> vector<8x8x8xf32>
    "tpu.trace_stop"() : () -> ()
    %cst_66 = arith.constant 2.500000e-01 : f32
    %205 = vector.broadcast %cst_66 : f32 to vector<8x8x8xf32>
    %206 = arith.mulf %204, %205 : vector<8x8x8xf32>
    %207 = vector.shape_cast %13 : vector<8x8xf32> to vector<1x8x8xf32>
    %208 = vector.broadcast %207 : vector<1x8x8xf32> to vector<8x8x8xf32>
    %209 = arith.addf %206, %208 : vector<8x8x8xf32>
    %cst_67 = arith.constant dense<0xFF800000> : vector<8x8xf32>
    %210 = vector.multi_reduction <maximumf>, %209, %cst_67 [2] : vector<8x8x8xf32> to vector<8x8xf32>
    %211 = vector.shape_cast %210 : vector<8x8xf32> to vector<8x8x1xf32>
    %212 = vector.broadcast %211 : vector<8x8x1xf32> to vector<8x8x8xf32>
    %213 = arith.subf %209, %212 : vector<8x8x8xf32>
    %214 = math.exp %213 : vector<8x8x8xf32>
    %cst_68 = arith.constant dense<0.000000e+00> : vector<8x8xf32>
    %215 = vector.multi_reduction <add>, %214, %cst_68 [2] : vector<8x8x8xf32> to vector<8x8xf32>
    %216 = vector.shape_cast %215 : vector<8x8xf32> to vector<8x8x1xf32>
    %217 = vector.broadcast %216 : vector<8x8x1xf32> to vector<8x8x8xf32>
    %218 = arith.divf %214, %217 : vector<8x8x8xf32>
    %219 = vector.shape_cast %218 : vector<8x8x8xf32> to vector<8x1x8x8xf32>
    %c0_69 = arith.constant 0 : index
    %c0_70 = arith.constant 0 : index
    %c0_71 = arith.constant 0 : index
    %c0_72 = arith.constant 0 : index
    %220 = vector.load %arg28[%c0_69, %c0_70, %c0_71, %c0_72] : memref<8x1x8x8xf32, #tpu.memory_space<vmem>>, vector<8x1x8x8xf32>
    tpu.vector_store %arg28[%c0_69, %c0_70, %c0_71, %c0_72], %219 {strides = array<i32>} : memref<8x1x8x8xf32, #tpu.memory_space<vmem>>, vector<8x1x8x8xf32>,
    %221 = arith.truncf %218 : vector<8x8x8xf32> to vector<8x8x8xbf16>
    "tpu.trace_start"() <{level = 10 : i32, message = "hqk,hkd->hqd"}> : () -> ()
    %cst_73 = arith.constant dense<0.000000e+00> : vector<8x8x16xf32>
    %222 = tpu.matmul %221, %203, %cst_73 {dimension_numbers = #tpu.dot_dimension_numbers<[2], [1], [1], [2], [0, 0, 0, 1, 1, 2], [0], [0]>} : vector<8x8x8xbf16>, vector<8x8x16xbf16>, vector<8x8x16xf32> -> vector<8x8x16xf32>
    "tpu.trace_stop"() : () -> ()
    %223 = arith.truncf %222 : vector<8x8x16xf32> to vector<8x8x16xbf16>
    "tpu.trace_start"() <{level = 10 : i32, message = "hqd,hdo->hqo"}> : () -> ()
    %cst_74 = arith.constant dense<0.000000e+00> : vector<8x8x128xf32>
    %224 = tpu.matmul %223, %146, %cst_74 {dimension_numbers = #tpu.dot_dimension_numbers<[2], [1], [1], [2], [0, 0, 0, 1, 1, 2], [0], [0]>} : vector<8x8x16xbf16>, vector<8x16x128xbf16>, vector<8x8x128xf32> -> vector<8x8x128xf32>
    "tpu.trace_stop"() : () -> ()
    %cst_75 = arith.constant dense<0.000000e+00> : vector<8x128xf32>
    %225 = vector.multi_reduction <add>, %224, %cst_75 [0] : vector<8x8x128xf32> to vector<8x128xf32>
    %226 = vector.broadcast %147 : vector<1x128xf32> to vector<8x128xf32>
    %227 = arith.addf %225, %226 : vector<8x128xf32>
    %228 = arith.addf %131, %227 : vector<8x128xf32>
    %cst_76 = arith.constant dense<0.000000e+00> : vector<8xf32>
    %229 = vector.multi_reduction <add>, %228, %cst_76 [1] : vector<8x128xf32> to vector<8xf32>
    %230 = vector.shape_cast %229 : vector<8xf32> to vector<8x1xf32>
    %cst_77 = arith.constant 1.280000e+02 : f32
    %231 = vector.broadcast %cst_77 : f32 to vector<8x1xf32>
    %232 = arith.divf %230, %231 : vector<8x1xf32>
    %233 = arith.mulf %228, %228 : vector<8x128xf32>
    %cst_78 = arith.constant dense<0.000000e+00> : vector<8xf32>
    %234 = vector.multi_reduction <add>, %233, %cst_78 [1] : vector<8x128xf32> to vector<8xf32>
    %235 = vector.shape_cast %234 : vector<8xf32> to vector<8x1xf32>
    %cst_79 = arith.constant 1.280000e+02 : f32
    %236 = vector.broadcast %cst_79 : f32 to vector<8x1xf32>
    %237 = arith.divf %235, %236 : vector<8x1xf32>
    %238 = arith.mulf %232, %232 : vector<8x1xf32>
    %239 = arith.subf %237, %238 : vector<8x1xf32>
    %cst_80 = arith.constant 0.000000e+00 : f32
    %240 = vector.broadcast %cst_80 : f32 to vector<8x1xf32>
    %241 = arith.maximumf %239, %240 : vector<8x1xf32>
    %242 = vector.broadcast %232 : vector<8x1xf32> to vector<8x128xf32>
    %243 = arith.subf %228, %242 : vector<8x128xf32>
    %cst_81 = arith.constant 9.99999974E-6 : f32
    %244 = vector.broadcast %cst_81 : f32 to vector<8x1xf32>
    %245 = arith.addf %241, %244 : vector<8x1xf32>
    %246 = math.rsqrt %245 : vector<8x1xf32>
    %247 = vector.broadcast %246 : vector<8x1xf32> to vector<8x128xf32>
    %248 = arith.mulf %243, %247 : vector<8x128xf32>
    %249 = vector.broadcast %148 : vector<1x128xf32> to vector<8x128xf32>
    %250 = arith.mulf %248, %249 : vector<8x128xf32>
    %251 = vector.broadcast %149 : vector<1x128xf32> to vector<8x128xf32>
    %252 = arith.addf %250, %251 : vector<8x128xf32>
    %253 = vector.broadcast %5 : vector<8x1xf32> to vector<8x128xf32>
    %254 = arith.mulf %252, %253 : vector<8x128xf32>
    %255 = arith.truncf %254 : vector<8x128xf32> to vector<8x128xbf16>
    %c0_82 = arith.constant 0 : index
    %c0_83 = arith.constant 0 : index
    %256 = vector.load %arg20[%c0_82, %c0_83] : memref<128x256xbf16, #tpu.memory_space<vmem>>, vector<128x256xbf16>
    %cst_84 = arith.constant dense<0.000000e+00> : vector<8x256xf32>
    %257 = tpu.matmul %255, %256, %cst_84 {dimension_numbers = #tpu.dot_dimension_numbers<[1], [0], [0], [1], [0, 0, 1, 1], [], []>} : vector<8x128xbf16>, vector<128x256xbf16>, vector<8x256xf32> -> vector<8x256xf32>
    %c0_85 = arith.constant 0 : index
    %c0_86 = arith.constant 0 : index
    %258 = vector.load %arg21[%c0_85, %c0_86] : memref<1x256xf32, #tpu.memory_space<vmem>>, vector<1x256xf32>
    %259 = vector.broadcast %258 : vector<1x256xf32> to vector<8x256xf32>
    %260 = arith.addf %257, %259 : vector<8x256xf32>
    %cst_87 = arith.constant 0.000000e+00 : f32
    %261 = vector.broadcast %cst_87 : f32 to vector<8x256xf32>
    %262 = arith.maximumf %260, %261 : vector<8x256xf32>
    %263 = arith.truncf %262 : vector<8x256xf32> to vector<8x256xbf16>
    %c0_88 = arith.constant 0 : index
    %c0_89 = arith.constant 0 : index
    %264 = vector.load %arg22[%c0_88, %c0_89] : memref<256x128xbf16, #tpu.memory_space<vmem>>, vector<256x128xbf16>
    %cst_90 = arith.constant dense<0.000000e+00> : vector<8x128xf32>
    %265 = tpu.matmul %263, %264, %cst_90 {dimension_numbers = #tpu.dot_dimension_numbers<[1], [0], [0], [1], [0, 0, 1, 1], [], []>} : vector<8x256xbf16>, vector<256x128xbf16>, vector<8x128xf32> -> vector<8x128xf32>
    %c0_91 = arith.constant 0 : index
    %c0_92 = arith.constant 0 : index
    %266 = vector.load %arg23[%c0_91, %c0_92] : memref<1x128xf32, #tpu.memory_space<vmem>>, vector<1x128xf32>
    %267 = vector.broadcast %266 : vector<1x128xf32> to vector<8x128xf32>
    %268 = arith.addf %265, %267 : vector<8x128xf32>
    %269 = arith.addf %254, %268 : vector<8x128xf32>
    %c0_93 = arith.constant 0 : index
    %c0_94 = arith.constant 0 : index
    %270 = vector.load %arg24[%c0_93, %c0_94] : memref<1x128xf32, #tpu.memory_space<vmem>>, vector<1x128xf32>
    %c0_95 = arith.constant 0 : index
    %c0_96 = arith.constant 0 : index
    %271 = vector.load %arg25[%c0_95, %c0_96] : memref<1x128xf32, #tpu.memory_space<vmem>>, vector<1x128xf32>
    %cst_97 = arith.constant dense<0.000000e+00> : vector<8xf32>
    %272 = vector.multi_reduction <add>, %269, %cst_97 [1] : vector<8x128xf32> to vector<8xf32>
    %273 = vector.shape_cast %272 : vector<8xf32> to vector<8x1xf32>
    %cst_98 = arith.constant 1.280000e+02 : f32
    %274 = vector.broadcast %cst_98 : f32 to vector<8x1xf32>
    %275 = arith.divf %273, %274 : vector<8x1xf32>
    %276 = arith.mulf %269, %269 : vector<8x128xf32>
    %cst_99 = arith.constant dense<0.000000e+00> : vector<8xf32>
    %277 = vector.multi_reduction <add>, %276, %cst_99 [1] : vector<8x128xf32> to vector<8xf32>
    %278 = vector.shape_cast %277 : vector<8xf32> to vector<8x1xf32>
    %cst_100 = arith.constant 1.280000e+02 : f32
    %279 = vector.broadcast %cst_100 : f32 to vector<8x1xf32>
    %280 = arith.divf %278, %279 : vector<8x1xf32>
    %281 = arith.mulf %275, %275 : vector<8x1xf32>
    %282 = arith.subf %280, %281 : vector<8x1xf32>
    %cst_101 = arith.constant 0.000000e+00 : f32
    %283 = vector.broadcast %cst_101 : f32 to vector<8x1xf32>
    %284 = arith.maximumf %282, %283 : vector<8x1xf32>
    %285 = vector.broadcast %275 : vector<8x1xf32> to vector<8x128xf32>
    %286 = arith.subf %269, %285 : vector<8x128xf32>
    %cst_102 = arith.constant 9.99999974E-6 : f32
    %287 = vector.broadcast %cst_102 : f32 to vector<8x1xf32>
    %288 = arith.addf %284, %287 : vector<8x1xf32>
    %289 = math.rsqrt %288 : vector<8x1xf32>
    %290 = vector.broadcast %289 : vector<8x1xf32> to vector<8x128xf32>
    %291 = arith.mulf %286, %290 : vector<8x128xf32>
    %292 = vector.broadcast %270 : vector<1x128xf32> to vector<8x128xf32>
    %293 = arith.mulf %291, %292 : vector<8x128xf32>
    %294 = vector.broadcast %271 : vector<1x128xf32> to vector<8x128xf32>
    %295 = arith.addf %293, %294 : vector<8x128xf32>
    %296 = vector.broadcast %5 : vector<8x1xf32> to vector<8x128xf32>
    %297 = arith.mulf %295, %296 : vector<8x128xf32>
    %c0_103 = arith.constant 0 : index
    %c0_104 = arith.constant 0 : index
    %c0_105 = arith.constant 0 : index
    %298 = vector.load %arg26[%c0_103, %c0_104, %c0_105] : memref<1x8x128xf32, #tpu.memory_space<vmem>>, vector<1x8x128xf32>
    %299 = vector.shape_cast %298 : vector<1x8x128xf32> to vector<8x128xf32>
    %300 = vector.shape_cast %297 : vector<8x128xf32> to vector<1x8x128xf32>
    tpu.vector_store %arg26[%c0_103, %c0_104, %c0_105], %300 {strides = array<i32>} : memref<1x8x128xf32, #tpu.memory_space<vmem>>, vector<1x8x128xf32>,
    return
  }
  func.func @transform_0(%arg0: i32) -> (i32, i32, i32) {
    %c0_i32 = arith.constant 0 : i32
    %c0_i32_0 = arith.constant 0 : i32
    %c0_i32_1 = arith.constant 0 : i32
    return %arg0, %c0_i32, %c0_i32_0 : i32, i32, i32
  }
  func.func @transform_1(%arg0: i32) -> (i32, i32, i32) {
    %c0_i32 = arith.constant 0 : i32
    %c0_i32_0 = arith.constant 0 : i32
    %c0_i32_1 = arith.constant 0 : i32
    return %arg0, %c0_i32, %c0_i32_0 : i32, i32, i32
  }
  func.func @transform_2(%arg0: i32) -> (i32, i32, i32) {
    %c0_i32 = arith.constant 0 : i32
    %c0_i32_0 = arith.constant 0 : i32
    %c0_i32_1 = arith.constant 0 : i32
    return %arg0, %c0_i32, %c0_i32_0 : i32, i32, i32
  }
  func.func @transform_3(%arg0: i32) -> (i32, i32, i32) {
    %c0_i32 = arith.constant 0 : i32
    %c0_i32_0 = arith.constant 0 : i32
    %c0_i32_1 = arith.constant 0 : i32
    return %arg0, %c0_i32, %c0_i32_0 : i32, i32, i32
  }
  func.func @transform_4(%arg0: i32) -> (i32, i32, i32) {
    %c0_i32 = arith.constant 0 : i32
    %c0_i32_0 = arith.constant 0 : i32
    %c0_i32_1 = arith.constant 0 : i32
    return %arg0, %c0_i32, %c0_i32_0 : i32, i32, i32
  }
  func.func @transform_5(%arg0: i32) -> (i32, i32) {
    %c0_i32 = arith.constant 0 : i32
    %c0_i32_0 = arith.constant 0 : i32
    %c0_i32_1 = arith.constant 0 : i32
    return %c0_i32, %c0_i32_0 : i32, i32
  }
  func.func @transform_6(%arg0: i32) -> (i32, i32) {
    %c0_i32 = arith.constant 0 : i32
    %c0_i32_0 = arith.constant 0 : i32
    %c0_i32_1 = arith.constant 0 : i32
    return %c0_i32, %c0_i32_0 : i32, i32
  }
  func.func @transform_7(%arg0: i32) -> (i32, i32, i32) {
    %c0_i32 = arith.constant 0 : i32
    %c0_i32_0 = arith.constant 0 : i32
    %c0_i32_1 = arith.constant 0 : i32
    %c0_i32_2 = arith.constant 0 : i32
    return %c0_i32, %c0_i32_0, %c0_i32_1 : i32, i32, i32
  }
  func.func @transform_8(%arg0: i32) -> (i32, i32) {
    %c0_i32 = arith.constant 0 : i32
    %c0_i32_0 = arith.constant 0 : i32
    %c0_i32_1 = arith.constant 0 : i32
    return %c0_i32, %c0_i32_0 : i32, i32
  }
  func.func @transform_9(%arg0: i32) -> (i32, i32) {
    %c0_i32 = arith.constant 0 : i32
    %c0_i32_0 = arith.constant 0 : i32
    %c0_i32_1 = arith.constant 0 : i32
    return %c0_i32, %c0_i32_0 : i32, i32
  }
  func.func @transform_10(%arg0: i32) -> (i32, i32) {
    %c0_i32 = arith.constant 0 : i32
    %c0_i32_0 = arith.constant 0 : i32
    %c0_i32_1 = arith.constant 0 : i32
    return %c0_i32, %c0_i32_0 : i32, i32
  }
  func.func @transform_11(%arg0: i32) -> (i32, i32) {
    %c0_i32 = arith.constant 0 : i32
    %c0_i32_0 = arith.constant 0 : i32
    %c0_i32_1 = arith.constant 0 : i32
    return %c0_i32, %c0_i32_0 : i32, i32
  }
  func.func @transform_12(%arg0: i32) -> (i32, i32) {
    %c0_i32 = arith.constant 0 : i32
    %c0_i32_0 = arith.constant 0 : i32
    %c0_i32_1 = arith.constant 0 : i32
    return %c0_i32, %c0_i32_0 : i32, i32
  }
  func.func @transform_13(%arg0: i32) -> (i32, i32) {
    %c0_i32 = arith.constant 0 : i32
    %c0_i32_0 = arith.constant 0 : i32
    %c0_i32_1 = arith.constant 0 : i32
    return %c0_i32, %c0_i32_0 : i32, i32
  }
  func.func @transform_14(%arg0: i32) -> (i32, i32) {
    %c0_i32 = arith.constant 0 : i32
    %c0_i32_0 = arith.constant 0 : i32
    %c0_i32_1 = arith.constant 0 : i32
    return %c0_i32, %c0_i32_0 : i32, i32
  }
  func.func @transform_15(%arg0: i32) -> (i32, i32, i32) {
    %c0_i32 = arith.constant 0 : i32
    %c0_i32_0 = arith.constant 0 : i32
    %c0_i32_1 = arith.constant 0 : i32
    %c0_i32_2 = arith.constant 0 : i32
    return %c0_i32, %c0_i32_0, %c0_i32_1 : i32, i32, i32
  }
  func.func @transform_16(%arg0: i32) -> (i32, i32) {
    %c0_i32 = arith.constant 0 : i32
    %c0_i32_0 = arith.constant 0 : i32
    %c0_i32_1 = arith.constant 0 : i32
    return %c0_i32, %c0_i32_0 : i32, i32
  }
  func.func @transform_17(%arg0: i32) -> (i32, i32) {
    %c0_i32 = arith.constant 0 : i32
    %c0_i32_0 = arith.constant 0 : i32
    %c0_i32_1 = arith.constant 0 : i32
    return %c0_i32, %c0_i32_0 : i32, i32
  }
  func.func @transform_18(%arg0: i32) -> (i32, i32) {
    %c0_i32 = arith.constant 0 : i32
    %c0_i32_0 = arith.constant 0 : i32
    %c0_i32_1 = arith.constant 0 : i32
    return %c0_i32, %c0_i32_0 : i32, i32
  }
  func.func @transform_19(%arg0: i32) -> (i32, i32) {
    %c0_i32 = arith.constant 0 : i32
    %c0_i32_0 = arith.constant 0 : i32
    %c0_i32_1 = arith.constant 0 : i32
    return %c0_i32, %c0_i32_0 : i32, i32
  }
  func.func @transform_20(%arg0: i32) -> (i32, i32) {
    %c0_i32 = arith.constant 0 : i32
    %c0_i32_0 = arith.constant 0 : i32
    %c0_i32_1 = arith.constant 0 : i32
    return %c0_i32, %c0_i32_0 : i32, i32
  }
  func.func @transform_21(%arg0: i32) -> (i32, i32) {
    %c0_i32 = arith.constant 0 : i32
    %c0_i32_0 = arith.constant 0 : i32
    %c0_i32_1 = arith.constant 0 : i32
    return %c0_i32, %c0_i32_0 : i32, i32
  }
  func.func @transform_22(%arg0: i32) -> (i32, i32) {
    %c0_i32 = arith.constant 0 : i32
    %c0_i32_0 = arith.constant 0 : i32
    %c0_i32_1 = arith.constant 0 : i32
    return %c0_i32, %c0_i32_0 : i32, i32
  }
  func.func @transform_23(%arg0: i32) -> (i32, i32) {
    %c0_i32 = arith.constant 0 : i32
    %c0_i32_0 = arith.constant 0 : i32
    %c0_i32_1 = arith.constant 0 : i32
    return %c0_i32, %c0_i32_0 : i32, i32
  }
  func.func @transform_24(%arg0: i32) -> (i32, i32) {
    %c0_i32 = arith.constant 0 : i32
    %c0_i32_0 = arith.constant 0 : i32
    %c0_i32_1 = arith.constant 0 : i32
    return %c0_i32, %c0_i32_0 : i32, i32
  }
  func.func @transform_25(%arg0: i32) -> (i32, i32, i32) {
    %c0_i32 = arith.constant 0 : i32
    %c0_i32_0 = arith.constant 0 : i32
    %c0_i32_1 = arith.constant 0 : i32
    return %arg0, %c0_i32, %c0_i32_0 : i32, i32, i32
  }
  func.func @transform_26(%arg0: i32) -> (i32, i32, i32, i32) {
    %c0_i32 = arith.constant 0 : i32
    %c0_i32_0 = arith.constant 0 : i32
    %c0_i32_1 = arith.constant 0 : i32
    %c0_i32_2 = arith.constant 0 : i32
    return %c0_i32, %arg0, %c0_i32_0, %c0_i32_1 : i32, i32, i32, i32
  }
  func.func @transform_27(%arg0: i32) -> (i32, i32, i32, i32) {
    %c0_i32 = arith.constant 0 : i32
    %c0_i32_0 = arith.constant 0 : i32
    %c0_i32_1 = arith.constant 0 : i32
    %c0_i32_2 = arith.constant 0 : i32
    return %c0_i32, %arg0, %c0_i32_0, %c0_i32_1 : i32, i32, i32, i32
  }
}

</mosaic_0001>

<bundles_post_ra>
// kernel: decoder_layer.1
= control target key start
LH: loop header
LB: loop body
LE: loop exit
PB: predicated region body
PF: predicated region fallthrough
CT: control target
= control target key end

     0   :  { %s8249_s0 = inlined_call_operand.vmem [shape: f32[2,8,128], index: 0, kind: input, shape index: {}]   ;;  %s8250_s1 = inlined_call_operand.hbm [shape: f32[2,8,128], index: 1, kind: input, shape index: {}]   ;;  %s8251_s2 = inlined_call_operand.vmem [shape: f32[2,8,1], index: 2, kind: input, shape index: {}]   ;;  %s8252_s3 = inlined_call_operand.vmem [shape: f32[2,8,8], index: 3, kind: input, shape index: {}]   ;;  %s8253_s4 = inlined_call_operand.vmem [shape: f32[2,8,8], index: 4, kind: input, shape index: {}]   ;;  %s8254_s5 = inlined_call_operand.hbm [shape: bf16[128,384], index: 5, kind: input, shape index: {}]   ;;  %s8255_s6 = inlined_call_operand.hbm [shape: f32[1,384], index: 6, kind: input, shape index: {}]   ;;  %s8256_s7 = inlined_call_operand.hbm [shape: bf16[8,16,128], index: 7, kind: input, shape index: {}]   ;;  %s8257_s8 = inlined_call_operand.hbm [shape: f32[1,128], index: 8, kind: input, shape index: {}]   ;;  %s8258_s9 = inlined_call_operand.vmem [shape: f32[1,128], index: 9, kind: input, shape index: {}]   ;;  %s8259_s10 = inlined_call_operand.hbm [shape: f32[1,128], index: 10, kind: input, shape index: {}]   ;;  %s8260_s11 = inlined_call_operand.hbm [shape: bf16[128,128], index: 11, kind: input, shape index: {}]   ;;  %s8261_s12 = inlined_call_operand.hbm [shape: f32[1,128], index: 12, kind: input, shape index: {}]   ;;  %s8262_s13 = inlined_call_operand.hbm [shape: bf16[128,256], index: 13, kind: input, shape index: {}]   ;;  %s8263_s14 = inlined_call_operand.hbm [shape: f32[1,256], index: 14, kind: input, shape index: {}]   ;;  %s8264_s15 = inlined_call_operand.hbm [shape: bf16[8,16,128], index: 15, kind: input, shape index: {}]   ;;  %s8265_s16 = inlined_call_operand.hbm [shape: f32[1,128], index: 16, kind: input, shape index: {}]   ;;  %s8266_s17 = inlined_call_operand.hbm [shape: f32[1,128], index: 17, kind: input, shape index: {}]   ;;  %s8267_s18 = inlined_call_operand.hbm [shape: f32[1,128], index: 18, kind: input, shape index: {}]   ;;  %s8268_s19 = inlined_call_operand.hbm [shape: bf16[128,256], index: 19, kind: input, shape index: {}]   ;;  %s8269_s20 = inlined_call_operand.hbm [shape: f32[1,256], index: 20, kind: input, shape index: {}]   ;;  %s8270_s21 = inlined_call_operand.hbm [shape: bf16[256,128], index: 21, kind: input, shape index: {}]   ;;  %s8271_s22 = inlined_call_operand.hbm [shape: f32[1,128], index: 22, kind: input, shape index: {}]   ;;  %s8272_s23 = inlined_call_operand.hbm [shape: f32[1,128], index: 23, kind: input, shape index: {}]   ;;  %s8273_s24 = inlined_call_operand.hbm [shape: f32[1,128], index: 24, kind: input, shape index: {}]   ;;  %s8274_s25 = inlined_call_operand.hbm [shape: f32[2,8,128], index: 25, kind: output, shape index: {0}]   ;;  %s8275_s26 = inlined_call_operand.vmem [shape: f32[8,2,8,8], index: 26, kind: output, shape index: {1}]   ;;  %s8276_s27 = inlined_call_operand.vmem [shape: f32[8,2,8,8], index: 27, kind: output, shape index: {2}]  }
   0x1   :  { %8298 = sst [smem:[#allocation51_spill]] %s8249_s0 }
   0x2   :  { %8299 = sst [smem:[#allocation52_spill]] %s8250_s1 }
   0x3   :  { %8300 = sst [smem:[#allocation53_spill]] %s8251_s2 }
   0x4   :  { %8301 = sst [smem:[#allocation54_spill]] %s8252_s3 }
   0x5   :  { %8302 = sst [smem:[#allocation55_spill]] %s8253_s4 }
   0x6   :  { %8303 = sst [smem:[#allocation56_spill]] %s8254_s5 }
   0x7   :  { %8304 = sst [smem:[#allocation57_spill]] %s8255_s6 }
   0x8   :  { %8305 = sst [smem:[#allocation58_spill]] %s8256_s7 }
   0x9   :  { %8306 = sst [smem:[#allocation59_spill]] %s8257_s8 }
   0xa   :  { %8307 = sst [smem:[#allocation60_spill]] %s8258_s9 }
   0xb   :  { %8308 = sst [smem:[#allocation61_spill]] %s8259_s10 }
   0xc   :  { %8309 = sst [smem:[#allocation62_spill]] %s8260_s11 }
   0xd   :  { %8310 = sst [smem:[#allocation63_spill]] %s8261_s12 }
   0xe   :  { %8311 = sst [smem:[#allocation64_spill]] %s8262_s13 }
   0xf   :  { %8312 = sst [smem:[#allocation65_spill]] %s8263_s14 }
  0x10   :  { %8313 = sst [smem:[#allocation66_spill]] %s8264_s15 }
  0x11   :  { %8314 = sst [smem:[#allocation67_spill]] %s8265_s16 }
  0x12   :  { %8315 = sst [smem:[#allocation68_spill]] %s8266_s17 }
  0x13   :  { %8316 = sst [smem:[#allocation69_spill]] %s8274_s25 }
  0x14   :  { %8317 = sst [smem:[#allocation70_spill]] %s8275_s26 }
  0x15   :  { %8318 = sst [smem:[#allocation71_spill]] %s8276_s27 }
  0x16   :  { %33 = vsyncpa [#allocation3], 0 }
  0x17   :  { %35 = vsyncpa [#allocation3 + $0x1], 0 }
  0x18   :  { %36 = vsyncpa [#allocation6], 0 }
  0x19   :  { %37 = vsyncpa [#allocation9], 0 }
  0x1a   :  { %38 = vsyncpa [#allocation12], 0 }
  0x1b   :  { %39 = vsyncpa [#allocation15], 0 }
  0x1c   :  { %40 = vsyncpa [#allocation18], 0 }
  0x1d   :  { %41 = vsyncpa [#allocation21], 0 }
  0x1e   :  { %42 = vsyncpa [#allocation24], 0 }
  0x1f   :  { %43 = vsyncpa [#allocation27], 0 }
  0x20   :  { %44 = vsyncpa [#allocation30], 0 }
  0x21   :  { %45 = vsyncpa [#allocation33], 0 }
  0x22   :  { %46 = vsyncpa [#allocation4], 0 }
  0x23   :  { %48 = vsyncpa [#allocation4 + $0x1], 0  ;;  %s7322_s7 = smov 0   ;;  %s7324_s4 = smov 0  }
  0x24   :  { %s7326_s8 = smov 0   ;;  %s7328_s30 = smov 0  }
  0x25 LB: > { %s7145_s9 = smov [#allocation5]   ;;  %s7343_s28 = sadd.s32 4294967295, %s7143_s30   ;;  %s7143_s30 = sphi %s7328_s30, %s8391_s30   ;;  %s7139_s8 = sphi %s7326_s8, %s8390_s8   ;;  %s7135_s4 = sphi %s7324_s4, %s8389_s4   ;;  %s7131_s7 = sphi %s7322_s7, %s8388_s7  }
  0x26   : > { %s699_s5 = sshll.u32 %s7145_s9, 4  ;;  %8319 = sst [smem:[#allocation49_spill]] %s7343_s28  ;;  %s700_s5 = int_to_ptr.vmem [resolvable:$true] %s699_s5 }
  0x27   : > { %p5395_p0 = scmp.ge.s32.totalorder %s7143_s30, 1  ;;  %p8285_p1 = scmp.eq.s32.totalorder %s7343_s28, 0 }
  0x28   : > { %p687_p2 = scmp.lt.s32.totalorder %s7143_s30, 3  ;;  %s7146_s10 = smov [#allocation8]  }
  0x29   : > { %s723_s29 = sshll.u32 %s7146_s10, 4  ;;  %s7147_s6 = smov [#allocation11]   ;;  %s7361_s29 = int_to_ptr.vmem [resolvable:$true] %s723_s29 }
  0x2a   : > { %p7348_p3 = pnand %p5395_p0, %p687_p2  ;;  %s7363_s11 = sshll.u32 %s7147_s6, 4  ;;  %s752_s11 = int_to_ptr.vmem [resolvable:$true] %s7363_s11 }
  0x2b   : > { %s6528_s3 = scalar_lea.vmem %s700_s5, 3072  ;;  %p6536_p11 = scmp.lt.s32.totalorder %s700_s5, %s700_s5 }
  0x2c   : > { %s8320_s0 = scalar_select %p7348_p3, 1, 0 }
  0x2d   : > { %p6152_p5 = pneg %p7348_p3  ;;  %p6529_p8 = scmp.ne.s32.totalorder %s700_s5, %s6528_s3 }
  0x2e   : > { %8321 = sst [smem:[#allocation50_spill]] %s8320_s0  ;;  %p6537_p12 = scmp.lt.s32.totalorder %s6528_s3, %s6528_s3 }
  0x2f   : > { %p7357_p6 = pnand %p6152_p5, %p8285_p1 }
  0x30   : > { %p6538_p13 = por %p6537_p12, %p6536_p11 }
  0x31   : > { %p7367_p7 = pneg %p7357_p6 }
  0x33   : > { %p6531_p9 = pnand %p6529_p8, %p7367_p7 }
  0x35   : > { %p6532_p10 = pneg %p6531_p9 }
  0x37   : > { %p6539_p0 = pnand %p6538_p13, %p6532_p10 }
  0x39   : > { %6542 = shalt.err (!%p6539_p0)
}
  0x3a   : > { %s7148_s9 = smov 192   ;;  %s7149_s10 = smov 12  }
  0x3b   : > { %s8324_s26 = sld [smem:[#allocation56_spill]]  ;;  %s6554_s25 = scalar_lea.vmem %s7361_s29, 1024 }
  0x3c   : > { %p6555_p2 = scmp.ne.s32.totalorder %s7361_s29, %s6554_s25  ;;  %p6562_p9 = scmp.lt.s32.totalorder %s7361_s29, %s7361_s29 }
  0x3d   : > { %p6563_p10 = scmp.lt.s32.totalorder %s6554_s25, %s6554_s25 }
  0x3e   : > { %p6557_p5 = pnand %p6555_p2, %p7367_p7 }
  0x3f   : > { %p6564_p11 = por %p6563_p10, %p6562_p9 }
  0x40   : > { %p6558_p8 = pneg %p6557_p5 }
  0x41   : > { %6155 = dma.hbm_to_vmem [thread:$0]  (!%p7357_p6), %s8324_s26, 3072, %s700_s5, [#allocation6], %s7148_s9, %s7148_s9, %s7149_s10  }
  0x42   : > { %p6565_p12 = pnand %p6564_p11, %p6558_p8 }
  0x44   : > { %6568 = shalt.err (!%p6565_p12)
}
  0x45   : > { %s8283_s3 = smov 64   ;;  %s8287_s0 = smov 4  }
  0x46   : > { %s8325_s5 = sld [smem:[#allocation58_spill]]  ;;  %s6580_s9 = scalar_lea.vmem %s752_s11, 16 }
  0x47   : > { %p6581_p13 = scmp.ne.s32.totalorder %s752_s11, %s6580_s9  ;;  %s6587_s25 = scalar_lea.vmem %s752_s11, 32 }
  0x48   : > { %p6588_p5 = scmp.lt.s32.totalorder %s752_s11, %s752_s11  ;;  %p6589_p8 = scmp.lt.s32.totalorder %s6587_s25, %s6580_s9 }
  0x49   : > { %p6583_p0 = pnand %p6581_p13, %p7367_p7 }
  0x4a   : > { %p6590_p9 = por %p6589_p8, %p6588_p5 }
  0x4b   : > { %p6584_p2 = pneg %p6583_p0 }
  0x4c   : > { %6161 = dma.hbm_to_vmem [thread:$0]  (!%p7357_p6), %s8325_s5, 1024, %s7361_s29, [#allocation9], %s8283_s3, %s8283_s3, %s8287_s0  }
  0x4d   : > { %p6591_p10 = pnand %p6590_p9, %p6584_p2 }
  0x4f   : > { %6594 = shalt.err (!%p6591_p10)
}
  0x50   : > { %s8326_s28 = sld [smem:[#allocation61_spill]]  ;;  %s7152_s29 = smov [#allocation14]  }
  0x51   : > { %s775_s26 = sshll.u32 %s7152_s29, 4  ;;  %s7153_s27 = smov [#allocation17]   ;;  %s776_s26 = int_to_ptr.vmem [resolvable:$true] %s775_s26 }
  0x52   : > { %s799_s5 = sshll.u32 %s7153_s27, 4  ;;  %s6606_s3 = scalar_lea.vmem %s776_s26, 16  ;;  %s800_s5 = int_to_ptr.vmem [resolvable:$true] %s799_s5 }
  0x53   : > { %p6607_p11 = scmp.ne.s32.totalorder %s776_s26, %s6606_s3  ;;  %s6613_s9 = scalar_lea.vmem %s776_s26, 32 }
  0x54   : > { %p6614_p0 = scmp.lt.s32.totalorder %s776_s26, %s776_s26  ;;  %p6615_p2 = scmp.lt.s32.totalorder %s6613_s9, %s6606_s3 }
  0x55   : > { %p6609_p12 = pnand %p6607_p11, %p7367_p7 }
  0x56   : > { %6167 = dma.hbm_to_vmem [thread:$0]  (!%p7357_p6), %s8326_s28, 16, %s752_s11, [#allocation12]  }
  0x57   : > { %p6610_p13 = pneg %p6609_p12  ;;  %p6616_p5 = por %p6615_p2, %p6614_p0 }
  0x59   : > { %p6617_p8 = pnand %p6616_p5, %p6610_p13 }
  0x5b   : > { %6620 = shalt.err (!%p6617_p8)
}
  0x5c   : > { %s8327_s12 = sld [smem:[#allocation63_spill]]  ;;  %s6632_s11 = scalar_lea.vmem %s800_s5, 32 }
  0x5d   : > { %p6633_p9 = scmp.ne.s32.totalorder %s800_s5, %s6632_s11  ;;  %p6640_p12 = scmp.lt.s32.totalorder %s800_s5, %s800_s5 }
  0x5e   : > { %p6641_p4 = scmp.lt.s32.totalorder %s6632_s11, %s6632_s11 }
  0x5f   : > { %p6635_p10 = pnand %p6633_p9, %p7367_p7 }
  0x60   : > { %p6642_p1 = por %p6641_p4, %p6640_p12 }
  0x61   : > { %p6636_p11 = pneg %p6635_p10 }
  0x62   : > { %6173 = dma.hbm_to_vmem [thread:$0]  (!%p7357_p6), %s8327_s12, 16, %s776_s26, [#allocation15]  }
  0x63   : > { %p6643_p3 = pnand %p6642_p1, %p6636_p11 }
  0x65   : > { %6646 = shalt.err (!%p6643_p3)
}
  0x66   : > { %s8328_s14 = sld [smem:[#allocation65_spill]]  ;;  %s7154_s6 = smov [#allocation20]  }
  0x67   : > { %s823_s29 = sshll.u32 %s7154_s6, 4  ;;  %s7155_s26 = smov [#allocation23]   ;;  %s824_s29 = int_to_ptr.vmem [resolvable:$true] %s823_s29 }
  0x68   : > { %s845_s27 = sshll.u32 %s7155_s26, 4  ;;  %s6658_s9 = scalar_lea.vmem %s824_s29, 16  ;;  %s846_s27 = int_to_ptr.vmem [resolvable:$true] %s845_s27 }
  0x69   : > { %p6659_p13 = scmp.ne.s32.totalorder %s824_s29, %s6658_s9  ;;  %s6665_s25 = scalar_lea.vmem %s824_s29, 32 }
  0x6a   : > { %p6666_p1 = scmp.lt.s32.totalorder %s824_s29, %s824_s29  ;;  %p6667_p3 = scmp.lt.s32.totalorder %s6665_s25, %s6658_s9 }
  0x6b   : > { %p6661_p0 = pnand %p6659_p13, %p7367_p7 }
  0x6c   : > { %6179 = dma.hbm_to_vmem [thread:$0]  (!%p7357_p6), %s8328_s14, 32, %s800_s5, [#allocation18]  }
  0x6d   : > { %p6662_p2 = pneg %p6661_p0  ;;  %p6668_p4 = por %p6667_p3, %p6666_p1 }
  0x6f   : > { %p6669_p5 = pnand %p6668_p4, %p6662_p2 }
  0x71   : > { %6672 = shalt.err (!%p6669_p5)
}
  0x72   : > { %s8329_s16 = sld [smem:[#allocation67_spill]]  ;;  %s6684_s11 = scalar_lea.vmem %s846_s27, 16 }
  0x73   : > { %p6685_p8 = scmp.ne.s32.totalorder %s846_s27, %s6684_s11  ;;  %s6691_s3 = scalar_lea.vmem %s846_s27, 32 }
  0x74   : > { %p6692_p11 = scmp.lt.s32.totalorder %s846_s27, %s846_s27  ;;  %p6693_p12 = scmp.lt.s32.totalorder %s6691_s3, %s6684_s11 }
  0x75   : > { %p6687_p9 = pnand %p6685_p8, %p7367_p7 }
  0x76   : > { %p6694_p13 = por %p6693_p12, %p6692_p11 }
  0x77   : > { %p6688_p10 = pneg %p6687_p9 }
  0x78   : > { %6185 = dma.hbm_to_vmem [thread:$0]  (!%p7357_p6), %s8329_s16, 16, %s824_s29, [#allocation21]  }
  0x79   : > { %p6695_p0 = pnand %p6694_p13, %p6688_p10 }
  0x7b   : > { %6698 = shalt.err (!%p6695_p0)
}
  0x7c   : > { %6191 = dma.hbm_to_vmem [thread:$0]  (!%p7357_p6), %s8267_s18, 16, %s846_s27, [#allocation24]  }
  0x7d   : > { %s7156_s29 = smov [#allocation26]   ;;  %s7157_s9 = smov [#allocation29]  }
  0x7e   : > { %s869_s26 = sshll.u32 %s7156_s29, 4  ;;  %s893_s25 = sshll.u32 %s7157_s9, 4  ;;  %s870_s26 = int_to_ptr.vmem [resolvable:$true] %s869_s26  ;;  %s894_s25 = int_to_ptr.vmem [resolvable:$true] %s893_s25 }
  0x7f   : > { %s6710_s28 = scalar_lea.vmem %s870_s26, 32  ;;  %p6718_p4 = scmp.lt.s32.totalorder %s870_s26, %s870_s26 }
  0x80   : > { %p6711_p2 = scmp.ne.s32.totalorder %s870_s26, %s6710_s28  ;;  %p6719_p5 = scmp.lt.s32.totalorder %s6710_s28, %s6710_s28 }
  0x82   : > { %p6713_p1 = pnand %p6711_p2, %p7367_p7  ;;  %p6720_p8 = por %p6719_p5, %p6718_p4 }
  0x84   : > { %p6714_p3 = pneg %p6713_p1 }
  0x86   : > { %p6721_p9 = pnand %p6720_p8, %p6714_p3 }
  0x88   : > { %6724 = shalt.err (!%p6721_p9)
}
  0x89   : > { %6197 = dma.hbm_to_vmem [thread:$0]  (!%p7357_p6), %s8269_s20, 32, %s870_s26, [#allocation27]  }
  0x8a   : > { %s6736_s27 = scalar_lea.vmem %s894_s25, 16  ;;  %s6743_s3 = scalar_lea.vmem %s894_s25, 32 }
  0x8b   : > { %p6737_p10 = scmp.ne.s32.totalorder %s894_s25, %s6736_s27  ;;  %p6744_p13 = scmp.lt.s32.totalorder %s894_s25, %s894_s25 }
  0x8c   : > { %p6745_p0 = scmp.lt.s32.totalorder %s6743_s3, %s6736_s27 }
  0x8d   : > { %p6739_p11 = pnand %p6737_p10, %p7367_p7 }
  0x8e   : > { %p6746_p2 = por %p6745_p0, %p6744_p13 }
  0x8f   : > { %p6740_p12 = pneg %p6739_p11 }
  0x91   : > { %p6747_p1 = pnand %p6746_p2, %p6740_p12 }
  0x93   : > { %6750 = shalt.err (!%p6747_p1)
}
  0x94   : > { %6203 = dma.hbm_to_vmem [thread:$0]  (!%p7357_p6), %s8271_s22, 16, %s894_s25, [#allocation30]  }
  0x95   : > { %s7158_s29 = smov [#allocation7]   ;;  %s7159_s9 = smov [#allocation10]  }
  0x96   : > { %s713_s26 = sshll.u32 %s7158_s29, 4  ;;  %s737_s28 = sshll.u32 %s7159_s9, 4  ;;  %s714_s26 = int_to_ptr.vmem [resolvable:$true] %s713_s26  ;;  %s738_s28 = int_to_ptr.vmem [resolvable:$true] %s737_s28 }
  0x97   : > { %s6762_s5 = scalar_lea.vmem %s714_s26, 48  ;;  %s6769_s11 = scalar_lea.vmem %s714_s26, 64 }
  0x98   : > { %p6763_p3 = scmp.ne.s32.totalorder %s714_s26, %s6762_s5  ;;  %p6770_p8 = scmp.lt.s32.totalorder %s714_s26, %s714_s26 }
  0x99   : > { %p6771_p9 = scmp.lt.s32.totalorder %s6769_s11, %s6762_s5 }
  0x9a   : > { %p6765_p4 = pnand %p6763_p3, %p7367_p7 }
  0x9b   : > { %p6772_p10 = por %p6771_p9, %p6770_p8 }
  0x9c   : > { %p6766_p5 = pneg %p6765_p4 }
  0x9e   : > { %p6773_p11 = pnand %p6772_p10, %p6766_p5 }
  0xa0   : > { %6776 = shalt.err (!%p6773_p11)
}
  0xa1   : > { %s8330_s3 = sld [smem:[#allocation57_spill]]  ;;  %s6788_s10 = scalar_lea.vmem %s738_s28, 16 }
  0xa2   : > { %p6789_p12 = scmp.ne.s32.totalorder %s738_s28, %s6788_s10  ;;  %s6795_s6 = scalar_lea.vmem %s738_s28, 32 }
  0xa3   : > { %p6796_p2 = scmp.lt.s32.totalorder %s738_s28, %s738_s28  ;;  %p6797_p1 = scmp.lt.s32.totalorder %s6795_s6, %s6788_s10 }
  0xa4   : > { %p6791_p13 = pnand %p6789_p12, %p7367_p7 }
  0xa5   : > { %p6798_p3 = por %p6797_p1, %p6796_p2 }
  0xa6   : > { %p6792_p0 = pneg %p6791_p13 }
  0xa7   : > { %6158 = dma.hbm_to_vmem [thread:$0]  (!%p7357_p6), %s8330_s3, 48, %s714_s26, [#allocation6]  }
  0xa8   : > { %p6799_p4 = pnand %p6798_p3, %p6792_p0 }
  0xaa   : > { %6802 = shalt.err (!%p6799_p4)
}
  0xab   : > { %s8331_s5 = sld [smem:[#allocation59_spill]]  ;;  %s7160_s26 = smov [#allocation13]  }
  0xac   : > { %s761_s11 = sshll.u32 %s7160_s26, 4  ;;  %s7161_s27 = smov [#allocation16]   ;;  %s762_s11 = int_to_ptr.vmem [resolvable:$true] %s761_s11 }
  0xad   : > { %s785_s25 = sshll.u32 %s7161_s27, 4  ;;  %s6814_s3 = scalar_lea.vmem %s762_s11, 1024  ;;  %s786_s25 = int_to_ptr.vmem [resolvable:$true] %s785_s25 }
  0xae   : > { %p6815_p5 = scmp.ne.s32.totalorder %s762_s11, %s6814_s3  ;;  %p6822_p10 = scmp.lt.s32.totalorder %s762_s11, %s762_s11 }
  0xaf   : > { %p6823_p11 = scmp.lt.s32.totalorder %s6814_s3, %s6814_s3 }
  0xb0   : > { %p6817_p8 = pnand %p6815_p5, %p7367_p7 }
  0xb1   : > { %6164 = dma.hbm_to_vmem [thread:$0]  (!%p7357_p6), %s8331_s5, 16, %s738_s28, [#allocation9]  }
  0xb2   : > { %p6818_p9 = pneg %p6817_p8  ;;  %p6824_p12 = por %p6823_p11, %p6822_p10 }
  0xb4   : > { %p6825_p13 = pnand %p6824_p12, %p6818_p9 }
  0xb6   : > { %6828 = shalt.err (!%p6825_p13)
}
  0xb7   : > { %s8332_s10 = smov 64   ;;  %s8333_s29 = sld [smem:[#allocation62_spill]] }
  0xb8   : > { %s6840_s9 = scalar_lea.vmem %s786_s25, 2048  ;;  %p6848_p3 = scmp.lt.s32.totalorder %s786_s25, %s786_s25 }
  0xb9   : > { %p6841_p0 = scmp.ne.s32.totalorder %s786_s25, %s6840_s9  ;;  %p6849_p4 = scmp.lt.s32.totalorder %s6840_s9, %s6840_s9 }
  0xbb   : > { %p6843_p2 = pnand %p6841_p0, %p7367_p7  ;;  %p6850_p5 = por %p6849_p4, %p6848_p3 }
  0xbd   : > { %6170 = dma.hbm_to_vmem [thread:$0]  (!%p7357_p6), %s8333_s29, 1024, %s762_s11, [#allocation12], %s8332_s10, %s8332_s10, %s8287_s0  }
  0xbe   : > { %p6844_p1 = pneg %p6843_p2 }
  0xc0   : > { %p6851_p8 = pnand %p6850_p5, %p6844_p1 }
  0xc2   : > { %6854 = shalt.err (!%p6851_p8)
}
  0xc3   : > { %s8288_s5 = smov 128   ;;  %s7163_s26 = smov 8  }
  0xc4   : > { %s8334_s13 = sld [smem:[#allocation64_spill]]  ;;  %s7164_s3 = smov [#allocation19]  }
  0xc5   : > { %s809_s28 = sshll.u32 %s7164_s3, 4  ;;  %s7165_s6 = smov [#allocation22]   ;;  %s810_s28 = int_to_ptr.vmem [resolvable:$true] %s809_s28 }
  0xc6   : > { %s834_s29 = sshll.u32 %s7165_s6, 4  ;;  %s6866_s9 = scalar_lea.vmem %s810_s28, 1024  ;;  %s835_s29 = int_to_ptr.vmem [resolvable:$true] %s834_s29 }
  0xc7   : > { %p6867_p9 = scmp.ne.s32.totalorder %s810_s28, %s6866_s9  ;;  %p6874_p12 = scmp.lt.s32.totalorder %s810_s28, %s810_s28 }
  0xc8   : > { %p6875_p13 = scmp.lt.s32.totalorder %s6866_s9, %s6866_s9 }
  0xc9   : > { %p6869_p10 = pnand %p6867_p9, %p7367_p7 }
  0xca   : > { %6176 = dma.hbm_to_vmem [thread:$0]  (!%p7357_p6), %s8334_s13, 2048, %s786_s25, [#allocation15], %s8288_s5, %s8288_s5, %s7163_s26  }
  0xcb   : > { %p6870_p11 = pneg %p6869_p10  ;;  %p6876_p0 = por %p6875_p13, %p6874_p12 }
  0xcd   : > { %p6877_p2 = pnand %p6876_p0, %p6870_p11 }
  0xcf   : > { %6880 = shalt.err (!%p6877_p2)
}
  0xd0   : > { %s8335_s15 = sld [smem:[#allocation66_spill]]  ;;  %s6892_s27 = scalar_lea.vmem %s835_s29, 16 }
  0xd1   : > { %p6893_p1 = scmp.ne.s32.totalorder %s835_s29, %s6892_s27  ;;  %s6899_s3 = scalar_lea.vmem %s835_s29, 32 }
  0xd2   : > { %p6900_p5 = scmp.lt.s32.totalorder %s835_s29, %s835_s29  ;;  %p6901_p8 = scmp.lt.s32.totalorder %s6899_s3, %s6892_s27 }
  0xd3   : > { %p6895_p3 = pnand %p6893_p1, %p7367_p7 }
  0xd4   : > { %p6902_p9 = por %p6901_p8, %p6900_p5 }
  0xd5   : > { %p6896_p4 = pneg %p6895_p3 }
  0xd6   : > { %6182 = dma.hbm_to_vmem [thread:$0]  (!%p7357_p6), %s8335_s15, 1024, %s810_s28, [#allocation18], %s8332_s10, %s8332_s10, %s8287_s0  }
  0xd7   : > { %p6903_p10 = pnand %p6902_p9, %p6896_p4 }
  0xd9   : > { %6906 = shalt.err (!%p6903_p10)
}
  0xda   : > { %s8336_s17 = sld [smem:[#allocation68_spill]]  ;;  %s7166_s28 = smov [#allocation25]  }
  0xdb   : > { %s855_s25 = sshll.u32 %s7166_s28, 4  ;;  %s7167_s11 = smov [#allocation28]   ;;  %s856_s25 = int_to_ptr.vmem [resolvable:$true] %s855_s25 }
  0xdc   : > { %s879_s0 = sshll.u32 %s7167_s11, 4  ;;  %s6918_s5 = scalar_lea.vmem %s856_s25, 2048  ;;  %s880_s0 = int_to_ptr.vmem [resolvable:$true] %s879_s0 }
  0xdd   : > { %p6919_p11 = scmp.ne.s32.totalorder %s856_s25, %s6918_s5  ;;  %p6926_p0 = scmp.lt.s32.totalorder %s856_s25, %s856_s25 }
  0xde   : > { %p6927_p2 = scmp.lt.s32.totalorder %s6918_s5, %s6918_s5 }
  0xdf   : > { %p6921_p12 = pnand %p6919_p11, %p7367_p7 }
  0xe0   : > { %6188 = dma.hbm_to_vmem [thread:$0]  (!%p7357_p6), %s8336_s17, 16, %s835_s29, [#allocation21]  }
  0xe1   : > { %p6922_p13 = pneg %p6921_p12  ;;  %p6928_p1 = por %p6927_p2, %p6926_p0 }
  0xe3   : > { %p6929_p3 = pnand %p6928_p1, %p6922_p13 }
  0xe5   : > { %6932 = shalt.err (!%p6929_p3)
}
  0xe6   : > { %s8337_s27 = smov 128   ;;  %s6944_s6 = scalar_lea.vmem %s880_s0, 2048 }
  0xe7   : > { %6194 = dma.hbm_to_vmem [thread:$0]  (!%p7357_p6), %s8268_s19, 2048, %s856_s25, [#allocation24], %s8337_s27, %s8337_s27, %s7163_s26  }
  0xe8   : > { %p6945_p4 = scmp.ne.s32.totalorder %s880_s0, %s6944_s6  ;;  %p6952_p9 = scmp.lt.s32.totalorder %s880_s0, %s880_s0 }
  0xe9   : > { %p6953_p10 = scmp.lt.s32.totalorder %s6944_s6, %s6944_s6 }
  0xea   : > { %p6947_p5 = pnand %p6945_p4, %p7367_p7 }
  0xeb   : > { %p6954_p11 = por %p6953_p10, %p6952_p9 }
  0xec   : > { %p6948_p8 = pneg %p6947_p5 }
  0xee   : > { %p6955_p12 = pnand %p6954_p11, %p6948_p8 }
  0xf0   : > { %6958 = shalt.err (!%p6955_p12)
}
  0xf1   : > { %s8338_s5 = smov 4   ;;  %s7168_s26 = smov [#allocation31]  }
  0xf2   : > { %6200 = dma.hbm_to_vmem [thread:$0]  (!%p7357_p6), %s8270_s21, 2048, %s880_s0, [#allocation27], %s8332_s10, %s8332_s10, %s8338_s5  }
  0xf3   : > { %s904_s25 = sshll.u32 %s7168_s26, 4  ;;  %s7169_s11 = smov [#allocation32]   ;;  %s905_s25 = int_to_ptr.vmem [resolvable:$true] %s904_s25 }
  0xf4   : > { %s915_s27 = sshll.u32 %s7169_s11, 4  ;;  %s6970_s29 = scalar_lea.vmem %s905_s25, 16  ;;  %s916_s27 = int_to_ptr.vmem [resolvable:$true] %s915_s27 }
  0xf5   : > { %p6971_p13 = scmp.ne.s32.totalorder %s905_s25, %s6970_s29  ;;  %s6977_s3 = scalar_lea.vmem %s905_s25, 32 }
  0xf6   : > { %p6978_p1 = scmp.lt.s32.totalorder %s905_s25, %s905_s25  ;;  %p6979_p3 = scmp.lt.s32.totalorder %s6977_s3, %s6970_s29 }
  0xf7   : > { %p6973_p0 = pnand %p6971_p13, %p7367_p7 }
  0xf8   : > { %p6980_p4 = por %p6979_p3, %p6978_p1 }
  0xf9   : > { %p6974_p2 = pneg %p6973_p0 }
  0xfb   : > { %p6981_p5 = pnand %p6980_p4, %p6974_p2 }
  0xfd   : > { %6984 = shalt.err (!%p6981_p5)
}
  0xfe   : > { %6206 = dma.hbm_to_vmem [thread:$0]  (!%p7357_p6), %s8272_s23, 16, %s905_s25, [#allocation30]  }
  0xff   : > { %s6996_s10 = scalar_lea.vmem %s916_s27, 16  ;;  %s7003_s5 = scalar_lea.vmem %s916_s27, 32 }
 0x100   : > { %p6997_p8 = scmp.ne.s32.totalorder %s916_s27, %s6996_s10  ;;  %p7004_p11 = scmp.lt.s32.totalorder %s916_s27, %s916_s27 }
 0x101   : > { %p7005_p12 = scmp.lt.s32.totalorder %s7003_s5, %s6996_s10 }
 0x102   : > { %p6999_p9 = pnand %p6997_p8, %p7367_p7 }
 0x103   : > { %p7006_p13 = por %p7005_p12, %p7004_p11 }
 0x104   : > { %p7000_p10 = pneg %p6999_p9 }
 0x106   : > { %p7007_p0 = pnand %p7006_p13, %p7000_p10 }
 0x108   : > { %7010 = shalt.err (!%p7007_p0)
}
 0x109   : > { %s8339_s2 = sld [smem:[#allocation49_spill]]  ;;  %s5394_s26 = sadd.s32 4294967294, %s7143_s30  }
 0x10a   : > { %6209 = dma.hbm_to_vmem [thread:$0]  (!%p7357_p6), %s8273_s24, 16, %s916_s27, [#allocation33]  }
 0x10b   : > { %s7530_s1 = sadd.s32 1, %s7143_s30   ;;  %s87_s25 = sadd.s32 1, %s7139_s8 }
 0x10c   : > { %s84_s11 = ssub.s32 %s7143_s30, %s7530_s1  ;;  %p94_p7 = scmp.ne.s32.totalorder %s7139_s8, %s7135_s4 }
 0x10d   : > { %p85_p2 = scmp.eq.s32.totalorder %s84_s11, 0  ;;  %p95_p1 = scmp.eq.s32.totalorder %s7143_s30, 0 }
 0x10e   : > { %p100_p3 = scmp.ne.s32.totalorder %s7135_s4, %s7131_s7  ;;  %p628_p10 = scmp.eq.s32.totalorder %s5394_s26, 1 }
 0x10f   : > { %p622_p4 = scmp.eq.s32.totalorder %s8339_s2, 1  ;;  %p96_p5 = por %p95_p1, %p94_p7 }
 0x110   : > { %s7542_s29 = scalar_select %p85_p2, %s7139_s8, %s87_s25  }
 0x111   : > { %p8340_p8 = scmp.eq.s32.totalorder %s8339_s2, 0  ;;  %p7550_p6 = por %p622_p4, %p94_p7 }
 0x112   : > { %p6237_p11 = scmp.lt.s32.totalorder %s7143_s30, 2  ;;  %s933_s6 = sand.u32 1, %s7139_s8  }
 0x113   : > { %p7546_p9 = por %p8340_p8, %p100_p3  ;;  %p7556_p12 = por %p628_p10, %p100_p3 }
 0x114   : > { %s8342_s27 = scalar_select %p7550_p6, 1, 0 }
 0x115   : > { %s8341_s3 = scalar_select %p7546_p9, 1, 0 }
 0x116   : > { %s8343_s0 = scalar_select %p7556_p12, 1, 0 }
 0x117   : > { %s5416_s10 = sshll.u32 %s933_s6, 3  ;;  %s5417_s5 = sshll.u32 %s7143_s30, 7 }
 0x118   : > { %s8344_s2 = sld [smem:[#allocation52_spill]]  ;;  %s937_s11 = scalar_lea.vmem [#allocation2], %s5416_s10 }
 0x119   : > { %s944_s12 = sshll.u32 %s937_s11, 4  ;;  %p7566_p13 = pnand %p6237_p11, %p96_p5  ;;  %s945_s12 = int_to_ptr.vmem [resolvable:$true] %s944_s12 }
 0x11a   : > { %s934_s13 = scalar_lea.sflag [#allocation3], %s933_s6 }
 0x11b   : > { %p7013_p7 = pneg %p7566_p13 }
 0x11e   : > { %s7564_s25 = scalar_lea.hbm %s8344_s2, %s5417_s5  ;;  %s7016_s28 = scalar_lea.hbm %s8344_s2, 256 }
 0x11f   : > { %s7011_s14 = scalar_lea.hbm %s7564_s25, 128  ;;  %p7017_p3 = scmp.lt.s32.totalorder %s7564_s25, %s8344_s2 }
 0x120   : > { %p7012_p0 = scmp.ne.s32.totalorder %s7564_s25, %s7011_s14  ;;  %p7018_p4 = scmp.lt.s32.totalorder %s7016_s28, %s7011_s14 }
 0x122   : > { %p7014_p2 = pnand %p7013_p7, %p7012_p0  ;;  %p7019_p5 = por %p7018_p4, %p7017_p3 }
 0x124   : > { %p7015_p1 = pneg %p7014_p2 }
 0x126   : > { %p7020_p8 = pnand %p7019_p5, %p7015_p1 }
 0x128   : > { %7023 = shalt.err (!%p7020_p8)
}
 0x129   : > { %s7024_s11 = scalar_lea.vmem %s945_s12, 128  ;;  %s7170_s6 = smov [#allocation2]  }
 0x12a   : > { %p7025_p10 = scmp.ne.s32.totalorder %s945_s12, %s7024_s11  ;;  %s7029_s16 = sshll.u32 %s7170_s6, 4  ;;  %s7030_s16 = int_to_ptr.vmem [resolvable:$false] %s7029_s16 }
 0x12b   : > { %s7031_s17 = scalar_lea.vmem %s7030_s16, 256  ;;  %p7032_p0 = scmp.lt.s32.totalorder %s945_s12, %s7030_s16 }
 0x12c   : > { %p7027_p11 = pnand %p7025_p10, %p7013_p7  ;;  %p7033_p2 = scmp.lt.s32.totalorder %s7031_s17, %s7024_s11 }
 0x12e   : > { %p7028_p12 = pneg %p7027_p11  ;;  %p7034_p6 = por %p7033_p2, %p7032_p0 }
 0x130   : > { %p7035_p9 = pnand %p7034_p6, %p7028_p12 }
 0x132   : > { %7038 = shalt.err (!%p7035_p9)
}
 0x133   : > { %6213 = dma.hbm_to_vmem [thread:$0]  (!%p7566_p13), %s7564_s25, 128, %s945_s12, %s934_s13  }
 0x134   : > { %s8346_s14 = sld [smem:[#allocation50_spill]] }
 0x13a   : > { %p8347_p1 = scmp.ne.s32.totalorder %s8346_s14, 0 }
 0x13b   : > { %s7587_s15 = sand.u32 (!%p8347_p1), 1, %s7135_s4   ;;  %p8348_p9 = scmp.ne.s32.totalorder (!%p8347_p1), %s8341_s3, 0 }
 0x13c   : > { %974 = sbr.rel (%p8347_p1) target bundleno = 3929 (0xf59), region = 120  ;;  %s8291_s5 = sshll.u32 (!%p8347_p1), %s7587_s15, 3 }
 0x13d   : > { %s977_s16 = scalar_lea.sflag (!%p8347_p1), [#allocation3], %s7587_s15  ;;  %s7593_s17 = scalar_lea.vmem (!%p8347_p1), [#allocation2], %s8291_s5 }
 0x141   : > { %7082 = dma.done.wait (%p8348_p9), %s977_s16, 128  }
 0x142   : > { %7084 = vsyncadd (%p8348_p9), %s977_s16, 4294967168  ;;  %s8349_s12 = sld [smem:[#allocation49_spill]] }
 0x148   : > { %p8350_p6 = scmp.eq.s32.totalorder %s8349_s12, 0 }
 0x14a   : > { %7086 = dma.done.wait (%p8350_p6), [#allocation6], 3120   ;;  %p8351_p12 = pmov %p8350_p6 }
 0x14b   : > { %p8352_p13 = pmov %p8350_p6 }
 0x14c   : > { %7088 = vsyncadd (%p8351_p12), [#allocation6], 4294964176 }
 0x14d   : > { %7090 = dma.done.wait (%p8352_p13), [#allocation9], 1040   ;;  %p8353_p7 = pmov %p8350_p6 }
 0x14e   : > { %p8354_p3 = pmov %p8350_p6 }
 0x14f   : > { %7092 = vsyncadd (%p8353_p7), [#allocation9], 4294966256 }
 0x150   : > { %7094 = dma.done.wait (%p8354_p3), [#allocation12], 1040   ;;  %p8355_p4 = pmov %p8354_p3 }
 0x151   : > { %p8356_p5 = pmov %p8354_p3 }
 0x152   : > { %7096 = vsyncadd (%p8355_p4), [#allocation12], 4294966256 }
 0x153   : > { %7098 = dma.done.wait (%p8356_p5), [#allocation15], 2064   ;;  %p8357_p8 = pmov %p8354_p3 }
 0x154   : > { %p8358_p10 = pmov %p8354_p3 }
 0x155   : > { %7100 = vsyncadd (%p8357_p8), [#allocation15], 4294965232 }
 0x156   : > { %7102 = dma.done.wait (%p8358_p10), [#allocation18], 1056   ;;  %p8359_p11 = pmov %p8354_p3 }
 0x157   : > { %p8360_p0 = pmov %p8354_p3 }
 0x158   : > { %7104 = vsyncadd (%p8359_p11), [#allocation18], 4294966240 }
 0x159   : > { %7106 = dma.done.wait (%p8360_p0), [#allocation21], 32   ;;  %p8361_p2 = pmov %p8360_p0 }
 0x15a   : > { %p8362_p1 = pmov %p8360_p0 }
 0x15b   : > { %7108 = vsyncadd (%p8361_p2), [#allocation21], 4294967264 }
 0x15c   : > { %7110 = dma.done.wait (%p8362_p1), [#allocation24], 2064   ;;  %p8363_p9 = pmov %p8360_p0 }
 0x15d   : > { %p8364_p6 = pmov %p8360_p0 }
 0x15e   : > { %7112 = vsyncadd (%p8363_p9), [#allocation24], 4294965232 }
 0x15f   : > { %7114 = dma.done.wait (%p8364_p6), [#allocation27], 2080   ;;  %p8365_p12 = pmov %p8360_p0 }
 0x160   : > { %p8366_p13 = pmov %p8360_p0 }
 0x161   : > { %7116 = vsyncadd (%p8365_p12), [#allocation27], 4294965216 }
 0x162   : > { %7118 = dma.done.wait (%p8366_p13), [#allocation30], 32   ;;  %p8367_p7 = pmov %p8360_p0 }
 0x163   : > { %p8368_p3 = pmov %p8360_p0 }
 0x164   : > { %7120 = vsyncadd (%p8367_p7), [#allocation30], 4294967264 }
 0x165   : > { %7122 = dma.done.wait (%p8368_p3), [#allocation33], 16   ;;  %p8369_p4 = pmov %p8360_p0 }
 0x166   : > { %v7171_v0 = vmov 0   ;;  %v6326_v1 = vld [vmem:[#allocation5 + $0xac] ss:$12 sps:$4 sm:$0xff]   ;;  %v6328_v2 = vld [vmem:[#allocation5 + $0xa8] ss:$12 sps:$4 sm:$0xff]   ;;  %p1151_p5 = scmp.lt.s32.totalorder %s8349_s12, 1  ;;  %v1210_v28 = vlaneseq }
 0x167   : > { %7124 = vsyncadd (%p8369_p4), [#allocation33], 4294967280  ;;  %1385 = vmatprep.mubr.bf16.mxu0 %v7171_v0  ;;  %6325 = vset.pattern.permute.xlu0 %v7171_v0  ;;  %v6329_v3 = vld [vmem:[#allocation5 + $0x94] ss:$12 sps:$4 sm:$0xff]   ;;  %v6331_v4 = vld [vmem:[#allocation5 + $0x90] ss:$12 sps:$4 sm:$0xff]  }
 0x168   : > { %1353 = vmatprep.subr.bf16.mxu0 %v6326_v1  ;;  %v6332_v5 = vld [vmem:[#allocation5 + $0x7c] ss:$12 sps:$4 sm:$0xff]   ;;  %v6334_v6 = vld [vmem:[#allocation5 + $0x78] ss:$12 sps:$4 sm:$0xff]   ;;  %s1152_s13 = scalar_select %p1151_p5, %s8349_s12, 1  ;;  %v7172_v19 = vmov 0.0  }
 0x169   : > { %1354 = vmatpush1.bf16.msra.mxu0 %v6328_v2  ;;  %v6335_v7 = vld [vmem:[#allocation5 + $0x64] ss:$12 sps:$4 sm:$0xff]   ;;  %v6337_v8 = vld [vmem:[#allocation5 + $0x60] ss:$12 sps:$4 sm:$0xff]   ;;  %v6340_v10 = vld [vmem:[#allocation5 + $0x48] ss:$12 sps:$4 sm:$0xff]   ;;  %5744 = vmatprep.subr.bf16.mxu1 %v7172_v19 }
 0x16a   : > { %1355 = vmatprep.subr.bf16.mxu0 %v6329_v3  ;;  %v6338_v9 = vld [vmem:[#allocation5 + $0x4c] ss:$12 sps:$4 sm:$0xff]   ;;  %s7643_s3 = sshll.u32 %s1152_s13, 3  ;;  %v6341_v11 = vld [vmem:[#allocation5 + $0x34] ss:$12 sps:$4 sm:$0xff]   ;;  %s8370_s9 = sld [smem:[#allocation51_spill]] }
 0x16b   : > { %v6343_v12 = vld [vmem:[#allocation5 + $0x30] ss:$12 sps:$4 sm:$0xff]   ;;  %v6346_v14 = vld [vmem:[#allocation5 + $0x18] ss:$12 sps:$4 sm:$0xff]   ;;  %v6349_v16 = vld [vmem:[#allocation5] ss:$12 sps:$4 sm:$0xff]  }
 0x16c   : > { %v6344_v13 = vld [vmem:[#allocation5 + $0x1c] ss:$12 sps:$4 sm:$0xff]   ;;  %v6347_v15 = vld [vmem:[#allocation5 + $0x4] ss:$12 sps:$4 sm:$0xff]   ;;  %vm7173_vm0 = vmmov 0   ;;  %v7668_v29 = vshrl.u32 %v1210_v28, 7 }
 0x16d   : > { %1356 = vmatpush1.bf16.msra.mxu0 %v6331_v4  ;;  %5760 = vmatprep.mubr.msk.bf16.mxu1 %vm7173_vm0, %v7172_v19  ;;  %v6350_v20 = vld [vmem:[#allocation5 + $0xb0] ss:$12 sps:$4 sm:$0xff]   ;;  %v6351_v21 = vld [vmem:[#allocation5 + $0x98] ss:$12 sps:$4 sm:$0xff]   ;;  %v6352_v22 = vld [vmem:[#allocation5 + $0x80] ss:$12 sps:$4 sm:$0xff]  }
 0x16e   : > { %1357 = vmatprep.subr.bf16.mxu0 %v6332_v5  ;;  %5745 = vmatpush3.bf16.msra.mxu1 %v6350_v20  ;;  %v6353_v23 = vld [vmem:[#allocation5 + $0x68] ss:$12 sps:$4 sm:$0xff]   ;;  %v6354_v24 = vld [vmem:[#allocation5 + $0x50] ss:$12 sps:$4 sm:$0xff]   ;;  %v6355_v25 = vld [vmem:[#allocation5 + $0x38] ss:$12 sps:$4 sm:$0xff]  }
 0x16f   : > { %5746 = vmatprep.subr.bf16.mxu1 %v7172_v19  ;;  %v6356_v26 = vld [vmem:[#allocation5 + $0x20] ss:$12 sps:$4 sm:$0xff]   ;;  %v6357_v27 = vld [vmem:[#allocation5 + $0x8] ss:$12 sps:$4 sm:$0xff]   ;;  %v7671_v30 = vsub.s32 0, %v7668_v29  ;;  %v7676_v32 = vsub.s32 1, %v7668_v29 }
 0x170   : > { %s7649_s28 = scalar_lea.vmem %s8370_s9, %s7643_s3  ;;  %v7673_v31 = vld [vmem:[#allocation7] sm:$0x7]  ;;  %s7174_s10 = smov 112   ;;  %vm1543_vm1 = vcmask 130048   ;;  %v1220_v1 = vsub.s32 2, %v7668_v29  ;;  %vm2036_vm2 = vcmask 1043456  }
 0x171   : > { %1358 = vmatpush1.bf16.msra.mxu0 %v6334_v6  ;;  %v1168_v17 = vld [vmem:[%s7649_s28] sm:$0xff]  ;;  %v1213_v33 = vrot.slane %v7673_v31, %v7671_v30  ;;  %v1217_v34 = vrot.slane %v7673_v31, %v7676_v32  ;;  %s7175_s11 = smov 80   ;;  %s7176_s6 = smov 96   ;;  %vm1928_vm3 = vcmask 64512  }
 0x172   : > { %1359 = vmatprep.subr.bf16.mxu0 %v6335_v7  ;;  %v1175_v18 = vpack.c.bf16 %v1168_v17, %v1168_v17  ;;  %5747 = vmatpush3.bf16.msra.mxu1 %v6351_v21  ;;  %s7177_s14 = smov 64   ;;  %s7178_s16 = smov 48  }
 0x173   : > { %5748 = vmatprep.subr.bf16.mxu1 %v7172_v19  ;;  %s8295_s13 = smov 32   ;;  %s8292_s25 = smov 16  }
 0x174   : > { %s8371_s5 = sld [smem:[#allocation54_spill]]  ;;  %s8372_s26 = smov 16  }
 0x175   : > { %1360 = vmatpush1.bf16.msra.mxu0 %v6337_v8  ;;  %v1221_v8 = vrot.slane %v7673_v31, %v1220_v1  ;;  %s8379_s9 = sld [smem:[#allocation69_spill]]  ;;  %p8380_p10 = scmp.ne.s32.totalorder %s8342_s27, 0 }
 0x176   : > { %1361 = vmatprep.subr.bf16.mxu0 %v6338_v9  ;;  %5749 = vmatpush3.bf16.msra.mxu1 %v6352_v22 }
 0x177   : > { %5750 = vmatprep.subr.bf16.mxu1 %v7172_v19 }
 0x179   : > { %1362 = vmatpush1.bf16.msra.mxu0 %v6340_v10 }
 0x17a   : > { %1363 = vmatprep.subr.bf16.mxu0 %v6341_v11  ;;  %5751 = vmatpush3.bf16.msra.mxu1 %v6353_v23 }
 0x17b   : > { %5752 = vmatprep.subr.bf16.mxu1 %v7172_v19 }
 0x17d   : > { %1364 = vmatpush1.bf16.msra.mxu0 %v6343_v12 }
 0x17e   : > { %1365 = vmatprep.subr.bf16.mxu0 %v6344_v13  ;;  %5753 = vmatpush3.bf16.msra.mxu1 %v6354_v24 }
 0x17f   : > { %5754 = vmatprep.subr.bf16.mxu1 %v7172_v19 }
 0x181   : > { %1366 = vmatpush1.bf16.msra.mxu0 %v6346_v14 }
 0x182   : > { %1367 = vmatprep.subr.bf16.mxu0 %v6347_v15  ;;  %5755 = vmatpush3.bf16.msra.mxu1 %v6355_v25 }
 0x183   : > { %5756 = vmatprep.subr.bf16.mxu1 %v7172_v19 }
 0x185   : > { %1368 = vmatpush1.bf16.msra.mxu0 %v6349_v16 }
 0x186   : > { %5764 = vmatprep.subr.bf16.mxu0 %v7172_v19  ;;  %5757 = vmatpush3.bf16.msra.mxu1 %v6356_v26 }
 0x187   : > { %5758 = vmatprep.subr.bf16.mxu1 %v7172_v19 }
 0x188   : > { %1386 = vmatmul.mubr.bf16.vlgmr.msra.gmra.mxu0 %v1175_v18 }
 0x189   : > { %5766 = vmatprep.mubr.msk.bf16.mxu0 %vm7173_vm0, %v7172_v19 }
 0x18a   : > { %5759 = vmatpush3.bf16.msra.mxu1 %v6357_v27 }
 0x18b   : > { %5770 = vmatprep.subr.bf16.mxu1 %v7172_v19 }
 0x18d   : > { %5761 = vmatmul.mubr.bf16.vlgmr.msra.gmra.mxu1 %v1175_v18 }
 0x18e   : > { %5772 = vmatprep.mubr.msk.bf16.mxu1 %vm7173_vm0, %v7172_v19 }
 0x248   : > { %v1387_v35 = vpop.f32.mrf.mxu0 }
 0x249   : > { %v1388_v36 = vadd.f32 %v1387_v35, %v1213_v33 }
 0x24a   : > { %v1389_v37 = vpop.f32.mrf.mxu0 }
 0x24b   : > { %v1390_v38 = vadd.f32 %v1389_v37, %v1217_v34  ;;  %1454 = vrot.lane.b32.xlu1 %v1388_v36, %s7174_s10  ;;  %v1475_v43 = vpack.c.bf16 %v1388_v36, %v1388_v36 }
 0x24c   : > { %v1391_v39 = vpop.f32.mrf.mxu0 }
 0x24d   : > { %1484 = vrot.lane.b32.xlu0 %v1390_v38, %s7174_s10  ;;  %v1505_v40 = vpack.c.bf16 %v1390_v38, %v1390_v38  ;;  %v1428_v54 = vpop.f32.mrf.mxu1 }
 0x24e   : > { %v1392_v41 = vpop.f32.mrf.mxu0  ;;  %v7722_v14 = vadd.f32 %v1428_v54, %v1221_v8 }
 0x24f   : > { %1490 = vrot.lane.b32.xlu1 %v1390_v38, %s7175_s11  ;;  %v1548_v42 = vsel %vm1543_vm1, %v1505_v40, 0  ;;  %v5762_v57 = vpop.f32.mrf.mxu1 }
 0x250   : > { %5765 = vmatpush3.bf16.xpose.msra.mxu0 %v1548_v42  ;;  %v1535_v18 = vpack.c.bf16 %v7722_v14, %v7722_v14 }
 0x251   : > { %1487 = vrot.lane.b32.xlu0 %v1390_v38, %s7176_s6  ;;  %5776 = vmatprep.subr.bf16.mxu0 %v7172_v19  ;;  %v1431_v61 = vpop.f32.mrf.mxu1 }
 0x252   : > { %v2038_v23 = vsel %vm2036_vm2, %v1535_v18, 0 }
 0x253   : > { %1493 = vrot.lane.b32.xlu1 %v1390_v38, %s7177_s14  ;;  %v5763_v2 = vpop.f32.mrf.mxu1 }
 0x255   : > { %1457 = vrot.lane.b32.xlu0 %v1388_v36, %s7176_s6 }
 0x257   : > { %1496 = vrot.lane.b32.xlu1 %v1390_v38, %s7178_s16  ;;  %5767 = vmatmul.mubr.msk.bf16.vlgmr.msra.gmra.mxu0 %vm1543_vm1, %v1475_v43 }
 0x258   : > { %5778 = vmatprep.mubr.msk.bf16.mxu0 %vm7173_vm0, %v7172_v19 }
 0x259   : > { %1460 = vrot.lane.b32.xlu0 %v1388_v36, %s7175_s11 }
 0x25b   : > { %1499 = vrot.lane.b32.xlu1 %v1390_v38, %s8295_s13 }
 0x25d   : > { %1463 = vrot.lane.b32.xlu0 %v1388_v36, %s7177_s14 }
 0x25f   : > { %1502 = vrot.lane.b32.xlu1 %v1390_v38, %s8292_s25 }
 0x261   : > { %1466 = vrot.lane.b32.xlu0 %v1388_v36, %s7178_s16 }
 0x263   : > { %1472 = vrot.lane.b32.xlu1 %v1388_v36, %s8292_s25  ;;  %s1162_s25 = scalar_lea.vmem %s8371_s5, %s7643_s3  ;;  %s8294_s5 = sshll.u32 %s7587_s15, 6 }
 0x264   : > { %v1171_v26 = vld [vmem:[%s1162_s25] sm:$0xff]  ;;  %s7820_s25 = scalar_lea.vmem [#allocation35], %s8294_s5  ;;  %s8373_s5 = sld [smem:[#allocation53_spill]] }
 0x265   : > { %1469 = vrot.lane.b32.xlu0 %v1388_v36, %s8295_s13  ;;  %v1172_v27 = vmul.f32 -1e+30, %v1171_v26 }
 0x2bd   : > { %v1455_v44 = vpop.permute.xlu1 %1454 }
 0x2be   : > { %v1476_v56 = vpack.c.bf16 %v1455_v44, %v1455_v44 }
 0x2bf   : > { %v1485_v45 = vpop.permute.xlu0 %1484 }
 0x2c0   : > { %v1506_v46 = vpack.c.bf16 %v1485_v45, %v1485_v45 }
 0x2c1   : > { %v1491_v47 = vpop.permute.xlu1 %1490 }
 0x2c2   : > { %v1594_v48 = vsel %vm1543_vm1, %v1506_v46, 0  ;;  %v1508_v52 = vpack.c.bf16 %v1491_v47, %v1491_v47 }
 0x2c3   : > { %5771 = vmatpush3.bf16.xpose.msra.mxu1 %v1594_v48  ;;  %v1488_v49 = vpop.permute.xlu0 %1487 }
 0x2c4   : > { %v1507_v50 = vpack.c.bf16 %v1488_v49, %v1488_v49  ;;  %5782 = vmatprep.subr.bf16.mxu1 %v7172_v19  ;;  %v1686_v59 = vsel %vm1543_vm1, %v1508_v52, 0 }
 0x2c5   : > { %v1494_v51 = vpop.permute.xlu1 %1493 }
 0x2c6   : > { %v1640_v53 = vsel %vm1543_vm1, %v1507_v50, 0  ;;  %v1509_v60 = vpack.c.bf16 %v1494_v51, %v1494_v51 }
 0x2c7   : > { %v1458_v55 = vpop.permute.xlu0 %1457  ;;  %5777 = vmatpush3.bf16.xpose.msra.mxu0 %v1640_v53 }
 0x2c8   : > { %5788 = vmatprep.subr.bf16.mxu0 %v7172_v19  ;;  %v1477_v63 = vpack.c.bf16 %v1458_v55, %v1458_v55  ;;  %v1732_v4 = vsel %vm1543_vm1, %v1509_v60, 0 }
 0x2c9   : > { %v1497_v58 = vpop.permute.xlu1 %1496 }
 0x2ca   : > { %5773 = vmatmul.mubr.msk.bf16.vlgmr.msra.gmra.mxu1 %vm1543_vm1, %v1476_v56  ;;  %v1510_v5 = vpack.c.bf16 %v1497_v58, %v1497_v58 }
 0x2cb   : > { %v1461_v62 = vpop.permute.xlu0 %1460  ;;  %5783 = vmatpush3.bf16.xpose.msra.mxu1 %v1686_v59  ;;  %5784 = vmatprep.mubr.msk.bf16.mxu1 %vm7173_vm0, %v7172_v19 }
 0x2cc   : > { %5794 = vmatprep.subr.bf16.mxu1 %v7172_v19  ;;  %v1478_v7 = vpack.c.bf16 %v1461_v62, %v1461_v62  ;;  %v1778_v9 = vsel %vm1543_vm1, %v1510_v5, 0 }
 0x2cd   : > { %v1500_v3 = vpop.permute.xlu1 %1499 }
 0x2ce   : > { %5779 = vmatmul.mubr.msk.bf16.vlgmr.msra.gmra.mxu0 %vm1543_vm1, %v1477_v63  ;;  %v1511_v10 = vpack.c.bf16 %v1500_v3, %v1500_v3 }
 0x2cf   : > { %v1464_v6 = vpop.permute.xlu0 %1463  ;;  %5789 = vmatpush3.bf16.xpose.msra.mxu0 %v1732_v4  ;;  %5790 = vmatprep.mubr.msk.bf16.mxu0 %vm7173_vm0, %v7172_v19 }
 0x2d0   : > { %5800 = vmatprep.subr.bf16.mxu0 %v7172_v19  ;;  %v1479_v13 = vpack.c.bf16 %v1464_v6, %v1464_v6  ;;  %v1824_v15 = vsel %vm1543_vm1, %v1511_v10, 0 }
 0x2d1   : > { %v1503_v11 = vpop.permute.xlu1 %1502 }
 0x2d2   : > { %5785 = vmatmul.mubr.msk.bf16.vlgmr.msra.gmra.mxu1 %vm1543_vm1, %v1478_v7  ;;  %v1512_v16 = vpack.c.bf16 %v1503_v11, %v1503_v11 }
 0x2d3   : > { %v1467_v12 = vpop.permute.xlu0 %1466  ;;  %5795 = vmatpush3.bf16.xpose.msra.mxu1 %v1778_v9  ;;  %5796 = vmatprep.mubr.msk.bf16.mxu1 %vm7173_vm0, %v7172_v19 }
 0x2d4   : > { %5806 = vmatprep.subr.bf16.mxu1 %v7172_v19  ;;  %v1480_v17 = vpack.c.bf16 %v1467_v12, %v1467_v12  ;;  %v1870_v21 = vsel %vm1543_vm1, %v1512_v16, 0 }
 0x2d5   : > { %v1473_v24 = vpop.permute.xlu1 %1472 }
 0x2d6   : > { %5791 = vmatmul.mubr.msk.bf16.vlgmr.msra.gmra.mxu0 %vm1543_vm1, %v1479_v13  ;;  %v1482_v25 = vpack.c.bf16 %v1473_v24, %v1473_v24 }
 0x2d7   : > { %5801 = vmatpush3.bf16.xpose.msra.mxu0 %v1824_v15  ;;  %5802 = vmatprep.mubr.msk.bf16.mxu0 %vm7173_vm0, %v7172_v19  ;;  %v1470_v20 = vpop.permute.xlu0 %1469 }
 0x2d8   : > { %5812 = vmatprep.subr.bf16.mxu0 %v7172_v19  ;;  %v1481_v22 = vpack.c.bf16 %v1470_v20, %v1470_v20 }
 0x2da   : > { %5797 = vmatmul.mubr.msk.bf16.vlgmr.msra.gmra.mxu1 %vm1543_vm1, %v1480_v17 }
 0x2db   : > { %5807 = vmatpush3.bf16.xpose.msra.mxu1 %v1870_v21  ;;  %5808 = vmatprep.mubr.msk.bf16.mxu1 %vm7173_vm0, %v7172_v19 }
 0x2dc   : > { %5818 = vmatprep.subr.bf16.mxu1 %v7172_v19 }
 0x2de   : > { %5803 = vmatmul.mubr.msk.bf16.vlgmr.msra.gmra.mxu0 %vm1543_vm1, %v1481_v22 }
 0x2df   : > { %5813 = vmatpush3.bf16.msra.mxu0 %v2038_v23  ;;  %5814 = vmatprep.mubr.msk.bf16.mxu0 %vm7173_vm0, %v7172_v19 }
 0x2e0   : > { %5824 = vmatprep.subr.bf16.mxu0 %v7172_v19 }
 0x2e2   : > { %5809 = vmatmul.mubr.msk.bf16.vlgmr.msra.gmra.mxu1 %vm1543_vm1, %v1482_v25 }
 0x2e3   : > { %5820 = vmatprep.mubr.msk.bf16.mxu1 %vm7173_vm0, %v7172_v19 }
 0x317   : > { %v1584_v28 = vpop.f32.mrf.mxu0 }
 0x318   : > { %v1912_v29 = vmul.f32 0.25, %v1584_v28 }
 0x319   : > { %v5768_v31 = vpop.f32.mrf.mxu0 }
 0x31a   : > { %v7748_v33 = vadd.f32 %v1912_v29, %v1172_v27 }
 0x31b   : > { %v1587_v34 = vpop.f32.mrf.mxu0 }
 0x31c   : > { %v1929_v35 = vsel %vm1928_vm3, %v7748_v33, -inf }
 0x31d   : > { %1930 = vmax.xlane.f32.xlu0 %v1929_v35  ;;  %v5769_v36 = vpop.f32.mrf.mxu0 }
 0x38a   : > { %v1630_v37 = vpop.f32.mrf.mxu1 }
 0x38b   : > { %v1913_v38 = vmul.f32 0.25, %v1630_v37 }
 0x38c   : > { %v5774_v39 = vpop.f32.mrf.mxu1 }
 0x38d   : > { %v7752_v40 = vadd.f32 %v1913_v38, %v1172_v27 }
 0x38e   : > { %v1633_v41 = vpop.f32.mrf.mxu1  ;;  %v1676_v42 = vpop.f32.mrf.mxu0 }
 0x38f   : > { %v1914_v43 = vmul.f32 0.25, %v1676_v42  ;;  %v1932_v44 = vsel %vm1928_vm3, %v7752_v40, -inf }
 0x390   : > { %1933 = vmax.xlane.f32.xlu1 %v1932_v44  ;;  %v5775_v45 = vpop.f32.mrf.mxu1  ;;  %v5780_v46 = vpop.f32.mrf.mxu0 }
 0x391   : > { %v1922_v47 = vadd.f32 %v1914_v43, %v1172_v27 }
 0x392   : > { %v1679_v48 = vpop.f32.mrf.mxu0  ;;  %v1722_v49 = vpop.f32.mrf.mxu1 }
 0x393   : > { %v1915_v50 = vmul.f32 0.25, %v1722_v49  ;;  %v1935_v51 = vsel %vm1928_vm3, %v1922_v47, -inf }
 0x394   : > { %v5786_v52 = vpop.f32.mrf.mxu1  ;;  %1936 = vmax.xlane.f32.xlu0 %v1935_v51  ;;  %v5781_v53 = vpop.f32.mrf.mxu0 }
 0x395   : > { %v7757_v54 = vadd.f32 %v1915_v50, %v1172_v27 }
 0x396   : > { %v1725_v55 = vpop.f32.mrf.mxu1  ;;  %v1768_v56 = vpop.f32.mrf.mxu0 }
 0x397   : > { %v1916_v57 = vmul.f32 0.25, %v1768_v56  ;;  %v1938_v58 = vsel %vm1928_vm3, %v7757_v54, -inf }
 0x398   : > { %v5787_v59 = vpop.f32.mrf.mxu1  ;;  %1939 = vmax.xlane.f32.xlu0 %v1938_v58  ;;  %v5792_v60 = vpop.f32.mrf.mxu0 }
 0x399   : > { %v1924_v61 = vadd.f32 %v1916_v57, %v1172_v27 }
 0x39a   : > { %v1771_v62 = vpop.f32.mrf.mxu0  ;;  %v1814_v63 = vpop.f32.mrf.mxu1 }
 0x39b   : > { %v1917_v1 = vmul.f32 0.25, %v1814_v63  ;;  %v1941_v2 = vsel %vm1928_vm3, %v1924_v61, -inf }
 0x39c   : > { %v5798_v3 = vpop.f32.mrf.mxu1  ;;  %1942 = vmax.xlane.f32.xlu1 %v1941_v2  ;;  %v5793_v4 = vpop.f32.mrf.mxu0 }
 0x39d   : > { %v7762_v5 = vadd.f32 %v1917_v1, %v1172_v27 }
 0x39e   : > { %v1817_v6 = vpop.f32.mrf.mxu1  ;;  %v1860_v7 = vpop.f32.mrf.mxu0 }
 0x39f   : > { %v1918_v8 = vmul.f32 0.25, %v1860_v7  ;;  %v1944_v9 = vsel %vm1928_vm3, %v7762_v5, -inf }
 0x3a0   : > { %v5799_v10 = vpop.f32.mrf.mxu1  ;;  %1945 = vmax.xlane.f32.xlu0 %v1944_v9  ;;  %v5804_v11 = vpop.f32.mrf.mxu0 }
 0x3a1   : > { %v1926_v12 = vadd.f32 %v1918_v8, %v1172_v27 }
 0x3a2   : > { %v1863_v13 = vpop.f32.mrf.mxu0  ;;  %v1906_v15 = vpop.f32.mrf.mxu1 }
 0x3a3   : > { %v1919_v16 = vmul.f32 0.25, %v1906_v15  ;;  %v1947_v17 = vsel %vm1928_vm3, %v1926_v12, -inf }
 0x3a4   : > { %v5810_v18 = vpop.f32.mrf.mxu1  ;;  %1948 = vmax.xlane.f32.xlu1 %v1947_v17  ;;  %v5805_v20 = vpop.f32.mrf.mxu0 }
 0x3a5   : > { %v1927_v21 = vadd.f32 %v1919_v16, %v1172_v27 }
 0x3a6   : > { %v1909_v22 = vpop.f32.mrf.mxu1  ;;  %v1931_v25 = vpop.xlane.xlu0 %1930 }
 0x3a7   : > { %v1950_v23 = vsel %vm1928_vm3, %v1927_v21, -inf  ;;  %v1953_v26 = vsub.f32 %v7748_v33, %v1931_v25 }
 0x3a8   : > { %v5811_v24 = vpop.f32.mrf.mxu1  ;;  %1951 = vmax.xlane.f32.xlu0 %v1950_v23 }
 0x3a9   : > { %v1961_v28 = vmul.f32 1.442695, %v1953_v26 }
 0x3ab   : > { %6446 = vpow2.f32 %v1961_v28 }
 0x3b5   : > { %1517 = vrot.lane.b32.xlu1 %v7722_v14, %s7176_s6 }
 0x3b8   : > { %v7773_v29 = vpop.eup %6446 }
 0x3b9   : > { %v1977_v27 = vsel %vm1928_vm3, %v7773_v29, 0.0 }
 0x3be   : > { %1514 = vrot.lane.b32.xlu0 %v7722_v14, %s7174_s10 }
 0x3d9   : > { %1978 = vadd.xlane.f32.xlu1 %v1977_v27 }
 0x3ea   : > { %1523 = vrot.lane.b32.xlu1 %v7722_v14, %s7177_s14 }
 0x419   : > { %v1934_v31 = vpop.xlane.xlu1 %1933 }
 0x41a   : > { %v1954_v34 = vsub.f32 %v7752_v40, %v1934_v31 }
 0x41c   : > { %v1963_v35 = vmul.f32 1.442695, %v1954_v34 }
 0x41d   : > { %v1937_v36 = vpop.xlane.xlu0 %1936 }
 0x41e   : > { %6448 = vpow2.f32 %v1963_v35  ;;  %v1955_v37 = vsub.f32 %v1922_v47, %v1937_v36 }
 0x420   : > { %v1965_v38 = vmul.f32 1.442695, %v1955_v37 }
 0x421   : > { %v1940_v42 = vpop.xlane.xlu0 %1939 }
 0x422   : > { %6450 = vpow2.f32 %v1965_v38  ;;  %v1956_v63 = vsub.f32 %v7757_v54, %v1940_v42 }
 0x424   : > { %v1967_v1 = vmul.f32 1.442695, %v1956_v63 }
 0x425   : > { %v1943_v33 = vpop.xlane.xlu1 %1942 }
 0x426   : > { %v1957_v39 = vsub.f32 %v1924_v61, %v1943_v33 }
 0x428   : > { %v1969_v41 = vmul.f32 1.442695, %v1957_v39 }
 0x429   : > { %v1946_v45 = vpop.xlane.xlu0 %1945 }
 0x42a   : > { %6452 = vpow2.f32 %v1969_v41  ;;  %v1958_v2 = vsub.f32 %v7762_v5, %v1946_v45 }
 0x42b   : > { %v7780_v43 = vpop.eup %6448 }
 0x42c   : > { %v1980_v44 = vsel %vm1928_vm3, %v7780_v43, 0.0  ;;  %v1971_v3 = vmul.f32 1.442695, %v1958_v2 }
 0x42d   : > { %1981 = vadd.xlane.f32.xlu0 %v1980_v44  ;;  %v1949_v46 = vpop.xlane.xlu1 %1948 }
 0x42e   : > { %v1959_v40 = vsub.f32 %v1926_v12, %v1949_v46 }
 0x42f   : > { %v7784_v48 = vpop.eup %6450 }
 0x430   : > { %v1973_v49 = vmul.f32 1.442695, %v1959_v40  ;;  %v1983_v47 = vsel %vm1928_vm3, %v7784_v48, 0.0 }
 0x431   : > { %v1952_v50 = vpop.xlane.xlu0 %1951  ;;  %1984 = vadd.xlane.f32.xlu1 %v1983_v47  ;;  %v1518_v6 = vpop.permute.xlu1 %1517 }
 0x432   : > { %6454 = vpow2.f32 %v1973_v49  ;;  %v1960_v51 = vsub.f32 %v1927_v21, %v1952_v50  ;;  %v1537_v10 = vpack.c.bf16 %v1518_v6, %v1518_v6 }
 0x434   : > { %v1975_v52 = vmul.f32 1.442695, %v1960_v51  ;;  %v2130_v13 = vsel %vm2036_vm2, %v1537_v10, 0 }
 0x435   : > { %v1515_v53 = vpop.permute.xlu0 %1514 }
 0x436   : > { %6456 = vpow2.f32 %v1975_v52  ;;  %v1536_v55 = vpack.c.bf16 %v1515_v53, %v1515_v53 }
 0x437   : > { %v7788_v56 = vpop.eup %6452  ;;  %6458 = vpow2.f32 %v1967_v1  ;;  %v6360_v1 = vld [vmem:[#allocation8 + $0x10] sm:$0xff]  }
 0x438   : > { %v2084_v57 = vsel %vm2036_vm2, %v1536_v55, 0  ;;  %v1989_v58 = vsel %vm1928_vm3, %v7788_v56, 0.0  ;;  %6460 = vpow2.f32 %v1971_v3 }
 0x439   : > { %5819 = vmatpush3.bf16.msra.mxu1 %v2084_v57  ;;  %1990 = vadd.xlane.f32.xlu1 %v1989_v58 }
 0x43a   : > { %5830 = vmatprep.subr.bf16.mxu1 %v7172_v19 }
 0x43f   : > { %v7794_v59 = vpop.eup %6454 }
 0x440   : > { %v1995_v60 = vsel %vm1928_vm3, %v7794_v59, 0.0 }
 0x441   : > { %1996 = vadd.xlane.f32.xlu1 %v1995_v60 }
 0x443   : > { %v7798_v61 = vpop.eup %6456  ;;  %1520 = vrot.lane.b32.xlu0 %v7722_v14, %s7175_s11 }
 0x444   : > { %v1998_v62 = vsel %vm1928_vm3, %v7798_v61, 0.0  ;;  %v7808_v4 = vpop.eup %6458 }
 0x445   : > { %1999 = vadd.xlane.f32.xlu1 %v1998_v62  ;;  %v1986_v7 = vsel %vm1928_vm3, %v7808_v4, 0.0  ;;  %v7812_v8 = vpop.eup %6460 }
 0x446   : > { %v1992_v5 = vsel %vm1928_vm3, %v7812_v8, 0.0 }
 0x456   : > { %1529 = vrot.lane.b32.xlu1 %v7722_v14, %s8295_s13  ;;  %s1158_s13 = scalar_lea.vmem %s8373_s5, %s7643_s3  ;;  %s8374_s5 = sld [smem:[#allocation60_spill]] }
 0x462   : > { %1987 = vadd.xlane.f32.xlu0 %v1986_v7  ;;  %v1979_v54 = vpop.xlane.xlu1 %1978 }
 0x463   : > { %6462 = vrcp.f32 %v1979_v54 }
 0x466   : > { %1993 = vadd.xlane.f32.xlu0 %v1992_v5  ;;  %v1524_v15 = vpop.permute.xlu1 %1523 }
 0x467   : > { %v1539_v26 = vpack.c.bf16 %v1524_v15, %v1524_v15 }
 0x469   : > { %v2222_v31 = vsel %vm2036_vm2, %v1539_v26, 0 }
 0x470   : > { %v6463_v9 = vpop.eup %6462 }
 0x471   : > { %v2002_v11 = vmul.f32 %v6463_v9, %v7773_v29 }
 0x473   : > { %2017 = vst.msk [vmem:[%s7820_s25] sm:$0xff] %vm1928_vm3, %v2002_v11  ;;  %v2025_v12 = vpack.c.bf16 %v2002_v11, %v2002_v11  ;;  %v6361_v11 = vld [vmem:[#allocation8 + $0x20] sm:$0xff]  }
 0x475   : > { %5815 = vmatmul.mubr.msk.bf16.vlgmr.msra.gmra.mxu0 %vm1928_vm3, %v2025_v12 }
 0x476   : > { %5825 = vmatpush3.bf16.msra.mxu0 %v2130_v13  ;;  %5826 = vmatprep.mubr.msk.bf16.mxu0 %vm7173_vm0, %v7172_v19 }
 0x477   : > { %5836 = vmatprep.subr.bf16.mxu0 %v7172_v19 }
 0x47c   : > { %1526 = vrot.lane.b32.xlu0 %v7722_v14, %s7178_s16 }
 0x480   : > { %1532 = vrot.lane.b32.xlu0 %v7722_v14, %s8372_s26 }
 0x4b6   : > { %v1982_v16 = vpop.xlane.xlu0 %1981 }
 0x4b7   : > { %6464 = vrcp.f32 %v1982_v16 }
 0x4ba   : > { %v1985_v17 = vpop.xlane.xlu1 %1984  ;;  %v1521_v18 = vpop.permute.xlu0 %1520 }
 0x4bb   : > { %6466 = vrcp.f32 %v1985_v17  ;;  %v1538_v22 = vpack.c.bf16 %v1521_v18, %v1521_v18 }
 0x4bd   : > { %v2176_v14 = vsel %vm2036_vm2, %v1538_v22, 0 }
 0x4c2   : > { %v1991_v20 = vpop.xlane.xlu1 %1990 }
 0x4c3   : > { %6468 = vrcp.f32 %v1991_v20  ;;  %v6362_v20 = vld [vmem:[#allocation8 + $0x30] sm:$0xff]  }
 0x4c4   : > { %v6465_v21 = vpop.eup %6464 }
 0x4c5   : > { %v2004_v23 = vmul.f32 %v6465_v21, %v7780_v43  ;;  %v6358_v43 = vld [vmem:[#allocation8] sm:$0xff]  }
 0x4c7   : > { %2018 = vst.msk [vmem:[%s7820_s25 + $0x8] sm:$0xff] %vm1928_vm3, %v2004_v23  ;;  %v2026_v24 = vpack.c.bf16 %v2004_v23, %v2004_v23 }
 0x4c8   : > { %v6467_v25 = vpop.eup %6466 }
 0x4c9   : > { %5821 = vmatmul.mubr.msk.bf16.vlgmr.msra.gmra.mxu1 %vm1928_vm3, %v2026_v24  ;;  %v2006_v28 = vmul.f32 %v6467_v25, %v7784_v48 }
 0x4ca   : > { %5831 = vmatpush3.bf16.msra.mxu1 %v2176_v14  ;;  %v1997_v29 = vpop.xlane.xlu1 %1996  ;;  %5832 = vmatprep.mubr.msk.bf16.mxu1 %vm7173_vm0, %v7172_v19 }
 0x4cb   : > { %6470 = vrcp.f32 %v1997_v29  ;;  %2019 = vst.msk [vmem:[%s7820_s25 + $0x10] sm:$0xff] %vm1928_vm3, %v2006_v28  ;;  %v2027_v27 = vpack.c.bf16 %v2006_v28, %v2006_v28  ;;  %5842 = vmatprep.subr.bf16.mxu1 %v7172_v19 }
 0x4cd   : > { %5827 = vmatmul.mubr.msk.bf16.vlgmr.msra.gmra.mxu0 %vm1928_vm3, %v2027_v27 }
 0x4ce   : > { %5837 = vmatpush3.bf16.msra.mxu0 %v2222_v31  ;;  %v2000_v34 = vpop.xlane.xlu1 %1999  ;;  %5838 = vmatprep.mubr.msk.bf16.mxu0 %vm7173_vm0, %v7172_v19  ;;  %v6364_v31 = vld [vmem:[#allocation8 + $0x28] sm:$0xff]  }
 0x4cf   : > { %6472 = vrcp.f32 %v2000_v34  ;;  %5848 = vmatprep.subr.bf16.mxu0 %v7172_v19 }
 0x4d0   : > { %v6469_v35 = vpop.eup %6468 }
 0x4d1   : > { %v2010_v36 = vmul.f32 %v6469_v35, %v7788_v56 }
 0x4d2   : > { %v1530_v37 = vpop.permute.xlu1 %1529 }
 0x4d3   : > { %v1541_v38 = vpack.c.bf16 %v1530_v37, %v1530_v37  ;;  %2021 = vst.msk [vmem:[%s7820_s25 + $0x20] sm:$0xff] %vm1928_vm3, %v2010_v36  ;;  %v2029_v33 = vpack.c.bf16 %v2010_v36, %v2010_v36 }
 0x4d5   : > { %v2314_v39 = vsel %vm2036_vm2, %v1541_v38, 0  ;;  %5839 = vmatmul.mubr.msk.bf16.vlgmr.msra.gmra.mxu0 %vm1928_vm3, %v2029_v33  ;;  %v6365_v33 = vld [vmem:[#allocation8 + $0x38] sm:$0xff]  }
 0x4d6   : > { %5849 = vmatpush3.bf16.msra.mxu0 %v2314_v39  ;;  %5850 = vmatprep.mubr.msk.bf16.mxu0 %vm7173_vm0, %v7172_v19 }
 0x4d7   : > { %5860 = vmatprep.subr.bf16.mxu0 %v7172_v19 }
 0x4d8   : > { %v6471_v41 = vpop.eup %6470 }
 0x4d9   : > { %v2014_v42 = vmul.f32 %v6471_v41, %v7794_v59 }
 0x4db   : > { %2023 = vst.msk [vmem:[%s7820_s25 + $0x30] sm:$0xff] %vm1928_vm3, %v2014_v42  ;;  %v2031_v44 = vpack.c.bf16 %v2014_v42, %v2014_v42 }
 0x4dc   : > { %v6473_v45 = vpop.eup %6472 }
 0x4dd   : > { %5851 = vmatmul.mubr.msk.bf16.vlgmr.msra.gmra.mxu0 %vm1928_vm3, %v2031_v44  ;;  %v2016_v46 = vmul.f32 %v6473_v45, %v7798_v61  ;;  %v6359_v61 = vld [vmem:[#allocation8 + $0x8] sm:$0xff]  }
 0x4de   : > { %5861 = vmatpush3.bf16.msra.mxu0 %v6358_v43  ;;  %5862 = vmatprep.mubr.msk.bf16.mxu0 %vm7173_vm0, %v7172_v19 }
 0x4df   : > { %2024 = vst.msk [vmem:[%s7820_s25 + $0x38] sm:$0xff] %vm1928_vm3, %v2016_v46  ;;  %5872 = vmatprep.subr.bf16.mxu0 %v7172_v19  ;;  %v2032_v62 = vpack.c.bf16 %v2016_v46, %v2016_v46 }
 0x4eb   : > { %v1988_v40 = vpop.xlane.xlu0 %1987 }
 0x4ec   : > { %6474 = vrcp.f32 %v1988_v40 }
 0x4ef   : > { %v1994_v48 = vpop.xlane.xlu0 %1993 }
 0x4f0   : > { %6476 = vrcp.f32 %v1994_v48 }
 0x4f3   : > { %v1527_v49 = vpop.permute.xlu0 %1526 }
 0x4f4   : > { %v1540_v50 = vpack.c.bf16 %v1527_v49, %v1527_v49 }
 0x4f6   : > { %v2268_v55 = vsel %vm2036_vm2, %v1540_v50, 0 }
 0x4f7   : > { %v1533_v57 = vpop.permute.xlu0 %1532 }
 0x4f8   : > { %v1542_v58 = vpack.c.bf16 %v1533_v57, %v1533_v57  ;;  %v6374_v57 = vld [vmem:[#allocation16 + $0x54] ss:$8 sps:$4 sm:$0xff]  }
 0x4f9   : > { %v6475_v47 = vpop.eup %6474 }
 0x4fa   : > { %v2008_v51 = vmul.f32 %v6475_v47, %v7808_v4  ;;  %v2360_v60 = vsel %vm2036_vm2, %v1542_v58, 0  ;;  %v6372_v58 = vld [vmem:[#allocation16 + $0x50] ss:$8 sps:$4 sm:$0xff]  }
 0x4fc   : > { %2020 = vst.msk [vmem:[%s7820_s25 + $0x18] sm:$0xff] %vm1928_vm3, %v2008_v51  ;;  %v2028_v52 = vpack.c.bf16 %v2008_v51, %v2008_v51 }
 0x4fd   : > { %v6477_v53 = vpop.eup %6476 }
 0x4fe   : > { %5833 = vmatmul.mubr.msk.bf16.vlgmr.msra.gmra.mxu1 %vm1928_vm3, %v2028_v52  ;;  %v2012_v56 = vmul.f32 %v6477_v53, %v7812_v8  ;;  %v6363_v8 = vld [vmem:[#allocation8 + $0x18] sm:$0xff]  }
 0x4ff   : > { %5843 = vmatpush3.bf16.msra.mxu1 %v2268_v55  ;;  %5844 = vmatprep.mubr.msk.bf16.mxu1 %vm7173_vm0, %v7172_v19  ;;  %v6366_v52 = vld [vmem:[#allocation16 + $0x70] ss:$8 sps:$4 sm:$0xff]   ;;  %v6368_v53 = vld [vmem:[#allocation16 + $0x74] ss:$8 sps:$4 sm:$0xff]   ;;  %v6371_v55 = vld [vmem:[#allocation16 + $0x64] ss:$8 sps:$4 sm:$0xff]  }
 0x500   : > { %5854 = vmatprep.subr.bf16.mxu1 %v7172_v19  ;;  %2022 = vst.msk [vmem:[%s7820_s25 + $0x28] sm:$0xff] %vm1928_vm3, %v2012_v56  ;;  %v2030_v59 = vpack.c.bf16 %v2012_v56, %v2012_v56  ;;  %v6369_v56 = vld [vmem:[#allocation16 + $0x60] ss:$8 sps:$4 sm:$0xff]  }
 0x506   : > { %5845 = vmatmul.mubr.msk.bf16.vlgmr.msra.gmra.mxu1 %vm1928_vm3, %v2030_v59  ;;  %v6377_v59 = vld [vmem:[#allocation16 + $0x44] ss:$8 sps:$4 sm:$0xff]  }
 0x507   : > { %5855 = vmatpush3.bf16.msra.mxu1 %v2360_v60  ;;  %5856 = vmatprep.mubr.msk.bf16.mxu1 %vm7173_vm0, %v7172_v19  ;;  %v6375_v60 = vld [vmem:[#allocation16 + $0x40] ss:$8 sps:$4 sm:$0xff]  }
 0x508   : > { %5866 = vmatprep.subr.bf16.mxu1 %v7172_v19 }
 0x50e   : > { %5857 = vmatmul.mubr.msk.bf16.vlgmr.msra.gmra.mxu1 %vm1928_vm3, %v2032_v62  ;;  %v6378_v62 = vld [vmem:[#allocation16 + $0x30] ss:$8 sps:$4 sm:$0xff]  }
 0x50f   : > { %5867 = vmatpush3.bf16.msra.mxu1 %v6359_v61  ;;  %5868 = vmatprep.mubr.msk.bf16.mxu1 %vm7173_vm0, %v7172_v19  ;;  %v6380_v61 = vld [vmem:[#allocation16 + $0x34] ss:$8 sps:$4 sm:$0xff]  }
 0x510   : > { %5878 = vmatprep.subr.bf16.mxu1 %v7172_v19 }
 0x535   : > { %v2074_v63 = vpop.f32.mrf.mxu0 }
 0x536   : > { %v2402_v2 = vpack.c.bf16 %v2074_v63, %v2074_v63  ;;  %v6383_v63 = vld [vmem:[#allocation16 + $0x24] ss:$8 sps:$4 sm:$0xff]  }
 0x537   : > { %v5816_v3 = vpop.f32.mrf.mxu0 }
 0x538   : > { %5863 = vmatmul.mubr.msk.bf16.vlgmr.msra.gmra.mxu0 %vm1543_vm1, %v2402_v2  ;;  %v6386_v2 = vld [vmem:[#allocation16 + $0x14] ss:$8 sps:$4 sm:$0xff]   ;;  %v6384_v3 = vld [vmem:[#allocation16 + $0x10] ss:$8 sps:$4 sm:$0xff]  }
 0x539   : > { %v2077_v4 = vpop.f32.mrf.mxu0  ;;  %5873 = vmatpush3.bf16.msra.mxu0 %v6360_v1  ;;  %5874 = vmatprep.mubr.msk.bf16.mxu0 %vm7173_vm0, %v7172_v19  ;;  %v6381_v1 = vld [vmem:[#allocation16 + $0x20] ss:$8 sps:$4 sm:$0xff]  }
 0x53a   : > { %5884 = vmatprep.subr.bf16.mxu0 %v7172_v19  ;;  %v6389_v4 = vld [vmem:[#allocation16 + $0x4] ss:$8 sps:$4 sm:$0xff]  }
 0x53b   : > { %v5817_v6 = vpop.f32.mrf.mxu0 }
 0x53c   : > { %v6387_v6 = vld [vmem:[#allocation16] ss:$8 sps:$4 sm:$0xff]  }
 0x589   : > { %v2120_v7 = vpop.f32.mrf.mxu1 }
 0x58a   : > { %v2403_v54 = vpack.c.bf16 %v2120_v7, %v2120_v7  ;;  %v1169_v7 = vld [vmem:[%s7593_s17] sm:$0xff]  ;;  %s8375_s17 = smov 32  }
 0x58b   : > { %v5822_v5 = vpop.f32.mrf.mxu1 }
 0x58c   : > { %5869 = vmatmul.mubr.msk.bf16.vlgmr.msra.gmra.mxu1 %vm1543_vm1, %v2403_v54  ;;  %v2964_v5 = vpack.c.bf16 %v1169_v7, %v1169_v7 }
 0x58d   : > { %v2123_v9 = vpop.f32.mrf.mxu1  ;;  %v2166_v10 = vpop.f32.mrf.mxu0  ;;  %5879 = vmatpush3.bf16.msra.mxu1 %v6363_v8  ;;  %5880 = vmatprep.mubr.msk.bf16.mxu1 %vm7173_vm0, %v7172_v19 }
 0x58e   : > { %v2404_v12 = vpack.c.bf16 %v2166_v10, %v2166_v10  ;;  %5890 = vmatprep.subr.bf16.mxu1 %v7172_v19 }
 0x58f   : > { %v5823_v13 = vpop.f32.mrf.mxu1  ;;  %v5828_v15 = vpop.f32.mrf.mxu0 }
 0x590   : > { %5875 = vmatmul.mubr.msk.bf16.vlgmr.msra.gmra.mxu0 %vm1543_vm1, %v2404_v12 }
 0x591   : > { %v2169_v16 = vpop.f32.mrf.mxu0  ;;  %5885 = vmatpush3.bf16.msra.mxu0 %v6361_v11  ;;  %5886 = vmatprep.mubr.msk.bf16.mxu0 %vm7173_vm0, %v7172_v19 }
 0x592   : > { %5896 = vmatprep.subr.bf16.mxu0 %v7172_v19 }
 0x593   : > { %v5829_v17 = vpop.f32.mrf.mxu0 }
 0x595   : > { %v2258_v18 = vpop.f32.mrf.mxu0 }
 0x596   : > { %v2406_v21 = vpack.c.bf16 %v2258_v18, %v2258_v18 }
 0x597   : > { %v5840_v22 = vpop.f32.mrf.mxu0 }
 0x598   : > { %5887 = vmatmul.mubr.msk.bf16.vlgmr.msra.gmra.mxu0 %vm1543_vm1, %v2406_v21 }
 0x599   : > { %v2261_v23 = vpop.f32.mrf.mxu0  ;;  %5897 = vmatpush3.bf16.msra.mxu0 %v6362_v20  ;;  %5898 = vmatprep.mubr.msk.bf16.mxu0 %vm7173_vm0, %v7172_v19 }
 0x59a   : > { %5908 = vmatprep.subr.bf16.mxu0 %v7172_v19 }
 0x59b   : > { %v5841_v24 = vpop.f32.mrf.mxu0 }
 0x59d   : > { %v2350_v25 = vpop.f32.mrf.mxu0 }
 0x59e   : > { %v2408_v26 = vpack.c.bf16 %v2350_v25, %v2350_v25 }
 0x59f   : > { %v5852_v14 = vpop.f32.mrf.mxu0 }
 0x5a0   : > { %5899 = vmatmul.mubr.msk.bf16.vlgmr.msra.gmra.mxu0 %vm1543_vm1, %v2408_v26 }
 0x5a1   : > { %v2353_v28 = vpop.f32.mrf.mxu0  ;;  %5924 = vmatprep.mubr.msk.bf16.mxu0 %vm7173_vm0, %v7172_v19 }
 0x5a3   : > { %v5853_v29 = vpop.f32.mrf.mxu0 }
 0x5be   : > { %v2212_v27 = vpop.f32.mrf.mxu1 }
 0x5bf   : > { %v2405_v34 = vpack.c.bf16 %v2212_v27, %v2212_v27 }
 0x5c0   : > { %v5834_v35 = vpop.f32.mrf.mxu1 }
 0x5c1   : > { %5881 = vmatmul.mubr.msk.bf16.vlgmr.msra.gmra.mxu1 %vm1543_vm1, %v2405_v34 }
 0x5c2   : > { %v2215_v36 = vpop.f32.mrf.mxu1  ;;  %5891 = vmatpush3.bf16.msra.mxu1 %v6364_v31  ;;  %5892 = vmatprep.mubr.msk.bf16.mxu1 %vm7173_vm0, %v7172_v19 }
 0x5c3   : > { %5902 = vmatprep.subr.bf16.mxu1 %v7172_v19 }
 0x5c4   : > { %v5835_v37 = vpop.f32.mrf.mxu1 }
 0x5c6   : > { %v2304_v38 = vpop.f32.mrf.mxu1 }
 0x5c7   : > { %v2407_v39 = vpack.c.bf16 %v2304_v38, %v2304_v38 }
 0x5c8   : > { %v5846_v41 = vpop.f32.mrf.mxu1 }
 0x5c9   : > { %5893 = vmatmul.mubr.msk.bf16.vlgmr.msra.gmra.mxu1 %vm1543_vm1, %v2407_v39  ;;  %v5502_v41 = vld [vmem:[#allocation10] ss:$0 sm:$0xff] }
 0x5ca   : > { %v2307_v42 = vpop.f32.mrf.mxu1  ;;  %5903 = vmatpush3.bf16.msra.mxu1 %v6365_v33  ;;  %5904 = vmatprep.mubr.msk.bf16.mxu1 %vm7173_vm0, %v7172_v19 }
 0x5cb   : > { %3073 = vmatprep.subr.bf16.mxu1 %v6368_v53  ;;  %v1170_v53 = vld [vmem:[%s1158_s13] sm:$0xff]  ;;  %s8376_s13 = sld [smem:[#allocation55_spill]] }
 0x5cc   : > { %v5847_v43 = vpop.f32.mrf.mxu1 }
 0x5ce   : > { %v2396_v44 = vpop.f32.mrf.mxu1 }
 0x5cf   : > { %v2409_v45 = vpack.c.bf16 %v2396_v44, %v2396_v44 }
 0x5d0   : > { %v5858_v46 = vpop.f32.mrf.mxu1 }
 0x5d1   : > { %5905 = vmatmul.mubr.msk.bf16.vlgmr.msra.gmra.mxu1 %vm1543_vm1, %v2409_v45 }
 0x5d2   : > { %v2399_v40 = vpop.f32.mrf.mxu1  ;;  %3105 = vmatprep.mubr.bf16.mxu1 %v7171_v0  ;;  %3074 = vmatpush1.bf16.msra.mxu1 %v6366_v52  ;;  %v6392_v52 = vld [vmem:[#allocation13 + $0x28] sm:$0xff]  }
 0x5d3   : > { %3075 = vmatprep.subr.bf16.mxu1 %v6371_v55  ;;  %v6516_v40 = vld [vmem:[%s7649_s28] sm:$0xff]  ;;  %v6393_v55 = vld [vmem:[#allocation13 + $0x20] sm:$0xff]  }
 0x5d4   : > { %v5859_v48 = vpop.f32.mrf.mxu1 }
 0x5d6   : > { %3076 = vmatpush1.bf16.msra.mxu1 %v6369_v56  ;;  %v6394_v56 = vld [vmem:[#allocation13 + $0x18] sm:$0xff]  }
 0x5d7   : > { %3077 = vmatprep.subr.bf16.mxu1 %v6374_v57  ;;  %v6395_v57 = vld [vmem:[#allocation13 + $0x10] sm:$0xff]  }
 0x5da   : > { %3078 = vmatpush1.bf16.msra.mxu1 %v6372_v58  ;;  %v6396_v58 = vld [vmem:[#allocation13 + $0x8] sm:$0xff]  }
 0x5db   : > { %3079 = vmatprep.subr.bf16.mxu1 %v6377_v59  ;;  %v6397_v59 = vld [vmem:[#allocation13] sm:$0xff]  }
 0x5de   : > { %3080 = vmatpush1.bf16.msra.mxu1 %v6375_v60  ;;  %v2981_v60 = vld [vmem:[#allocation17] sm:$0x3] }
 0x5df   : > { %3081 = vmatprep.subr.bf16.mxu1 %v6380_v61  ;;  %v2986_v61 = vrot.slane %v2981_v60, %v7671_v30 }
 0x5e2   : > { %3082 = vmatpush1.bf16.msra.mxu1 %v6378_v62  ;;  %v2990_v62 = vrot.slane %v2981_v60, %v7676_v32 }
 0x5e3   : > { %3083 = vmatprep.subr.bf16.mxu1 %v6383_v63 }
 0x5e6   : > { %3084 = vmatpush1.bf16.msra.mxu1 %v6381_v1 }
 0x5e7   : > { %3085 = vmatprep.subr.bf16.mxu1 %v6386_v2 }
 0x5ea   : > { %3086 = vmatpush1.bf16.msra.mxu1 %v6384_v3 }
 0x5eb   : > { %3087 = vmatprep.subr.bf16.mxu1 %v6389_v4 }
 0x5ee   : > { %3088 = vmatpush1.bf16.msra.mxu1 %v6387_v6 }
 0x5ef   : > { %5934 = vmatprep.subr.bf16.mxu1 %v7172_v19 }
 0x5f1   : > { %3106 = vmatmul.mubr.bf16.vlgmr.msra.gmra.mxu1 %v2964_v5 }
 0x5f2   : > { %5936 = vmatprep.mubr.msk.bf16.mxu1 %vm7173_vm0, %v7172_v19 }
 0x5f8   : > { %v2453_v49 = vpop.f32.mrf.mxu0 }
 0x5fa   : > { %v5864_v47 = vpop.f32.mrf.mxu0 }
 0x5fc   : > { %v2456_v50 = vpop.f32.mrf.mxu0 }
 0x5fd   : > { %v6390_v50 = vld [vmem:[#allocation13 + $0x38] sm:$0xff]  }
 0x5fe   : > { %v5865_v51 = vpop.f32.mrf.mxu0  ;;  %5909 = vmatpush3.bf16.msra.mxu0 %v6390_v50 }
 0x5ff   : > { %5910 = vmatprep.subr.bf16.mxu0 %v7172_v19  ;;  %v6391_v51 = vld [vmem:[#allocation13 + $0x30] sm:$0xff]  }
 0x602   : > { %5911 = vmatpush3.bf16.msra.mxu0 %v6391_v51 }
 0x603   : > { %5912 = vmatprep.subr.bf16.mxu0 %v7172_v19 }
 0x606   : > { %5913 = vmatpush3.bf16.msra.mxu0 %v6392_v52 }
 0x607   : > { %5914 = vmatprep.subr.bf16.mxu0 %v7172_v19 }
 0x60a   : > { %5915 = vmatpush3.bf16.msra.mxu0 %v6393_v55 }
 0x60b   : > { %5916 = vmatprep.subr.bf16.mxu0 %v7172_v19 }
 0x60e   : > { %5917 = vmatpush3.bf16.msra.mxu0 %v6394_v56 }
 0x60f   : > { %5918 = vmatprep.subr.bf16.mxu0 %v7172_v19 }
 0x612   : > { %5919 = vmatpush3.bf16.msra.mxu0 %v6395_v57 }
 0x613   : > { %5920 = vmatprep.subr.bf16.mxu0 %v7172_v19 }
 0x616   : > { %5921 = vmatpush3.bf16.msra.mxu0 %v6396_v58 }
 0x617   : > { %5922 = vmatprep.subr.bf16.mxu0 %v7172_v19 }
 0x61a   : > { %5923 = vmatpush3.bf16.msra.mxu0 %v6397_v59 }
 0x61b   : > { %5928 = vmatprep.subr.bf16.mxu0 %v7172_v19 }
 0x64c   : > { %v2502_v8 = vpop.f32.mrf.mxu1 }
 0x64d   : > { %v2802_v26 = vadd.f32 %v2502_v8, %v2453_v49 }
 0x64e   : > { %v5870_v54 = vpop.f32.mrf.mxu1 }
 0x650   : > { %v2505_v9 = vpop.f32.mrf.mxu1  ;;  %v2551_v10 = vpop.f32.mrf.mxu0 }
 0x651   : > { %v2803_v28 = vadd.f32 %v2802_v26, %v2551_v10 }
 0x652   : > { %v5871_v11 = vpop.f32.mrf.mxu1  ;;  %v5876_v12 = vpop.f32.mrf.mxu0 }
 0x654   : > { %v2554_v13 = vpop.f32.mrf.mxu0 }
 0x656   : > { %v5877_v15 = vpop.f32.mrf.mxu0 }
 0x658   : > { %v2649_v16 = vpop.f32.mrf.mxu0 }
 0x65a   : > { %v5888_v17 = vpop.f32.mrf.mxu0 }
 0x65c   : > { %v2652_v18 = vpop.f32.mrf.mxu0 }
 0x65d   : > { %v5504_v18 = vld [vmem:[#allocation11] ss:$0 sm:$0xff] }
 0x65e   : > { %v5889_v20 = vpop.f32.mrf.mxu0 }
 0x660   : > { %v2747_v21 = vpop.f32.mrf.mxu0 }
 0x662   : > { %v5900_v22 = vpop.f32.mrf.mxu0 }
 0x664   : > { %v2750_v23 = vpop.f32.mrf.mxu0 }
 0x666   : > { %v5901_v24 = vpop.f32.mrf.mxu0 }
 0x681   : > { %v2600_v25 = vpop.f32.mrf.mxu1 }
 0x682   : > { %v2804_v27 = vadd.f32 %v2803_v28, %v2600_v25 }
 0x683   : > { %v5882_v14 = vpop.f32.mrf.mxu1 }
 0x684   : > { %v2805_v35 = vadd.f32 %v2804_v27, %v2649_v16  ;;  %v5503_v16 = vld [vmem:[%s8374_s5] ss:$0 sm:$0xff]  ;;  %v5505_v27 = vld [vmem:[#allocation14] ss:$0 sm:$0xff]  ;;  %s1166_s5 = scalar_lea.vmem %s8376_s13, %s7643_s3  ;;  %s8377_s3 = sshll.u32 %s7587_s15, 6 }
 0x685   : > { %v2603_v29 = vpop.f32.mrf.mxu1  ;;  %s4886_s13 = scalar_lea.sflag [#allocation4], %s7587_s15 }
 0x687   : > { %v5883_v31 = vpop.f32.mrf.mxu1 }
 0x689   : > { %v2698_v34 = vpop.f32.mrf.mxu1 }
 0x68a   : > { %v2806_v37 = vadd.f32 %v2805_v35, %v2698_v34 }
 0x68b   : > { %v5894_v36 = vpop.f32.mrf.mxu1 }
 0x68c   : > { %v2807_v39 = vadd.f32 %v2806_v37, %v2747_v21 }
 0x68d   : > { %v2701_v38 = vpop.f32.mrf.mxu1 }
 0x68f   : > { %v5895_v33 = vpop.f32.mrf.mxu1 }
 0x691   : > { %v2796_v42 = vpop.f32.mrf.mxu1 }
 0x692   : > { %v2808_v43 = vadd.f32 %v2807_v39, %v2796_v42 }
 0x693   : > { %v5906_v44 = vpop.f32.mrf.mxu1 }
 0x694   : > { %v2815_v45 = vadd.f32 %v5502_v41, %v2808_v43 }
 0x695   : > { %v2799_v46 = vpop.f32.mrf.mxu1 }
 0x696   : > { %v2816_v48 = vadd.f32 %v6516_v40, %v2815_v45 }
 0x697   : > { %v5907_v49 = vpop.f32.mrf.mxu1 }
 0x698   : > { %2817 = vadd.xlane.f32.xlu1 %v2816_v48  ;;  %v2821_v47 = vmul.f32 %v2816_v48, %v2816_v48 }
 0x69a   : > { %2822 = vadd.xlane.f32.xlu0 %v2821_v47 }
 0x6b0   : > { %2848 = vperm.xlu0 %6325, %v1170_v53  }
 0x6b1   : > { %v3107_v63 = vpop.f32.mrf.mxu1 }
 0x6b2   : > { %v3108_v1 = vadd.f32 %v3107_v63, %v2986_v61 }
 0x6b3   : > { %v3109_v2 = vpop.f32.mrf.mxu1 }
 0x6b4   : > { %3164 = vrot.lane.b32.xlu1 %v3108_v1, %s7174_s10  ;;  %v7935_v3 = vadd.f32 %v3109_v2, %v2990_v62  ;;  %v3185_v23 = vpack.c.bf16 %v3108_v1, %v3108_v1 }
 0x6b5   : > { %v3111_v4 = vpop.f32.mrf.mxu1 }
 0x6b6   : > { %v3227_v26 = vsel %vm1543_vm1, %v3185_v23, 0 }
 0x6b7   : > { %v3112_v6 = vpop.f32.mrf.mxu1 }
 0x6b8   : > { %3167 = vrot.lane.b32.xlu1 %v3108_v1, %s7176_s6 }
 0x6bc   : > { %3170 = vrot.lane.b32.xlu1 %v3108_v1, %s7175_s11 }
 0x6c0   : > { %3173 = vrot.lane.b32.xlu1 %v3108_v1, %s7177_s14 }
 0x6c4   : > { %3176 = vrot.lane.b32.xlu1 %v3108_v1, %s7178_s16 }
 0x721   : > { %v2818_v7 = vpop.xlane.xlu1 %2817 }
 0x722   : > { %v2820_v8 = vmul.f32 0.0078125, %v2818_v7  ;;  %v3215_v7 = vpack.c.bf16 %v7935_v3, %v7935_v3 }
 0x723   : > { %v2823_v54 = vpop.xlane.xlu0 %2822 }
 0x724   : > { %v2825_v5 = vmul.f32 %v2820_v8, %v2820_v8  ;;  %v2824_v9 = vmul.f32 0.0078125, %v2823_v54  ;;  %v2828_v13 = vsub.f32 %v2816_v48, %v2820_v8 }
 0x726   : > { %v2826_v10 = vsub.f32 %v2824_v9, %v2825_v5  ;;  %v3165_v14 = vpop.permute.xlu1 %3164  ;;  %v3715_v5 = vsel %vm2036_vm2, %v3215_v7, 0 }
 0x727   : > { %v3186_v28 = vpack.c.bf16 %v3165_v14, %v3165_v14 }
 0x728   : > { %v2827_v11 = vmax.f32 %v2826_v10, 0.0  ;;  %v1173_v10 = vld [vmem:[%s1166_s5] sm:$0xff] }
 0x729   : > { %v3273_v29 = vsel %vm1543_vm1, %v3186_v28, 0 }
 0x72a   : > { %v2829_v12 = vadd.f32 1e-05, %v2827_v11  ;;  %5935 = vmatpush3.bf16.xpose.msra.mxu1 %v3273_v29  ;;  %v3168_v31 = vpop.permute.xlu1 %3167  ;;  %v1174_v11 = vmul.f32 -1e+30, %v1173_v10 }
 0x72b   : > { %v7944_v21 = vpop.permute.xlu0 %2848  ;;  %5946 = vmatprep.subr.bf16.mxu1 %v7172_v19  ;;  %v3187_v34 = vpack.c.bf16 %v3168_v31, %v3168_v31 }
 0x72c   : > { %6478 = vrsqrt.f32 %v2829_v12 }
 0x72d   : > { %v3319_v33 = vsel %vm1543_vm1, %v3187_v34, 0 }
 0x72e   : > { %v3171_v42 = vpop.permute.xlu1 %3170 }
 0x72f   : > { %v3188_v45 = vpack.c.bf16 %v3171_v42, %v3171_v42 }
 0x731   : > { %v3365_v48 = vsel %vm1543_vm1, %v3188_v45, 0 }
 0x732   : > { %v3174_v43 = vpop.permute.xlu1 %3173 }
 0x733   : > { %v3189_v49 = vpack.c.bf16 %v3174_v43, %v3174_v43 }
 0x735   : > { %v3411_v52 = vsel %vm1543_vm1, %v3189_v49, 0 }
 0x736   : > { %v3177_v44 = vpop.permute.xlu1 %3176 }
 0x737   : > { %v3190_v53 = vpack.c.bf16 %v3177_v44, %v3177_v44 }
 0x739   : > { %v6479_v15 = vpop.eup %6478  ;;  %v3457_v57 = vsel %vm1543_vm1, %v3190_v53, 0 }
 0x73a   : > { %v2831_v17 = vmul.f32 %v6479_v15, %v2828_v13 }
 0x73c   : > { %v2838_v20 = vmul.f32 %v5503_v16, %v2831_v17 }
 0x73e   : > { %v2845_v22 = vadd.f32 %v5504_v18, %v2838_v20 }
 0x740   : > { %v7947_v24 = vmul.f32 %v7944_v21, %v2845_v22 }
 0x742   : > { %v2852_v25 = vpack.c.bf16 %v7947_v24, %v7947_v24 }
 0x744   : > { %5925 = vmatmul.mubr.bf16.vlgmr.msra.gmra.mxu0 %v2852_v25 }
 0x745   : > { %5929 = vmatpush3.bf16.xpose.msra.mxu0 %v3227_v26  ;;  %5930 = vmatprep.mubr.msk.bf16.mxu0 %vm7173_vm0, %v7172_v19 }
 0x746   : > { %5940 = vmatprep.subr.bf16.mxu0 %v7172_v19 }
 0x804   : > { %v2958_v35 = vpop.f32.mrf.mxu0 }
 0x805   : > { %v2959_v36 = vadd.f32 %v5505_v27, %v2958_v35 }
 0x806   : > { %v5926_v37 = vpop.f32.mrf.mxu0 }
 0x807   : > { %3143 = vrot.lane.b32.xlu0 %v2959_v36, %s7177_s14  ;;  %3134 = vrot.lane.b32.xlu1 %v2959_v36, %s7174_s10  ;;  %v3155_v38 = vpack.c.bf16 %v2959_v36, %v2959_v36 }
 0x808   : > { %v2961_v39 = vpop.f32.mrf.mxu0 }
 0x809   : > { %5931 = vmatmul.mubr.msk.bf16.vlgmr.msra.gmra.mxu0 %vm1543_vm1, %v3155_v38 }
 0x80a   : > { %v5927_v41 = vpop.f32.mrf.mxu0  ;;  %5941 = vmatpush3.bf16.xpose.msra.mxu0 %v3319_v33  ;;  %5942 = vmatprep.mubr.msk.bf16.mxu0 %vm7173_vm0, %v7172_v19 }
 0x80b   : > { %3146 = vrot.lane.b32.xlu0 %v2959_v36, %s7178_s16  ;;  %3137 = vrot.lane.b32.xlu1 %v2959_v36, %s7176_s6 }
 0x80c   : > { %5952 = vmatprep.subr.bf16.mxu0 %v7172_v19 }
 0x80f   : > { %3149 = vrot.lane.b32.xlu0 %v2959_v36, %s8375_s17  ;;  %3140 = vrot.lane.b32.xlu1 %v2959_v36, %s7175_s11 }
 0x813   : > { %3179 = vrot.lane.b32.xlu1 %v3108_v1, %s8375_s17 }
 0x817   : > { %3182 = vrot.lane.b32.xlu1 %v3108_v1, %s8372_s26 }
 0x81b   : > { %3152 = vrot.lane.b32.xlu1 %v2959_v36, %s8372_s26 }
 0x879   : > { %v3135_v46 = vpop.permute.xlu1 %3134  ;;  %v3144_v51 = vpop.permute.xlu0 %3143 }
 0x87a   : > { %v3156_v40 = vpack.c.bf16 %v3135_v46, %v3135_v46  ;;  %v3159_v60 = vpack.c.bf16 %v3144_v51, %v3144_v51 }
 0x87c   : > { %5937 = vmatmul.mubr.msk.bf16.vlgmr.msra.gmra.mxu1 %vm1543_vm1, %v3156_v40 }
 0x87d   : > { %5947 = vmatpush3.bf16.xpose.msra.mxu1 %v3365_v48  ;;  %v3138_v47 = vpop.permute.xlu1 %3137  ;;  %5948 = vmatprep.mubr.msk.bf16.mxu1 %vm7173_vm0, %v7172_v19  ;;  %v3147_v58 = vpop.permute.xlu0 %3146 }
 0x87e   : > { %v3157_v50 = vpack.c.bf16 %v3138_v47, %v3138_v47  ;;  %5958 = vmatprep.subr.bf16.mxu1 %v7172_v19  ;;  %v3160_v1 = vpack.c.bf16 %v3147_v58, %v3147_v58 }
 0x880   : > { %5943 = vmatmul.mubr.msk.bf16.vlgmr.msra.gmra.mxu0 %vm1543_vm1, %v3157_v50 }
 0x881   : > { %5953 = vmatpush3.bf16.xpose.msra.mxu0 %v3411_v52  ;;  %v3141_v55 = vpop.permute.xlu1 %3140  ;;  %5954 = vmatprep.mubr.msk.bf16.mxu0 %vm7173_vm0, %v7172_v19  ;;  %v3150_v4 = vpop.permute.xlu0 %3149 }
 0x882   : > { %v3158_v56 = vpack.c.bf16 %v3141_v55, %v3141_v55  ;;  %5964 = vmatprep.subr.bf16.mxu0 %v7172_v19  ;;  %v3161_v8 = vpack.c.bf16 %v3150_v4, %v3150_v4 }
 0x884   : > { %5949 = vmatmul.mubr.msk.bf16.vlgmr.msra.gmra.mxu1 %vm1543_vm1, %v3158_v56 }
 0x885   : > { %5959 = vmatpush3.bf16.xpose.msra.mxu1 %v3457_v57  ;;  %v3180_v59 = vpop.permute.xlu1 %3179  ;;  %5960 = vmatprep.mubr.msk.bf16.mxu1 %vm7173_vm0, %v7172_v19 }
 0x886   : > { %v3191_v61 = vpack.c.bf16 %v3180_v59, %v3180_v59  ;;  %5970 = vmatprep.subr.bf16.mxu1 %v7172_v19 }
 0x888   : > { %v3503_v62 = vsel %vm1543_vm1, %v3191_v61, 0  ;;  %5955 = vmatmul.mubr.msk.bf16.vlgmr.msra.gmra.mxu0 %vm1543_vm1, %v3159_v60 }
 0x889   : > { %v3183_v63 = vpop.permute.xlu1 %3182  ;;  %5965 = vmatpush3.bf16.xpose.msra.mxu0 %v3503_v62  ;;  %5966 = vmatprep.mubr.msk.bf16.mxu0 %vm7173_vm0, %v7172_v19 }
 0x88a   : > { %v3192_v2 = vpack.c.bf16 %v3183_v63, %v3183_v63  ;;  %5976 = vmatprep.subr.bf16.mxu0 %v7172_v19 }
 0x88c   : > { %v3549_v6 = vsel %vm1543_vm1, %v3192_v2, 0  ;;  %5961 = vmatmul.mubr.msk.bf16.vlgmr.msra.gmra.mxu1 %vm1543_vm1, %v3160_v1 }
 0x88d   : > { %5971 = vmatpush3.bf16.xpose.msra.mxu1 %v3549_v6  ;;  %5972 = vmatprep.mubr.msk.bf16.mxu1 %vm7173_vm0, %v7172_v19  ;;  %v3153_v54 = vpop.permute.xlu1 %3152 }
 0x88e   : > { %5982 = vmatprep.subr.bf16.mxu1 %v7172_v19  ;;  %v3162_v9 = vpack.c.bf16 %v3153_v54, %v3153_v54 }
 0x890   : > { %5967 = vmatmul.mubr.msk.bf16.vlgmr.msra.gmra.mxu0 %vm1543_vm1, %v3161_v8 }
 0x891   : > { %5977 = vmatpush3.bf16.msra.mxu0 %v3715_v5  ;;  %5978 = vmatprep.mubr.msk.bf16.mxu0 %vm7173_vm0, %v7172_v19 }
 0x892   : > { %5988 = vmatprep.subr.bf16.mxu0 %v7172_v19 }
 0x894   : > { %5973 = vmatmul.mubr.msk.bf16.vlgmr.msra.gmra.mxu1 %vm1543_vm1, %v3162_v9 }
 0x895   : > { %5984 = vmatprep.mubr.msk.bf16.mxu1 %vm7173_vm0, %v7172_v19 }
 0x8c9   : > { %v3263_v12 = vpop.f32.mrf.mxu0 }
 0x8ca   : > { %v3591_v13 = vmul.f32 0.25, %v3263_v12 }
 0x8cb   : > { %v5932_v15 = vpop.f32.mrf.mxu0 }
 0x8cc   : > { %v8010_v16 = vadd.f32 %v3591_v13, %v1174_v11 }
 0x8cd   : > { %v3266_v17 = vpop.f32.mrf.mxu0 }
 0x8ce   : > { %v3607_v18 = vsel %vm1928_vm3, %v8010_v16, -inf }
 0x8cf   : > { %3608 = vmax.xlane.f32.xlu0 %v3607_v18  ;;  %v5933_v20 = vpop.f32.mrf.mxu0 }
 0x93c   : > { %v3309_v22 = vpop.f32.mrf.mxu1 }
 0x93d   : > { %v3592_v23 = vmul.f32 0.25, %v3309_v22 }
 0x93e   : > { %v5938_v25 = vpop.f32.mrf.mxu1 }
 0x93f   : > { %v8014_v26 = vadd.f32 %v3592_v23, %v1174_v11 }
 0x940   : > { %v3312_v14 = vpop.f32.mrf.mxu1  ;;  %v3355_v28 = vpop.f32.mrf.mxu0 }
 0x941   : > { %v3593_v29 = vmul.f32 0.25, %v3355_v28  ;;  %v3610_v27 = vsel %vm1928_vm3, %v8014_v26, -inf }
 0x942   : > { %3611 = vmax.xlane.f32.xlu1 %v3610_v27  ;;  %v5939_v31 = vpop.f32.mrf.mxu1  ;;  %v5944_v34 = vpop.f32.mrf.mxu0 }
 0x943   : > { %v3601_v35 = vadd.f32 %v3593_v29, %v1174_v11 }
 0x944   : > { %v3358_v36 = vpop.f32.mrf.mxu0  ;;  %v3401_v37 = vpop.f32.mrf.mxu1 }
 0x945   : > { %v3594_v38 = vmul.f32 0.25, %v3401_v37  ;;  %v3613_v33 = vsel %vm1928_vm3, %v3601_v35, -inf }
 0x946   : > { %v5950_v39 = vpop.f32.mrf.mxu1  ;;  %3614 = vmax.xlane.f32.xlu0 %v3613_v33  ;;  %v5945_v41 = vpop.f32.mrf.mxu0 }
 0x947   : > { %v8019_v42 = vadd.f32 %v3594_v38, %v1174_v11 }
 0x948   : > { %v3404_v43 = vpop.f32.mrf.mxu1  ;;  %v3447_v44 = vpop.f32.mrf.mxu0 }
 0x949   : > { %v3595_v45 = vmul.f32 0.25, %v3447_v44  ;;  %v3616_v46 = vsel %vm1928_vm3, %v8019_v42, -inf }
 0x94a   : > { %v5951_v40 = vpop.f32.mrf.mxu1  ;;  %3617 = vmax.xlane.f32.xlu0 %v3616_v46  ;;  %v5956_v48 = vpop.f32.mrf.mxu0 }
 0x94b   : > { %v3603_v49 = vadd.f32 %v3595_v45, %v1174_v11 }
 0x94c   : > { %v3450_v47 = vpop.f32.mrf.mxu0  ;;  %v3493_v50 = vpop.f32.mrf.mxu1 }
 0x94d   : > { %v3596_v51 = vmul.f32 0.25, %v3493_v50  ;;  %v3619_v52 = vsel %vm1928_vm3, %v3603_v49, -inf }
 0x94e   : > { %v5962_v53 = vpop.f32.mrf.mxu1  ;;  %3620 = vmax.xlane.f32.xlu1 %v3619_v52  ;;  %v5957_v55 = vpop.f32.mrf.mxu0 }
 0x94f   : > { %v8024_v56 = vadd.f32 %v3596_v51, %v1174_v11 }
 0x950   : > { %v3496_v57 = vpop.f32.mrf.mxu1  ;;  %v3539_v58 = vpop.f32.mrf.mxu0 }
 0x951   : > { %v3597_v59 = vmul.f32 0.25, %v3539_v58  ;;  %v3622_v60 = vsel %vm1928_vm3, %v8024_v56, -inf }
 0x952   : > { %v5963_v61 = vpop.f32.mrf.mxu1  ;;  %3623 = vmax.xlane.f32.xlu0 %v3622_v60  ;;  %v5968_v62 = vpop.f32.mrf.mxu0 }
 0x953   : > { %v3605_v63 = vadd.f32 %v3597_v59, %v1174_v11 }
 0x954   : > { %v3542_v1 = vpop.f32.mrf.mxu0  ;;  %v3585_v2 = vpop.f32.mrf.mxu1 }
 0x955   : > { %v3598_v4 = vmul.f32 0.25, %v3585_v2  ;;  %v3625_v6 = vsel %vm1928_vm3, %v3605_v63, -inf }
 0x956   : > { %v5974_v7 = vpop.f32.mrf.mxu1  ;;  %3626 = vmax.xlane.f32.xlu1 %v3625_v6  ;;  %v5969_v8 = vpop.f32.mrf.mxu0 }
 0x957   : > { %v3606_v54 = vadd.f32 %v3598_v4, %v1174_v11 }
 0x958   : > { %v3588_v5 = vpop.f32.mrf.mxu1  ;;  %v3609_v12 = vpop.xlane.xlu0 %3608 }
 0x959   : > { %v3628_v9 = vsel %vm1928_vm3, %v3606_v54, -inf  ;;  %v3631_v13 = vsub.f32 %v8010_v16, %v3609_v12 }
 0x95a   : > { %v5975_v10 = vpop.f32.mrf.mxu1  ;;  %3629 = vmax.xlane.f32.xlu0 %v3628_v9 }
 0x95b   : > { %v3639_v15 = vmul.f32 1.442695, %v3631_v13 }
 0x95d   : > { %6480 = vpow2.f32 %v3639_v15 }
 0x967   : > { %3197 = vrot.lane.b32.xlu1 %v7935_v3, %s7176_s6  ;;  %s8378_s6 = sshll.u32 %s7587_s15, 3 }
 0x96a   : > { %v8035_v17 = vpop.eup %6480 }
 0x96b   : > { %v3655_v11 = vsel %vm1928_vm3, %v8035_v17, 0.0 }
 0x970   : > { %3194 = vrot.lane.b32.xlu0 %v7935_v3, %s7174_s10  ;;  %s8081_s10 = scalar_lea.vmem [#allocation36], %s8377_s3  ;;  %s7181_s3 = smov [#allocation34]  }
 0x98b   : > { %3656 = vadd.xlane.f32.xlu1 %v3655_v11 }
 0x99c   : > { %3203 = vrot.lane.b32.xlu1 %v7935_v3, %s7177_s14  ;;  %s1138_s14 = scalar_lea.vmem [#allocation34], %s8378_s6 }
 0x9cb   : > { %v3612_v18 = vpop.xlane.xlu1 %3611 }
 0x9cc   : > { %v3632_v20 = vsub.f32 %v8014_v26, %v3612_v18 }
 0x9ce   : > { %v3641_v22 = vmul.f32 1.442695, %v3632_v20 }
 0x9cf   : > { %v3615_v23 = vpop.xlane.xlu0 %3614 }
 0x9d0   : > { %6482 = vpow2.f32 %v3641_v22  ;;  %v3633_v25 = vsub.f32 %v3601_v35, %v3615_v23 }
 0x9d2   : > { %v3643_v14 = vmul.f32 1.442695, %v3633_v25 }
 0x9d3   : > { %v3618_v27 = vpop.xlane.xlu0 %3617 }
 0x9d4   : > { %6484 = vpow2.f32 %v3643_v14  ;;  %v3634_v52 = vsub.f32 %v8019_v42, %v3618_v27 }
 0x9d6   : > { %v3645_v53 = vmul.f32 1.442695, %v3634_v52  ;;  %v6399_v52 = vld [vmem:[#allocation19 + $0x8] sm:$0xff]  }
 0x9d7   : > { %v3621_v16 = vpop.xlane.xlu1 %3620 }
 0x9d8   : > { %v3635_v28 = vsub.f32 %v3603_v49, %v3621_v16 }
 0x9da   : > { %v3647_v29 = vmul.f32 1.442695, %v3635_v28 }
 0x9db   : > { %v3624_v36 = vpop.xlane.xlu0 %3623 }
 0x9dc   : > { %6486 = vpow2.f32 %v3647_v29  ;;  %v3636_v55 = vsub.f32 %v8024_v56, %v3624_v36  ;;  %v6398_v36 = vld [vmem:[#allocation19] sm:$0xff]  }
 0x9dd   : > { %v8042_v31 = vpop.eup %6482 }
 0x9de   : > { %v3658_v34 = vsel %vm1928_vm3, %v8042_v31, 0.0  ;;  %v3649_v57 = vmul.f32 1.442695, %v3636_v55 }
 0x9df   : > { %3659 = vadd.xlane.f32.xlu0 %v3658_v34  ;;  %v3627_v37 = vpop.xlane.xlu1 %3626 }
 0x9e0   : > { %v3637_v26 = vsub.f32 %v3605_v63, %v3627_v37 }
 0x9e1   : > { %v8046_v38 = vpop.eup %6484 }
 0x9e2   : > { %v3651_v33 = vmul.f32 1.442695, %v3637_v26  ;;  %v3661_v35 = vsel %vm1928_vm3, %v8046_v38, 0.0 }
 0x9e3   : > { %v3630_v39 = vpop.xlane.xlu0 %3629  ;;  %3662 = vadd.xlane.f32.xlu1 %v3661_v35  ;;  %v3198_v59 = vpop.permute.xlu1 %3197 }
 0x9e4   : > { %6488 = vpow2.f32 %v3651_v33  ;;  %v3638_v41 = vsub.f32 %v3606_v54, %v3630_v39  ;;  %v3217_v63 = vpack.c.bf16 %v3198_v59, %v3198_v59 }
 0x9e6   : > { %v3653_v43 = vmul.f32 1.442695, %v3638_v41  ;;  %v3807_v4 = vsel %vm2036_vm2, %v3217_v63, 0 }
 0x9e7   : > { %v3195_v44 = vpop.permute.xlu0 %3194 }
 0x9e8   : > { %6490 = vpow2.f32 %v3653_v43  ;;  %v3216_v45 = vpack.c.bf16 %v3195_v44, %v3195_v44 }
 0x9e9   : > { %v8050_v46 = vpop.eup %6486  ;;  %6492 = vpow2.f32 %v3645_v53 }
 0x9ea   : > { %v3761_v40 = vsel %vm2036_vm2, %v3216_v45, 0  ;;  %v3667_v48 = vsel %vm1928_vm3, %v8050_v46, 0.0  ;;  %6494 = vpow2.f32 %v3649_v57  ;;  %v6400_v57 = vld [vmem:[#allocation19 + $0x10] sm:$0xff]  }
 0x9eb   : > { %5983 = vmatpush3.bf16.msra.mxu1 %v3761_v40  ;;  %3668 = vadd.xlane.f32.xlu1 %v3667_v48 }
 0x9ec   : > { %5994 = vmatprep.subr.bf16.mxu1 %v7172_v19 }
 0x9f1   : > { %v8056_v49 = vpop.eup %6488 }
 0x9f2   : > { %v3673_v47 = vsel %vm1928_vm3, %v8056_v49, 0.0 }
 0x9f3   : > { %3674 = vadd.xlane.f32.xlu1 %v3673_v47 }
 0x9f5   : > { %v8060_v50 = vpop.eup %6490  ;;  %3200 = vrot.lane.b32.xlu0 %v7935_v3, %s7175_s11  ;;  %s5603_s11 = sshll.u32 %s8349_s12, 7  ;;  %s7043_s12 = sshll.u32 %s7181_s3, 4  ;;  %s7044_s12 = int_to_ptr.vmem [resolvable:$false] %s7043_s12 }
 0x9f6   : > { %v3676_v51 = vsel %vm1928_vm3, %v8060_v50, 0.0  ;;  %v8070_v58 = vpop.eup %6492  ;;  %s4905_s28 = scalar_lea.hbm %s8379_s9, %s5603_s11  ;;  %s7045_s6 = scalar_lea.vmem %s7044_s12, 256 }
 0x9f7   : > { %3677 = vadd.xlane.f32.xlu1 %v3676_v51  ;;  %v3664_v60 = vsel %vm1928_vm3, %v8070_v58, 0.0  ;;  %v8074_v61 = vpop.eup %6494 }
 0x9f8   : > { %v3670_v56 = vsel %vm1928_vm3, %v8074_v61, 0.0 }
 0xa08   : > { %3209 = vrot.lane.b32.xlu1 %v7935_v3, %s8375_s17 }
 0xa14   : > { %3665 = vadd.xlane.f32.xlu0 %v3664_v60  ;;  %v3657_v42 = vpop.xlane.xlu1 %3656 }
 0xa15   : > { %6496 = vrcp.f32 %v3657_v42 }
 0xa18   : > { %3671 = vadd.xlane.f32.xlu0 %v3670_v56  ;;  %v3204_v6 = vpop.permute.xlu1 %3203  ;;  %v6403_v56 = vld [vmem:[#allocation19 + $0x18] sm:$0xff]  }
 0xa22   : > { %v6497_v62 = vpop.eup %6496 }
 0xa23   : > { %v3680_v1 = vmul.f32 %v6497_v62, %v8035_v17  ;;  %v3219_v17 = vpack.c.bf16 %v3204_v6, %v3204_v6 }
 0xa25   : > { %3695 = vst.msk [vmem:[%s8081_s10] sm:$0xff] %vm1928_vm3, %v3680_v1  ;;  %v3703_v2 = vpack.c.bf16 %v3680_v1, %v3680_v1  ;;  %v3899_v22 = vsel %vm2036_vm2, %v3219_v17, 0 }
 0xa27   : > { %5979 = vmatmul.mubr.msk.bf16.vlgmr.msra.gmra.mxu0 %vm1928_vm3, %v3703_v2 }
 0xa28   : > { %5989 = vmatpush3.bf16.msra.mxu0 %v3807_v4  ;;  %5990 = vmatprep.mubr.msk.bf16.mxu0 %vm7173_vm0, %v7172_v19  ;;  %v6401_v4 = vld [vmem:[#allocation19 + $0x20] sm:$0xff]  }
 0xa29   : > { %6000 = vmatprep.subr.bf16.mxu0 %v7172_v19 }
 0xa2e   : > { %3206 = vrot.lane.b32.xlu0 %v7935_v3, %s7178_s16  ;;  %s4907_s16 = sshll.u32 %s1138_s14, 4  ;;  %s4908_s16 = int_to_ptr.vmem [resolvable:$true] %s4907_s16 }
 0xa2f   : > { %s7039_s5 = scalar_lea.vmem %s4908_s16, 128  ;;  %p7046_p2 = scmp.lt.s32.totalorder %s4908_s16, %s7044_s12 }
 0xa30   : > { %p7040_p8 = scmp.ne.s32.totalorder %s4908_s16, %s7039_s5  ;;  %p7047_p1 = scmp.lt.s32.totalorder %s7045_s6, %s7039_s5 }
 0xa32   : > { %3212 = vrot.lane.b32.xlu0 %v7935_v3, %s8372_s26  ;;  %p7041_p11 = pnand %p7040_p8, %p8380_p10  ;;  %p7048_p9 = por %p7047_p1, %p7046_p2 }
 0xa34   : > { %p7042_p0 = pneg %p7041_p11 }
 0xa36   : > { %p7049_p6 = pnand %p7048_p9, %p7042_p0 }
 0xa68   : > { %v3660_v7 = vpop.xlane.xlu0 %3659 }
 0xa69   : > { %6498 = vrcp.f32 %v3660_v7 }
 0xa6c   : > { %v3663_v8 = vpop.xlane.xlu1 %3662  ;;  %v3201_v54 = vpop.permute.xlu0 %3200 }
 0xa6d   : > { %6500 = vrcp.f32 %v3663_v8  ;;  %v3218_v10 = vpack.c.bf16 %v3201_v54, %v3201_v54 }
 0xa6f   : > { %v3853_v3 = vsel %vm2036_vm2, %v3218_v10, 0  ;;  %v6402_v10 = vld [vmem:[#allocation19 + $0x30] sm:$0xff]  }
 0xa74   : > { %v3669_v5 = vpop.xlane.xlu1 %3668 }
 0xa75   : > { %6502 = vrcp.f32 %v3669_v5 }
 0xa76   : > { %v6499_v9 = vpop.eup %6498 }
 0xa77   : > { %v3682_v12 = vmul.f32 %v6499_v9, %v8042_v31 }
 0xa79   : > { %3696 = vst.msk [vmem:[%s8081_s10 + $0x8] sm:$0xff] %vm1928_vm3, %v3682_v12  ;;  %v3704_v13 = vpack.c.bf16 %v3682_v12, %v3682_v12 }
 0xa7a   : > { %v6501_v15 = vpop.eup %6500 }
 0xa7b   : > { %5985 = vmatmul.mubr.msk.bf16.vlgmr.msra.gmra.mxu1 %vm1928_vm3, %v3704_v13  ;;  %v3684_v11 = vmul.f32 %v6501_v15, %v8046_v38 }
 0xa7c   : > { %5995 = vmatpush3.bf16.msra.mxu1 %v3853_v3  ;;  %v3675_v18 = vpop.xlane.xlu1 %3674  ;;  %5996 = vmatprep.mubr.msk.bf16.mxu1 %vm7173_vm0, %v7172_v19 }
 0xa7d   : > { %6504 = vrcp.f32 %v3675_v18  ;;  %3697 = vst.msk [vmem:[%s8081_s10 + $0x10] sm:$0xff] %vm1928_vm3, %v3684_v11  ;;  %v3705_v20 = vpack.c.bf16 %v3684_v11, %v3684_v11  ;;  %6006 = vmatprep.subr.bf16.mxu1 %v7172_v19 }
 0xa7f   : > { %5991 = vmatmul.mubr.msk.bf16.vlgmr.msra.gmra.mxu0 %vm1928_vm3, %v3705_v20 }
 0xa80   : > { %6001 = vmatpush3.bf16.msra.mxu0 %v3899_v22  ;;  %v3678_v23 = vpop.xlane.xlu1 %3677  ;;  %6002 = vmatprep.mubr.msk.bf16.mxu0 %vm7173_vm0, %v7172_v19 }
 0xa81   : > { %6506 = vrcp.f32 %v3678_v23  ;;  %6012 = vmatprep.subr.bf16.mxu0 %v7172_v19 }
 0xa82   : > { %v6503_v25 = vpop.eup %6502 }
 0xa83   : > { %v3688_v14 = vmul.f32 %v6503_v25, %v8050_v46  ;;  %v6404_v25 = vld [vmem:[#allocation19 + $0x28] sm:$0xff]  }
 0xa84   : > { %v3210_v16 = vpop.permute.xlu1 %3209 }
 0xa85   : > { %v3221_v28 = vpack.c.bf16 %v3210_v16, %v3210_v16  ;;  %3699 = vst.msk [vmem:[%s8081_s10 + $0x20] sm:$0xff] %vm1928_vm3, %v3688_v14  ;;  %v3707_v29 = vpack.c.bf16 %v3688_v14, %v3688_v14 }
 0xa87   : > { %v3991_v27 = vsel %vm2036_vm2, %v3221_v28, 0  ;;  %6003 = vmatmul.mubr.msk.bf16.vlgmr.msra.gmra.mxu0 %vm1928_vm3, %v3707_v29 }
 0xa88   : > { %6013 = vmatpush3.bf16.msra.mxu0 %v3991_v27  ;;  %6014 = vmatprep.mubr.msk.bf16.mxu0 %vm7173_vm0, %v7172_v19 }
 0xa89   : > { %6024 = vmatprep.subr.bf16.mxu0 %v7172_v19 }
 0xa8a   : > { %v6505_v31 = vpop.eup %6504 }
 0xa8b   : > { %v3692_v34 = vmul.f32 %v6505_v31, %v8056_v49  ;;  %v6405_v31 = vld [vmem:[#allocation19 + $0x38] sm:$0xff]  }
 0xa8d   : > { %3701 = vst.msk [vmem:[%s8081_s10 + $0x30] sm:$0xff] %vm1928_vm3, %v3692_v34  ;;  %v3709_v37 = vpack.c.bf16 %v3692_v34, %v3692_v34 }
 0xa8e   : > { %v6507_v26 = vpop.eup %6506 }
 0xa8f   : > { %6015 = vmatmul.mubr.msk.bf16.vlgmr.msra.gmra.mxu0 %vm1928_vm3, %v3709_v37  ;;  %v3694_v38 = vmul.f32 %v6507_v26, %v8060_v50 }
 0xa90   : > { %6025 = vmatpush3.bf16.msra.mxu0 %v6398_v36  ;;  %6026 = vmatprep.mubr.msk.bf16.mxu0 %vm7173_vm0, %v7172_v19 }
 0xa91   : > { %3702 = vst.msk [vmem:[%s8081_s10 + $0x38] sm:$0xff] %vm1928_vm3, %v3694_v38  ;;  %6036 = vmatprep.subr.bf16.mxu0 %v7172_v19  ;;  %v3710_v53 = vpack.c.bf16 %v3694_v38, %v3694_v38 }
 0xa9d   : > { %v3666_v33 = vpop.xlane.xlu0 %3665 }
 0xa9e   : > { %6508 = vrcp.f32 %v3666_v33 }
 0xaa1   : > { %v3672_v35 = vpop.xlane.xlu0 %3671 }
 0xaa2   : > { %6510 = vrcp.f32 %v3672_v35 }
 0xaa5   : > { %v3207_v39 = vpop.permute.xlu0 %3206 }
 0xaa6   : > { %v3220_v43 = vpack.c.bf16 %v3207_v39, %v3207_v39 }
 0xaa8   : > { %v3945_v40 = vsel %vm2036_vm2, %v3220_v43, 0 }
 0xaa9   : > { %v3213_v49 = vpop.permute.xlu0 %3212 }
 0xaaa   : > { %v3222_v47 = vpack.c.bf16 %v3213_v49, %v3213_v49 }
 0xaab   : > { %v6509_v41 = vpop.eup %6508 }
 0xaac   : > { %v3686_v44 = vmul.f32 %v6509_v41, %v8070_v58  ;;  %v4037_v51 = vsel %vm2036_vm2, %v3222_v47, 0 }
 0xaae   : > { %3698 = vst.msk [vmem:[%s8081_s10 + $0x18] sm:$0xff] %vm1928_vm3, %v3686_v44  ;;  %v3706_v45 = vpack.c.bf16 %v3686_v44, %v3686_v44 }
 0xaaf   : > { %v6511_v46 = vpop.eup %6510 }
 0xab0   : > { %5997 = vmatmul.mubr.msk.bf16.vlgmr.msra.gmra.mxu1 %vm1928_vm3, %v3706_v45  ;;  %v3690_v48 = vmul.f32 %v6511_v46, %v8074_v61 }
 0xab1   : > { %6007 = vmatpush3.bf16.msra.mxu1 %v3945_v40  ;;  %6008 = vmatprep.mubr.msk.bf16.mxu1 %vm7173_vm0, %v7172_v19 }
 0xab2   : > { %6018 = vmatprep.subr.bf16.mxu1 %v7172_v19  ;;  %3700 = vst.msk [vmem:[%s8081_s10 + $0x28] sm:$0xff] %vm1928_vm3, %v3690_v48  ;;  %v3708_v50 = vpack.c.bf16 %v3690_v48, %v3690_v48 }
 0xab8   : > { %6009 = vmatmul.mubr.msk.bf16.vlgmr.msra.gmra.mxu1 %vm1928_vm3, %v3708_v50 }
 0xab9   : > { %6019 = vmatpush3.bf16.msra.mxu1 %v4037_v51  ;;  %6020 = vmatprep.mubr.msk.bf16.mxu1 %vm7173_vm0, %v7172_v19 }
 0xaba   : > { %6030 = vmatprep.subr.bf16.mxu1 %v7172_v19 }
 0xac0   : > { %6021 = vmatmul.mubr.msk.bf16.vlgmr.msra.gmra.mxu1 %vm1928_vm3, %v3710_v53 }
 0xac1   : > { %6031 = vmatpush3.bf16.msra.mxu1 %v6399_v52  ;;  %6032 = vmatprep.mubr.msk.bf16.mxu1 %vm7173_vm0, %v7172_v19 }
 0xac2   : > { %6042 = vmatprep.subr.bf16.mxu1 %v7172_v19 }
 0xae7   : > { %v3751_v55 = vpop.f32.mrf.mxu0 }
 0xae8   : > { %v4079_v58 = vpack.c.bf16 %v3751_v55, %v3751_v55 }
 0xae9   : > { %v5980_v59 = vpop.f32.mrf.mxu0 }
 0xaea   : > { %6027 = vmatmul.mubr.msk.bf16.vlgmr.msra.gmra.mxu0 %vm1543_vm1, %v4079_v58 }
 0xaeb   : > { %v3754_v60 = vpop.f32.mrf.mxu0  ;;  %6037 = vmatpush3.bf16.msra.mxu0 %v6400_v57  ;;  %6038 = vmatprep.mubr.msk.bf16.mxu0 %vm7173_vm0, %v7172_v19 }
 0xaec   : > { %6048 = vmatprep.subr.bf16.mxu0 %v7172_v19 }
 0xaed   : > { %v5981_v61 = vpop.f32.mrf.mxu0 }
 0xb3b   : > { %v3797_v42 = vpop.f32.mrf.mxu1 }
 0xb3c   : > { %v4080_v62 = vpack.c.bf16 %v3797_v42, %v3797_v42 }
 0xb3d   : > { %v5986_v63 = vpop.f32.mrf.mxu1 }
 0xb3e   : > { %6033 = vmatmul.mubr.msk.bf16.vlgmr.msra.gmra.mxu1 %vm1543_vm1, %v4080_v62 }
 0xb3f   : > { %v3800_v1 = vpop.f32.mrf.mxu1  ;;  %v3843_v2 = vpop.f32.mrf.mxu0  ;;  %6043 = vmatpush3.bf16.msra.mxu1 %v6403_v56  ;;  %6044 = vmatprep.mubr.msk.bf16.mxu1 %vm7173_vm0, %v7172_v19 }
 0xb40   : > { %v4081_v6 = vpack.c.bf16 %v3843_v2, %v3843_v2  ;;  %6054 = vmatprep.subr.bf16.mxu1 %v7172_v19 }
 0xb41   : > { %v5987_v7 = vpop.f32.mrf.mxu1  ;;  %v5992_v8 = vpop.f32.mrf.mxu0 }
 0xb42   : > { %6039 = vmatmul.mubr.msk.bf16.vlgmr.msra.gmra.mxu0 %vm1543_vm1, %v4081_v6 }
 0xb43   : > { %v3846_v54 = vpop.f32.mrf.mxu0  ;;  %6049 = vmatpush3.bf16.msra.mxu0 %v6401_v4  ;;  %6050 = vmatprep.mubr.msk.bf16.mxu0 %vm7173_vm0, %v7172_v19 }
 0xb44   : > { %6060 = vmatprep.subr.bf16.mxu0 %v7172_v19 }
 0xb45   : > { %v5993_v5 = vpop.f32.mrf.mxu0 }
 0xb47   : > { %v3935_v9 = vpop.f32.mrf.mxu0 }
 0xb48   : > { %v4083_v12 = vpack.c.bf16 %v3935_v9, %v3935_v9 }
 0xb49   : > { %v6004_v13 = vpop.f32.mrf.mxu0 }
 0xb4a   : > { %6051 = vmatmul.mubr.msk.bf16.vlgmr.msra.gmra.mxu0 %vm1543_vm1, %v4083_v12  ;;  %v5562_v12 = vld [vmem:[#allocation20] ss:$0 sm:$0xff] }
 0xb4b   : > { %v3938_v15 = vpop.f32.mrf.mxu0  ;;  %6061 = vmatpush3.bf16.msra.mxu0 %v6402_v10  ;;  %6062 = vmatprep.mubr.msk.bf16.mxu0 %vm7173_vm0, %v7172_v19 }
 0xb4d   : > { %v6005_v17 = vpop.f32.mrf.mxu0 }
 0xb4f   : > { %v4027_v3 = vpop.f32.mrf.mxu0 }
 0xb50   : > { %v4085_v11 = vpack.c.bf16 %v4027_v3, %v4027_v3 }
 0xb51   : > { %v6016_v18 = vpop.f32.mrf.mxu0 }
 0xb52   : > { %6063 = vmatmul.mubr.msk.bf16.vlgmr.msra.gmra.mxu0 %vm1543_vm1, %v4085_v11 }
 0xb53   : > { %v4030_v20 = vpop.f32.mrf.mxu0  ;;  %4664 = vmatprep.mubr.bf16.mxu0 %v7171_v0 }
 0xb55   : > { %v6017_v22 = vpop.f32.mrf.mxu0 }
 0xb70   : > { %v3889_v23 = vpop.f32.mrf.mxu1 }
 0xb71   : > { %v4082_v14 = vpack.c.bf16 %v3889_v23, %v3889_v23  ;;  %v6408_v23 = vld [vmem:[#allocation25 + $0x74] ss:$8 sps:$4 sm:$0xff]  }
 0xb72   : > { %v5998_v16 = vpop.f32.mrf.mxu1  ;;  %4632 = vmatprep.subr.bf16.mxu0 %v6408_v23 }
 0xb73   : > { %6045 = vmatmul.mubr.msk.bf16.vlgmr.msra.gmra.mxu1 %vm1543_vm1, %v4082_v14  ;;  %v6411_v14 = vld [vmem:[#allocation25 + $0x64] ss:$8 sps:$4 sm:$0xff]   ;;  %v6409_v16 = vld [vmem:[#allocation25 + $0x60] ss:$8 sps:$4 sm:$0xff]  }
 0xb74   : > { %v3892_v28 = vpop.f32.mrf.mxu1  ;;  %6055 = vmatpush3.bf16.msra.mxu1 %v6404_v25  ;;  %6056 = vmatprep.mubr.msk.bf16.mxu1 %vm7173_vm0, %v7172_v19  ;;  %v6406_v25 = vld [vmem:[#allocation25 + $0x70] ss:$8 sps:$4 sm:$0xff]  }
 0xb75   : > { %6066 = vmatprep.subr.bf16.mxu1 %v7172_v19  ;;  %4633 = vmatpush1.bf16.msra.mxu0 %v6406_v25  ;;  %v6414_v28 = vld [vmem:[#allocation25 + $0x54] ss:$8 sps:$4 sm:$0xff]  }
 0xb76   : > { %v5999_v29 = vpop.f32.mrf.mxu1  ;;  %4634 = vmatprep.subr.bf16.mxu0 %v6411_v14  ;;  %v5581_v14 = vld [vmem:[#allocation29] ss:$0 sm:$0xff] }
 0xb77   : > { %v6412_v29 = vld [vmem:[#allocation25 + $0x50] ss:$8 sps:$4 sm:$0xff]  }
 0xb78   : > { %v3981_v27 = vpop.f32.mrf.mxu1 }
 0xb79   : > { %v4084_v34 = vpack.c.bf16 %v3981_v27, %v3981_v27  ;;  %4635 = vmatpush1.bf16.msra.mxu0 %v6409_v16  ;;  %v6417_v27 = vld [vmem:[#allocation25 + $0x44] ss:$8 sps:$4 sm:$0xff]  }
 0xb7a   : > { %v6010_v36 = vpop.f32.mrf.mxu1  ;;  %4636 = vmatprep.subr.bf16.mxu0 %v6414_v28 }
 0xb7b   : > { %6057 = vmatmul.mubr.msk.bf16.vlgmr.msra.gmra.mxu1 %vm1543_vm1, %v4084_v34  ;;  %v6418_v34 = vld [vmem:[#allocation25 + $0x30] ss:$8 sps:$4 sm:$0xff]   ;;  %v6423_v36 = vld [vmem:[#allocation25 + $0x24] ss:$8 sps:$4 sm:$0xff]  }
 0xb7c   : > { %v3984_v0 = vpop.f32.mrf.mxu1  ;;  %6067 = vmatpush3.bf16.msra.mxu1 %v6405_v31  ;;  %6068 = vmatprep.mubr.msk.bf16.mxu1 %vm7173_vm0, %v7172_v19  ;;  %v6420_v31 = vld [vmem:[#allocation25 + $0x34] ss:$8 sps:$4 sm:$0xff]  }
 0xb7d   : > { %4637 = vmatpush1.bf16.msra.mxu0 %v6412_v29  ;;  %v6421_v0 = vld [vmem:[#allocation25 + $0x20] ss:$8 sps:$4 sm:$0xff]  }
 0xb7e   : > { %v6011_v37 = vpop.f32.mrf.mxu1  ;;  %4638 = vmatprep.subr.bf16.mxu0 %v6417_v27 }
 0xb7f   : > { %v6426_v37 = vld [vmem:[#allocation25 + $0x14] ss:$8 sps:$4 sm:$0xff]  }
 0xb80   : > { %v4073_v26 = vpop.f32.mrf.mxu1 }
 0xb81   : > { %v4086_v38 = vpack.c.bf16 %v4073_v26, %v4073_v26  ;;  %v6424_v26 = vld [vmem:[#allocation25 + $0x10] ss:$8 sps:$4 sm:$0xff]  }
 0xb82   : > { %v6022_v33 = vpop.f32.mrf.mxu1 }
 0xb83   : > { %6069 = vmatmul.mubr.msk.bf16.vlgmr.msra.gmra.mxu1 %vm1543_vm1, %v4086_v38  ;;  %v6429_v38 = vld [vmem:[#allocation25 + $0x4] ss:$8 sps:$4 sm:$0xff]   ;;  %v6427_v33 = vld [vmem:[#allocation25] ss:$8 sps:$4 sm:$0xff]  }
 0xb84   : > { %v4076_v35 = vpop.f32.mrf.mxu1 }
 0xb85   : > { %v6430_v35 = vld [vmem:[#allocation28 + $0x78] sm:$0xff]  }
 0xb86   : > { %v6023_v39 = vpop.f32.mrf.mxu1  ;;  %5722 = vmatprep.subr.bf16.mxu1 %v6430_v35 }
 0xb87   : > { %v6431_v39 = vld [vmem:[#allocation28 + $0x38] sm:$0xff]  }
 0xb88   : > { %5723 = vmatpush3.bf16.msra.mxu1 %v6431_v39 }
 0xbaa   : > { %v4130_v41 = vpop.f32.mrf.mxu0 }
 0xbac   : > { %v6028_v43 = vpop.f32.mrf.mxu0 }
 0xbad   : > { %v6433_v43 = vld [vmem:[#allocation28 + $0x30] sm:$0xff]  }
 0xbae   : > { %v4133_v44 = vpop.f32.mrf.mxu0 }
 0xbaf   : > { %v6434_v44 = vld [vmem:[#allocation28 + $0x68] sm:$0xff]  }
 0xbb0   : > { %v6029_v45 = vpop.f32.mrf.mxu0 }
 0xbb1   : > { %v6435_v45 = vld [vmem:[#allocation28 + $0x28] sm:$0xff]  }
 0xbfe   : > { %v4179_v46 = vpop.f32.mrf.mxu1 }
 0xbff   : > { %v4479_v56 = vadd.f32 %v4179_v46, %v4130_v41  ;;  %v6432_v41 = vld [vmem:[#allocation28 + $0x70] sm:$0xff]   ;;  %v6436_v46 = vld [vmem:[#allocation28 + $0x60] sm:$0xff]  }
 0xc00   : > { %v6034_v40 = vpop.f32.mrf.mxu1  ;;  %5724 = vmatprep.subr.bf16.mxu1 %v6432_v41  ;;  %v5598_v41 = vld [vmem:[#allocation31] ss:$0 sm:$0xff] }
 0xc01   : > { %5725 = vmatpush3.bf16.msra.mxu1 %v6433_v43  ;;  %v6437_v40 = vld [vmem:[#allocation28 + $0x20] sm:$0xff]  }
 0xc02   : > { %v4182_v48 = vpop.f32.mrf.mxu1  ;;  %v4228_v49 = vpop.f32.mrf.mxu0  ;;  %5726 = vmatprep.subr.bf16.mxu1 %v6434_v44  ;;  %v5599_v44 = vld [vmem:[#allocation32] ss:$0 sm:$0xff] }
 0xc03   : > { %v4480_v63 = vadd.f32 %v4479_v56, %v4228_v49  ;;  %v6438_v48 = vld [vmem:[#allocation28 + $0x58] sm:$0xff]  }
 0xc04   : > { %v6035_v47 = vpop.f32.mrf.mxu1  ;;  %v6040_v50 = vpop.f32.mrf.mxu0  ;;  %v6439_v49 = vld [vmem:[#allocation28 + $0x18] sm:$0xff]  }
 0xc05   : > { %5727 = vmatpush3.bf16.msra.mxu1 %v6435_v45  ;;  %v6440_v47 = vld [vmem:[#allocation28 + $0x50] sm:$0xff]  }
 0xc06   : > { %v4231_v51 = vpop.f32.mrf.mxu0  ;;  %5728 = vmatprep.subr.bf16.mxu1 %v6436_v46  ;;  %v6441_v50 = vld [vmem:[#allocation28 + $0x10] sm:$0xff]  }
 0xc08   : > { %v6041_v19 = vpop.f32.mrf.mxu0 }
 0xc09   : > { %5729 = vmatpush3.bf16.msra.mxu1 %v6437_v40 }
 0xc0a   : > { %v4326_v52 = vpop.f32.mrf.mxu0  ;;  %5730 = vmatprep.subr.bf16.mxu1 %v6438_v48 }
 0xc0c   : > { %v6052_v53 = vpop.f32.mrf.mxu0 }
 0xc0d   : > { %5731 = vmatpush3.bf16.msra.mxu1 %v6439_v49 }
 0xc0e   : > { %v4329_v55 = vpop.f32.mrf.mxu0  ;;  %5732 = vmatprep.subr.bf16.mxu1 %v6440_v47 }
 0xc10   : > { %v6053_v57 = vpop.f32.mrf.mxu0 }
 0xc11   : > { %5733 = vmatpush3.bf16.msra.mxu1 %v6441_v50 }
 0xc12   : > { %v4424_v58 = vpop.f32.mrf.mxu0 }
 0xc14   : > { %v6064_v59 = vpop.f32.mrf.mxu0 }
 0xc16   : > { %v4427_v60 = vpop.f32.mrf.mxu0 }
 0xc18   : > { %v6065_v61 = vpop.f32.mrf.mxu0 }
 0xc33   : > { %v4277_v42 = vpop.f32.mrf.mxu1 }
 0xc34   : > { %v4481_v2 = vadd.f32 %v4480_v63, %v4277_v42  ;;  %v5563_v42 = vld [vmem:[#allocation22] ss:$0 sm:$0xff] }
 0xc35   : > { %v6046_v62 = vpop.f32.mrf.mxu1 }
 0xc36   : > { %v4482_v7 = vadd.f32 %v4481_v2, %v4326_v52  ;;  %v5564_v62 = vld [vmem:[#allocation23] ss:$0 sm:$0xff] }
 0xc37   : > { %v4280_v1 = vpop.f32.mrf.mxu1 }
 0xc39   : > { %v6047_v4 = vpop.f32.mrf.mxu1 }
 0xc3b   : > { %v4375_v6 = vpop.f32.mrf.mxu1 }
 0xc3c   : > { %v4483_v54 = vadd.f32 %v4482_v7, %v4375_v6  ;;  %v6442_v6 = vld [vmem:[#allocation28 + $0x48] sm:$0xff]  }
 0xc3d   : > { %v6058_v8 = vpop.f32.mrf.mxu1  ;;  %v6443_v7 = vld [vmem:[#allocation28 + $0x8] sm:$0xff]   ;;  %5734 = vmatprep.subr.bf16.mxu1 %v6442_v6 }
 0xc3e   : > { %v4484_v10 = vadd.f32 %v4483_v54, %v4424_v58  ;;  %5735 = vmatpush3.bf16.msra.mxu1 %v6443_v7  ;;  %v6444_v8 = vld [vmem:[#allocation28 + $0x40] sm:$0xff]  }
 0xc3f   : > { %v4378_v5 = vpop.f32.mrf.mxu1  ;;  %v6445_v54 = vld [vmem:[#allocation28] sm:$0xff]   ;;  %5736 = vmatprep.subr.bf16.mxu1 %v6444_v8 }
 0xc40   : > { %v4540_v5 = vld [vmem:[#allocation26] sm:$0x3] }
 0xc41   : > { %v6059_v9 = vpop.f32.mrf.mxu1 }
 0xc42   : > { %5737 = vmatpush3.bf16.msra.mxu1 %v6445_v54  ;;  %v4545_v9 = vrot.slane %v4540_v5, %v7671_v30 }
 0xc43   : > { %v4473_v13 = vpop.f32.mrf.mxu1 }
 0xc44   : > { %v4485_v15 = vadd.f32 %v4484_v10, %v4473_v13  ;;  %v4549_v10 = vrot.slane %v4540_v5, %v7676_v32 }
 0xc45   : > { %v6070_v17 = vpop.f32.mrf.mxu1 }
 0xc46   : > { %v4492_v3 = vadd.f32 %v5562_v12, %v4485_v15 }
 0xc47   : > { %v4476_v11 = vpop.f32.mrf.mxu1 }
 0xc48   : > { %v8174_v18 = vadd.f32 %v4492_v3, %v7947_v24  ;;  %v6415_v24 = vld [vmem:[#allocation25 + $0x40] ss:$8 sps:$4 sm:$0xff]  }
 0xc49   : > { %v6071_v20 = vpop.f32.mrf.mxu1  ;;  %4639 = vmatpush1.bf16.msra.mxu0 %v6415_v24 }
 0xc4a   : > { %4494 = vadd.xlane.f32.xlu1 %v8174_v18  ;;  %v4497_v22 = vmul.f32 %v8174_v18, %v8174_v18  ;;  %4640 = vmatprep.subr.bf16.mxu0 %v6420_v31 }
 0xc4c   : > { %4498 = vadd.xlane.f32.xlu0 %v4497_v22 }
 0xc4d   : > { %4641 = vmatpush1.bf16.msra.mxu0 %v6418_v34 }
 0xc4e   : > { %4642 = vmatprep.subr.bf16.mxu0 %v6423_v36 }
 0xc51   : > { %4643 = vmatpush1.bf16.msra.mxu0 %v6421_v0 }
 0xc52   : > { %4644 = vmatprep.subr.bf16.mxu0 %v6426_v37 }
 0xc55   : > { %4645 = vmatpush1.bf16.msra.mxu0 %v6424_v26 }
 0xc56   : > { %4646 = vmatprep.subr.bf16.mxu0 %v6429_v38 }
 0xc59   : > { %4647 = vmatpush1.bf16.msra.mxu0 %v6427_v33 }
 0xcd3   : > { %v4495_v51 = vpop.xlane.xlu1 %4494 }
 0xcd4   : > { %v4496_v19 = vmul.f32 0.0078125, %v4495_v51 }
 0xcd5   : > { %v4499_v52 = vpop.xlane.xlu0 %4498 }
 0xcd6   : > { %v4501_v53 = vmul.f32 %v4496_v19, %v4496_v19  ;;  %v4500_v55 = vmul.f32 0.0078125, %v4499_v52  ;;  %v4504_v60 = vsub.f32 %v8174_v18, %v4496_v19 }
 0xcd8   : > { %v4502_v57 = vsub.f32 %v4500_v55, %v4501_v53 }
 0xcda   : > { %v4503_v58 = vmax.f32 %v4502_v57, 0.0 }
 0xcdc   : > { %v4505_v59 = vadd.f32 1e-05, %v4503_v58 }
 0xcde   : > { %6512 = vrsqrt.f32 %v4505_v59 }
 0xceb   : > { %v6513_v61 = vpop.eup %6512 }
 0xcec   : > { %v4507_v56 = vmul.f32 %v6513_v61, %v4504_v60 }
 0xcee   : > { %v4514_v63 = vmul.f32 %v5563_v42, %v4507_v56 }
 0xcf0   : > { %v4521_v1 = vadd.f32 %v5564_v62, %v4514_v63 }
 0xcf2   : > { %v4522_v2 = vmul.f32 %v4521_v1, %v7944_v21 }
 0xcf4   : > { %v4523_v4 = vpack.c.bf16 %v4522_v2, %v4522_v2 }
 0xcf6   : > { %4665 = vmatmul.mubr.bf16.vlgmr.msra.gmra.mxu0 %v4523_v4 }
 0xdb6   : > { %v4666_v12 = vpop.f32.mrf.mxu0 }
 0xdb7   : > { %v4667_v13 = vadd.f32 %v4666_v12, %v4545_v9 }
 0xdb8   : > { %v4668_v15 = vpop.f32.mrf.mxu0 }
 0xdb9   : > { %v4669_v17 = vadd.f32 %v4668_v15, %v4549_v10  ;;  %v4673_v3 = vmax.f32 %v4667_v13, 0.0 }
 0xdba   : > { %v4670_v11 = vpop.f32.mrf.mxu0 }
 0xdbb   : > { %v4674_v18 = vmax.f32 %v4669_v17, 0.0  ;;  %v4675_v23 = vpack.c.bf16 %v4673_v3, %v4673_v3 }
 0xdbc   : > { %v4671_v20 = vpop.f32.mrf.mxu0 }
 0xdbd   : > { %v4676_v22 = vpack.c.bf16 %v4674_v18, %v4674_v18 }
 0xdbf   : > { %4844 = vmatprep.mubr.bf16.mxu1 %v4676_v22 }
 0xdc0   : > { %4845 = vmatmul.mubr.bf16.vlgmr.msra.gmra.mxu1 %v4675_v23 }
 0xe80   : > { %v5738_v25 = vpop.f32.mrf.mxu1 }
 0xe82   : > { %v5739_v16 = vpop.f32.mrf.mxu1 }
 0xe83   : > { %v5740_v28 = vadd.f32 %v5739_v16, %v5738_v25 }
 0xe84   : > { %v5741_v29 = vpop.f32.mrf.mxu1 }
 0xe85   : > { %v4847_v30 = vadd.f32 %v5740_v28, %v5581_v14 }
 0xe86   : > { %v5742_v27 = vpop.f32.mrf.mxu1 }
 0xe87   : > { %v4852_v32 = vadd.f32 %v4847_v30, %v4522_v2 }
 0xe89   : > { %4855 = vadd.xlane.f32.xlu0 %v4852_v32  ;;  %v4858_v24 = vmul.f32 %v4852_v32, %v4852_v32 }
 0xe8b   : > { %4859 = vadd.xlane.f32.xlu1 %v4858_v24 }
 0xf12   : > { %v4856_v31 = vpop.xlane.xlu0 %4855 }
 0xf13   : > { %v4857_v34 = vmul.f32 0.0078125, %v4856_v31 }
 0xf14   : > { %v4860_v36 = vpop.xlane.xlu1 %4859 }
 0xf15   : > { %v4862_v0 = vmul.f32 %v4857_v34, %v4857_v34  ;;  %v4861_v37 = vmul.f32 0.0078125, %v4860_v36  ;;  %v4865_v35 = vsub.f32 %v4852_v32, %v4857_v34 }
 0xf17   : > { %v4863_v26 = vsub.f32 %v4861_v37, %v4862_v0 }
 0xf19   : > { %v4864_v38 = vmax.f32 %v4863_v26, 0.0 }
 0xf1b   : > { %v4866_v33 = vadd.f32 1e-05, %v4864_v38 }
 0xf1d   : > { %6514 = vrsqrt.f32 %v4866_v33 }
 0xf2a   : > { %v6515_v39 = vpop.eup %6514 }
 0xf2b   : > { %v4868_v43 = vmul.f32 %v6515_v39, %v4865_v35 }
 0xf2d   : > { %v4875_v45 = vmul.f32 %v5598_v41, %v4868_v43 }
 0xf2f   : > { %v4882_v46 = vadd.f32 %v5599_v44, %v4875_v45 }
 0xf31   : > { %v4883_v40 = vmul.f32 %v4882_v46, %v7944_v21 }
 0xf33   : > { %4884 = vst [vmem:[%s1138_s14] sm:$0xff] %v4883_v40 }
 0xf34   : > { %7052 = shalt.err (!%p7049_p6)
}
 0xf35   : > { %s7053_s2 = scalar_lea.hbm %s4905_s28, 128  ;;  %s7057_s14 = scalar_lea.hbm %s8379_s9, 256 }
 0xf36   : > { %p7054_p12 = scmp.ne.s32.totalorder %s4905_s28, %s7053_s2  ;;  %p7058_p3 = scmp.lt.s32.totalorder %s4905_s28, %s8379_s9 }
 0xf37   : > { %p7059_p4 = scmp.lt.s32.totalorder %s7057_s14, %s7053_s2 }
 0xf38   : > { %p7055_p13 = pnand %p7054_p12, %p8380_p10 }
 0xf39   : > { %p7060_p5 = por %p7059_p4, %p7058_p3 }
 0xf3a   : > { %p7056_p7 = pneg %p7055_p13 }
 0xf3c   : > { %p7061_p8 = pnand %p7060_p5, %p7056_p7 }
 0xf3e   : > { %7064 = shalt.err (!%p7061_p8)
}
 0xf3f   : > { %6150 = dma.vmem_to_hbm [thread:$0]  (%p8380_p10), %s4908_s16, 128, %s4905_s28, %s4886_s13   ;;  %v4958_v21 = vld [vmem:[%s7820_s25] sm:$0xff] (%p8380_p10)  ;;  %v4960_v48 = vld [vmem:[%s7820_s25 + $0x8] sm:$0xff] (%p8380_p10)  ;;  %v4962_v49 = vld [vmem:[%s7820_s25 + $0x10] sm:$0xff] (%p8380_p10) }
 0xf40   : > { %4913 = sbr.rel (!%p8380_p10) target bundleno = 3916 (0xf4c), region = 208  ;;  %s8381_s5 = sld [smem:[#allocation49_spill]] (%p8380_p10)  ;;  %v4964_v47 = vld [vmem:[%s7820_s25 + $0x18] sm:$0xff] (%p8380_p10)  ;;  %v4966_v50 = vld [vmem:[%s7820_s25 + $0x20] sm:$0xff] (%p8380_p10)  ;;  %v4968_v51 = vld [vmem:[%s7820_s25 + $0x28] sm:$0xff] (%p8380_p10) }
 0xf41   : > { %s8382_s6 = sld [smem:[#allocation70_spill]] (%p8380_p10)  ;;  %v4970_v19 = vld [vmem:[%s7820_s25 + $0x30] sm:$0xff] (%p8380_p10)  ;;  %v4972_v52 = vld [vmem:[%s7820_s25 + $0x38] sm:$0xff] (%p8380_p10) }
 0xf46   : > { %s5604_s3 = sshll.u32 %s8381_s5, 3 }
 0xf47   : > { %s4915_s16 = scalar_lea.vmem %s8382_s6, %s5604_s3 }
 0xf48   : > { %4959 = vst [vmem:[%s4915_s16] sm:$0xff] %v4958_v21  ;;  %4961 = vst [vmem:[%s4915_s16 + $0x10] sm:$0xff] %v4960_v48 }
 0xf49   : > { %4963 = vst [vmem:[%s4915_s16 + $0x20] sm:$0xff] %v4962_v49  ;;  %4965 = vst [vmem:[%s4915_s16 + $0x30] sm:$0xff] %v4964_v47 }
 0xf4a   : > { %4967 = vst [vmem:[%s4915_s16 + $0x40] sm:$0xff] %v4966_v50  ;;  %4969 = vst [vmem:[%s4915_s16 + $0x50] sm:$0xff] %v4968_v51 }
 0xf4b   : > { %4971 = vst [vmem:[%s4915_s16 + $0x60] sm:$0xff] %v4970_v19  ;;  %4973 = vst [vmem:[%s4915_s16 + $0x70] sm:$0xff] %v4972_v52 }
 0xf4c PF: > { %p8383_p10 = scmp.ne.s32.totalorder %s8342_s27, 0 }
 0xf4d   : > { %s8384_s28 = sld [smem:[#allocation49_spill]] (%p8383_p10)  ;;  %v5024_v53 = vld [vmem:[%s8081_s10] sm:$0xff] (%p8383_p10)  ;;  %v5026_v55 = vld [vmem:[%s8081_s10 + $0x8] sm:$0xff] (%p8383_p10)  ;;  %v5028_v57 = vld [vmem:[%s8081_s10 + $0x10] sm:$0xff] (%p8383_p10) }
 0xf4e   : > { %4979 = sbr.rel (!%p8383_p10) target bundleno = 3929 (0xf59), region = 246  ;;  %s8385_s11 = sld [smem:[#allocation71_spill]] (%p8383_p10)  ;;  %v5030_v58 = vld [vmem:[%s8081_s10 + $0x18] sm:$0xff] (%p8383_p10)  ;;  %v5032_v59 = vld [vmem:[%s8081_s10 + $0x20] sm:$0xff] (%p8383_p10)  ;;  %v5034_v60 = vld [vmem:[%s8081_s10 + $0x28] sm:$0xff] (%p8383_p10) }
 0xf4f   : > { %v5036_v61 = vld [vmem:[%s8081_s10 + $0x30] sm:$0xff] (%p8383_p10)  ;;  %v5038_v42 = vld [vmem:[%s8081_s10 + $0x38] sm:$0xff] (%p8383_p10) }
 0xf53   : > { %s5605_s13 = sshll.u32 %s8384_s28, 3 }
 0xf54   : > { %s4981_s14 = scalar_lea.vmem %s8385_s11, %s5605_s13 }
 0xf55   : > { %5025 = vst [vmem:[%s4981_s14] sm:$0xff] %v5024_v53  ;;  %5027 = vst [vmem:[%s4981_s14 + $0x10] sm:$0xff] %v5026_v55 }
 0xf56   : > { %5029 = vst [vmem:[%s4981_s14 + $0x20] sm:$0xff] %v5028_v57  ;;  %5031 = vst [vmem:[%s4981_s14 + $0x30] sm:$0xff] %v5030_v58 }
 0xf57   : > { %5033 = vst [vmem:[%s4981_s14 + $0x40] sm:$0xff] %v5032_v59  ;;  %5035 = vst [vmem:[%s4981_s14 + $0x50] sm:$0xff] %v5034_v60 }
 0xf58   : > { %5037 = vst [vmem:[%s4981_s14 + $0x60] sm:$0xff] %v5036_v61  ;;  %5039 = vst [vmem:[%s4981_s14 + $0x70] sm:$0xff] %v5038_v42 }
 0xf59 PF: > { %s5051_s27 = sand.u32 1, %s7131_s7   ;;  %p8386_p11 = scmp.ne.s32.totalorder %s8343_s0, 0 }
 0xf5a   : > { %p8387_p0 = scmp.ge.s32.totalorder %s7143_s30, 2  ;;  %s5052_s26 = scalar_lea.sflag [#allocation4], %s5051_s27 }
 0xf5c   : > { %p6215_p2 = pnand %p8387_p0, %p8386_p11 }
 0xf5e   : > { %p6216_p1 = pneg %p6215_p2 }
 0xf60   : > { %7126 = dma.done.wait (%p6216_p1), %s5052_s26, 128  }
 0xf61   : > { %7128 = vsyncadd (%p6216_p1), %s5052_s26, 4294967168  ;;  %p51_p9 = scmp.ge.s32.totalorder %s7530_s1, 4   ;;  %s8388_s7 = smov %s7135_s4 }
 0xf62   : > { %s8389_s4 = smov %s7139_s8  ;;  %s8390_s8 = smov %s7542_s29 }
 0xf63   : > { %s8391_s30 = smov %s7530_s1  ;;  %53 = sbr.rel (!%p51_p9) target bundleno = 37 (0x25), region = 353 }
 0xf68   :  { %5071 = vsyncpa [#allocation3], 1 }
 0xf69   :  { %5073 = vsyncpa [#allocation3 + $0x1], 1 }
 0xf6a   :  { %5074 = vsyncpa [#allocation6], 1 }
 0xf6b   :  { %5075 = vsyncpa [#allocation9], 1 }
 0xf6c   :  { %5076 = vsyncpa [#allocation12], 1 }
 0xf6d   :  { %5077 = vsyncpa [#allocation15], 1 }
 0xf6e   :  { %5078 = vsyncpa [#allocation18], 1 }
 0xf6f   :  { %5079 = vsyncpa [#allocation21], 1 }
 0xf70   :  { %5080 = vsyncpa [#allocation24], 1 }
 0xf71   :  { %5081 = vsyncpa [#allocation27], 1 }
 0xf72   :  { %5082 = vsyncpa [#allocation30], 1 }
 0xf73   :  { %5083 = vsyncpa [#allocation33], 1 }
 0xf74   :  { %5084 = vsyncpa [#allocation4], 1 }
 0xf75   :  { %5086 = vsyncpa [#allocation4 + $0x1], 1 }

</bundles_post_ra>
